<compile_context>
chip_gen: v7x
topology: tpu7x:2x2x1
jax: 0.10.0
libtpu: 0.0.40
codegen_flags: <defaults>
</compile_context>

<pallas_src>
import functools

import jax
import jax.numpy as jnp
from jax.experimental import pallas as pl
from jax.experimental.pallas import tpu as pltpu


def _gated_attn_kernel(x_ref, wab_ref, bab_ref, wc_ref, bc_ref, out_ref):
    """One (tile_n, L) tile of x -> one (tile_n, C_pad) tile of A.

    When N % tile_n != 0 the last tile processes padded/garbage rows through
    tanh/sigmoid; harmless — the out-of-range rows never reach the output array
    and the wrapper slices to (N, n_classes).
    """
    d = wab_ref.shape[1] // 2
    cdtype = wab_ref.dtype            # MXU compute dtype (bf16 fast path / f32 check)

    # x arrives f32 from HBM; cast on the VPU right before the MXU op so the
    # convert is hidden under the matmul instead of being a separate XLA op.
    x = x_ref[...].astype(cdtype)

    # Fused attention_a / attention_b first layer: (TN, L) @ (L, 2D) on the MXU,
    # f32 accumulation, single full-width f32 bias add.
    ab = jnp.dot(x, wab_ref[...],
                 preferred_element_type=jnp.float32) + bab_ref[...]

    a = jnp.tanh(ab[:, :d])           # attention_a: Linear + Tanh    (EUP, f32)
    b = jax.nn.sigmoid(ab[:, d:])     # attention_b: Linear + Sigmoid (EUP, f32)
    gated = (a * b).astype(cdtype)    # values in [-1,1]x[0,1]; bf16 is plenty

    # attention_c: Linear(D, C_pad). C is padded to a multiple of 128 in the
    # wrapper so the store is a lane-dense, unmasked vst. f32 acc + f32 bias.
    out = jnp.dot(gated, wc_ref[...],
                  preferred_element_type=jnp.float32) + bc_ref[...]
    out_ref[...] = out.astype(out_ref.dtype)


def pack_params(wa, ba, wb, bb, wc, bc, *, compute_dtype=jnp.bfloat16):
    """Pre-pack weights once per model load (hoisted out of the forward path).

    wa/wb: (L, D); ba/bb: (1, D); wc: (D, C); bc: (1, C)
    (weights pre-transposed vs. PyTorch so the kernel does plain x @ W).
    """
    C = wc.shape[1]
    C_pad = 128 * pl.cdiv(C, 128)                                   # lane-dense width
    wab = jnp.concatenate([wa, wb], axis=1).astype(compute_dtype)   # (L, 2D)
    bab = jnp.concatenate([ba, bb], axis=1).astype(jnp.float32)     # (1, 2D)
    wc_p = jnp.pad(wc, ((0, 0), (0, C_pad - C))).astype(compute_dtype)  # (D, Cp)
    bc_p = jnp.pad(bc, ((0, 0), (0, C_pad - C))).astype(jnp.float32)    # (1, Cp)
    return wab, bab, wc_p, bc_p


def _choose_tile_n(N, tile_n):
    """Sublane-aligned row tile with >= 2 grid steps whenever N allows it."""
    if N < 16:
        return N                      # single exact-fit block (can't split by 8s)
    tn = min(int(tile_n), N)
    half = (N // 2) // 8 * 8          # largest multiple-of-8 tile giving >= 2 steps
    tn = min(tn, max(8, half))
    tn = (tn // 128) * 128 if tn >= 128 else (tn // 8) * 8
    return max(tn, 8)


@functools.partial(jax.jit, static_argnames=("n_classes", "tile_n"))
def attn_net_gated_packed(x, wab, bab, wc_p, bc_p, *, n_classes, tile_n=1024):
    """Gated-attention forward with pre-packed weights. Returns (A, x)."""
    N, L = x.shape
    two_d = wab.shape[1]
    D = wc_p.shape[0]
    C_pad = wc_p.shape[1]
    out_dtype = wab.dtype             # bf16 store on the fast path, f32 otherwise

    tn = _choose_tile_n(N, tile_n)
    grid = (pl.cdiv(N, tn),)          # >= 2 steps whenever N >= 16

    a_pad = pl.pallas_call(
        _gated_attn_kernel,
        out_shape=jax.ShapeDtypeStruct((N, C_pad), out_dtype),
        grid_spec=pltpu.PrefetchScalarGridSpec(
            num_scalar_prefetch=0,
            grid=grid,
            in_specs=[
                pl.BlockSpec((tn, L), lambda i: (i, 0)),        # x tile (f32 in HBM)
                pl.BlockSpec((L, two_d), lambda i: (0, 0)),     # Wa|Wb (resident)
                pl.BlockSpec((1, two_d), lambda i: (0, 0)),     # ba|bb (f32)
                pl.BlockSpec((D, C_pad), lambda i: (0, 0)),     # Wc (padded)
                pl.BlockSpec((1, C_pad), lambda i: (0, 0)),     # bc (padded, f32)
            ],
            out_specs=pl.BlockSpec((tn, C_pad), lambda i: (i, 0)),
        ),
        compiler_params=pltpu.CompilerParams(
            dimension_semantics=("parallel",)),   # shards grid across TCs on v7x
    )(x, wab, bab, wc_p, bc_p)

    A = a_pad[:, :n_classes].astype(jnp.float32)   # back to (N, n_classes), f32
    return A, x


def attn_net_gated(x, wa, ba, wb, bb, wc, bc, *, tile_n=1024,
                   compute_dtype=jnp.bfloat16):
    """One-off convenience wrapper: packs weights then runs the kernel.

    For repeated inference on fixed weights, call pack_params() once and use
    attn_net_gated_packed directly (packing is hoisted out of the hot path).
    """
    packed = pack_params(wa, ba, wb, bb, wc, bc, compute_dtype=compute_dtype)
    return attn_net_gated_packed(x, *packed, n_classes=wc.shape[1],
                                 tile_n=tile_n)


def _init_params(key, L, D, n_classes, dtype=jnp.float32):
    """Deterministic synthetic init (PyTorch Linear-like uniform ranges)."""
    ks = jax.random.split(key, 6)
    lim_a = 1.0 / jnp.sqrt(L)
    lim_c = 1.0 / jnp.sqrt(D)
    wa = jax.random.uniform(ks[0], (L, D), dtype, -lim_a, lim_a)
    ba = jax.random.uniform(ks[1], (1, D), dtype, -lim_a, lim_a)
    wb = jax.random.uniform(ks[2], (L, D), dtype, -lim_a, lim_a)
    bb = jax.random.uniform(ks[3], (1, D), dtype, -lim_a, lim_a)
    wc = jax.random.uniform(ks[4], (D, n_classes), dtype, -lim_c, lim_c)
    bc = jax.random.uniform(ks[5], (1, n_classes), dtype, -lim_c, lim_c)
    return wa, ba, wb, bb, wc, bc


if __name__ == "__main__":
    # CLAM default dims: L=1024, D=256, n_classes=1; small bag of N=512 patches.
    N, L, D, n_classes = 512, 1024, 256, 1

    key = jax.random.PRNGKey(0)
    kx, kp = jax.random.split(key)
    x = jax.random.normal(kx, (N, L), jnp.float32)
    wa, ba, wb, bb, wc, bc = _init_params(kp, L, D, n_classes)

    # Plain-JAX reference (matches the PyTorch module, dropout=False path).
    a_ref = jnp.tanh(x @ wa + ba)
    b_ref = jax.nn.sigmoid(x @ wb + bb)
    A_ref = (a_ref * b_ref) @ wc + bc

    # f32 MXU path (tighter check); tile choice gives a 2-step grid for N=512.
    A32, x_out = attn_net_gated(x, wa, ba, wb, bb, wc, bc,
                                compute_dtype=jnp.float32)
    A32 = jax.block_until_ready(A32)
    assert A32.shape == (N, n_classes)
    assert jnp.allclose(A32, A_ref, atol=1e-2, rtol=1e-2), \
        float(jnp.max(jnp.abs(A32 - A_ref)))
    assert jnp.array_equal(x_out, x)

    # bf16 fast path via pre-packed weights (the intended serving path).
    packed = pack_params(wa, ba, wb, bb, wc, bc, compute_dtype=jnp.bfloat16)
    A16, _ = attn_net_gated_packed(x, *packed, n_classes=n_classes, tile_n=1024)
    A16 = jax.block_until_ready(A16)
    assert A16.shape == (N, n_classes)
    # Relative-to-norm check so the tolerance doesn't flake for larger L.
    err = float(jnp.max(jnp.abs(A16 - A_ref)))
    scale = float(jnp.max(jnp.abs(A_ref)))
    assert err <= 0.1 * scale + 1e-3, (err, scale)

    print("KERNEL_OK")
</pallas_src>

<mosaic_0001>
module attributes {stable_mosaic.version = 11 : i64} {
  func.func @_gated_attn_kernel(%arg0: i32, %arg1: memref<256x1024xf32, #tpu.memory_space<vmem>>, %arg2: memref<1024x512xf32, #tpu.memory_space<vmem>>, %arg3: memref<1x512xf32, #tpu.memory_space<vmem>>, %arg4: memref<256x128xf32, #tpu.memory_space<vmem>>, %arg5: memref<1x128xf32, #tpu.memory_space<vmem>>, %arg6: memref<256x128xf32, #tpu.memory_space<vmem>>) attributes {dimension_semantics = [#tpu.dimension_semantics<parallel>], iteration_bounds = array<i64: 2>, scalar_prefetch = 0 : i64, scratch_operands = 0 : i64, tpu.core_type = #tpu.core_type<tc>, window_params = [{transform_indices = @transform_0, window_bounds = array<i64: 256, 1024>}, {pipeline_mode = #tpu.pipeline_mode<synchronous>, transform_indices = @transform_1, window_bounds = array<i64: 1024, 512>}, {pipeline_mode = #tpu.pipeline_mode<synchronous>, transform_indices = @transform_2, window_bounds = array<i64: 1, 512>}, {pipeline_mode = #tpu.pipeline_mode<synchronous>, transform_indices = @transform_3, window_bounds = array<i64: 256, 128>}, {pipeline_mode = #tpu.pipeline_mode<synchronous>, transform_indices = @transform_4, window_bounds = array<i64: 1, 128>}, {transform_indices = @transform_5, window_bounds = array<i64: 256, 128>}]} {
    %c0 = arith.constant 0 : index
    %c0_0 = arith.constant 0 : index
    %0 = vector.load %arg1[%c0, %c0_0] : memref<256x1024xf32, #tpu.memory_space<vmem>>, vector<256x1024xf32>
    %c0_1 = arith.constant 0 : index
    %c0_2 = arith.constant 0 : index
    %1 = vector.load %arg2[%c0_1, %c0_2] : memref<1024x512xf32, #tpu.memory_space<vmem>>, vector<1024x512xf32>
    %cst = arith.constant dense<0.000000e+00> : vector<256x512xf32>
    %2 = tpu.matmul %0, %1, %cst {dimension_numbers = #tpu.dot_dimension_numbers<[1], [0], [0], [1], [0, 0, 1, 1], [], []>} : vector<256x1024xf32>, vector<1024x512xf32>, vector<256x512xf32> -> vector<256x512xf32>
    %c0_3 = arith.constant 0 : index
    %c0_4 = arith.constant 0 : index
    %3 = vector.load %arg3[%c0_3, %c0_4] : memref<1x512xf32, #tpu.memory_space<vmem>>, vector<1x512xf32>
    %4 = vector.broadcast %3 : vector<1x512xf32> to vector<256x512xf32>
    %5 = arith.addf %2, %4 : vector<256x512xf32>
    %6 = vector.extract_strided_slice %5 {offsets = [0, 0], sizes = [256, 256], strides = [1, 1]} : vector<256x512xf32> to vector<256x256xf32>
    %7 = math.tanh %6 : vector<256x256xf32>
    %8 = vector.extract_strided_slice %5 {offsets = [0, 256], sizes = [256, 256], strides = [1, 1]} : vector<256x512xf32> to vector<256x256xf32>
    %9 = arith.negf %8 : vector<256x256xf32>
    %10 = math.exp %9 : vector<256x256xf32>
    %cst_5 = arith.constant 1.000000e+00 : f32
    %11 = vector.broadcast %cst_5 : f32 to vector<256x256xf32>
    %12 = arith.addf %11, %10 : vector<256x256xf32>
    %13 = arith.divf %11, %12 : vector<256x256xf32>
    %14 = arith.mulf %7, %13 : vector<256x256xf32>
    %c0_6 = arith.constant 0 : index
    %c0_7 = arith.constant 0 : index
    %15 = vector.load %arg4[%c0_6, %c0_7] : memref<256x128xf32, #tpu.memory_space<vmem>>, vector<256x128xf32>
    %cst_8 = arith.constant dense<0.000000e+00> : vector<256x128xf32>
    %16 = tpu.matmul %14, %15, %cst_8 {dimension_numbers = #tpu.dot_dimension_numbers<[1], [0], [0], [1], [0, 0, 1, 1], [], []>} : vector<256x256xf32>, vector<256x128xf32>, vector<256x128xf32> -> vector<256x128xf32>
    %c0_9 = arith.constant 0 : index
    %c0_10 = arith.constant 0 : index
    %17 = vector.load %arg5[%c0_9, %c0_10] : memref<1x128xf32, #tpu.memory_space<vmem>>, vector<1x128xf32>
    %18 = vector.broadcast %17 : vector<1x128xf32> to vector<256x128xf32>
    %19 = arith.addf %16, %18 : vector<256x128xf32>
    %c0_11 = arith.constant 0 : index
    %c0_12 = arith.constant 0 : index
    %20 = vector.load %arg6[%c0_11, %c0_12] : memref<256x128xf32, #tpu.memory_space<vmem>>, vector<256x128xf32>
    tpu.vector_store %arg6[%c0_11, %c0_12], %19 {strides = array<i32>} : memref<256x128xf32, #tpu.memory_space<vmem>>, vector<256x128xf32>,
    return
  }
  func.func @transform_0(%arg0: i32) -> (i32, i32) {
    %c0_i32 = arith.constant 0 : i32
    %c0_i32_0 = arith.constant 0 : i32
    return %arg0, %c0_i32 : i32, i32
  }
  func.func @transform_1(%arg0: i32) -> (i32, i32) {
    %c0_i32 = arith.constant 0 : i32
    %c0_i32_0 = arith.constant 0 : i32
    %c0_i32_1 = arith.constant 0 : i32
    return %c0_i32, %c0_i32_0 : i32, i32
  }
  func.func @transform_2(%arg0: i32) -> (i32, i32) {
    %c0_i32 = arith.constant 0 : i32
    %c0_i32_0 = arith.constant 0 : i32
    %c0_i32_1 = arith.constant 0 : i32
    return %c0_i32, %c0_i32_0 : i32, i32
  }
  func.func @transform_3(%arg0: i32) -> (i32, i32) {
    %c0_i32 = arith.constant 0 : i32
    %c0_i32_0 = arith.constant 0 : i32
    %c0_i32_1 = arith.constant 0 : i32
    return %c0_i32, %c0_i32_0 : i32, i32
  }
  func.func @transform_4(%arg0: i32) -> (i32, i32) {
    %c0_i32 = arith.constant 0 : i32
    %c0_i32_0 = arith.constant 0 : i32
    %c0_i32_1 = arith.constant 0 : i32
    return %c0_i32, %c0_i32_0 : i32, i32
  }
  func.func @transform_5(%arg0: i32) -> (i32, i32) {
    %c0_i32 = arith.constant 0 : i32
    %c0_i32_0 = arith.constant 0 : i32
    return %arg0, %c0_i32 : i32, i32
  }
}

</mosaic_0001>

<bundles_post_ra>
// kernel: attn_net_gated_packed.1
= control target key start
LH: loop header
LB: loop body
LE: loop exit
PB: predicated region body
PF: predicated region fallthrough
CT: control target
= control target key end

     0   :  { %10 = vsyncpa [#allocation3], 0  ;;  %s8106_s0 = inlined_call_operand.hbm [shape: f32[512,1024], index: 0, kind: input, shape index: {}]   ;;  %s8107_s1 = inlined_call_operand.hbm [shape: f32[1024,512], index: 1, kind: input, shape index: {}]   ;;  %s8108_s2 = inlined_call_operand.hbm [shape: f32[1,512], index: 2, kind: input, shape index: {}]   ;;  %s8109_s3 = inlined_call_operand.hbm [shape: f32[256,128], index: 3, kind: input, shape index: {}]   ;;  %s8110_s4 = inlined_call_operand.hbm [shape: f32[1,128], index: 4, kind: input, shape index: {}]   ;;  %s8111_s5 = inlined_call_operand.vmem [shape: f32[512,128], index: 5, kind: output, shape index: {}]  }
   0x1   :  { %12 = vsyncpa [#allocation3 + $0x1], 0 }
   0x2   :  { %13 = vsyncpa [#allocation5], 0 }
   0x3   :  { %14 = vsyncpa [#allocation8], 0  ;;  %s5979_s18 = smov 0   ;;  %s5981_s19 = smov 0  }
   0x4   :  { %s5983_s20 = smov 0   ;;  %s5985_s21 = smov 0  }
   0x5 LB: > { %s4061_s22 = sadd.s32 4294967295, %s5935_s21   ;;  %p40_p0 = scmp.ne.s32.totalorder %s5927_s19, %s5923_s18  ;;  %s5935_s21 = sphi %s5985_s21, %s8367_s21   ;;  %s5931_s20 = sphi %s5983_s20, %s8366_s20   ;;  %s5927_s19 = sphi %s5981_s19, %s8365_s19   ;;  %s5923_s18 = sphi %s5979_s18, %s8364_s18  }
   0x6   : > { %p6001_p1 = scmp.eq.s32.totalorder %s4061_s22, 0  ;;  %p4063_p2 = scmp.ge.s32.totalorder %s5935_s21, 1 }
   0x7   : > { %p161_p3 = scmp.lt.s32.totalorder %s5935_s21, 3  ;;  %s5937_s26 = smov [#allocation4]  }
   0x8   : > { %s8161_s23 = scalar_select %p6001_p1, 1, 0 }
   0x9   : > { %p6009_p4 = por %p6001_p1, %p40_p0  ;;  %p6013_p5 = pnand %p4063_p2, %p161_p3 }
   0xa   : > { %s173_s27 = sshll.u32 %s5937_s26, 4  ;;  %s5938_s29 = smov [#allocation7]   ;;  %s174_s27 = int_to_ptr.vmem [resolvable:$true] %s173_s27 }
   0xb   : > { %s8162_s24 = scalar_select %p6009_p4, 1, 0 }
   0xc   : > { %s8163_s25 = scalar_select %p6013_p5, 1, 0 }
   0xd   : > { %p5272_p6 = pneg %p6013_p5  ;;  %s197_s30 = sshll.u32 %s5938_s29, 4  ;;  %s6025_s30 = int_to_ptr.vmem [resolvable:$true] %s197_s30 }
   0xe   : > { %s5751_s8 = scalar_lea.hbm %s8107_s1, 65536 }
   0xf   : > { %p6021_p7 = pnand %p5272_p6, %p6001_p1  ;;  %p5752_p8 = scmp.ne.s32.totalorder %s8107_s1, %s5751_s8 }
  0x10   : > { %p5758_p12 = scmp.lt.u32.totalorder %s5751_s8, %s8107_s1 }
  0x11   : > { %p6035_p9 = pneg %p6021_p7 }
  0x13   : > { %p5754_p10 = pnand %p6035_p9, %p5752_p8 }
  0x15   : > { %p5755_p11 = pneg %p5754_p10 }
  0x17   : > { %p5760_p13 = pnand %p5758_p12, %p5755_p11 }
  0x19   : > { %5763 = shalt.err (!%p5760_p13)
}
  0x1a   : > { %s5764_s14 = scalar_lea.vmem %s174_s27, 65536  ;;  %p5772_p6 = scmp.lt.s32.totalorder %s174_s27, %s174_s27 }
  0x1b   : > { %p5765_p0 = scmp.ne.s32.totalorder %s174_s27, %s5764_s14  ;;  %p5773_p1 = scmp.lt.s32.totalorder %s5764_s14, %s5764_s14 }
  0x1d   : > { %p5767_p2 = pnand %p5765_p0, %p6035_p9  ;;  %p5774_p4 = por %p5773_p1, %p5772_p6 }
  0x1f   : > { %p5768_p3 = pneg %p5767_p2 }
  0x21   : > { %p5775_p5 = pnand %p5774_p4, %p5768_p3 }
  0x23   : > { %5778 = shalt.err (!%p5775_p5)
}
  0x24   : > { %s5939_s15 = smov 512   ;;  %s5940_s16 = smov 32  }
  0x25   : > { %5275 = dma.hbm_to_vmem [thread:$0]  (!%p6021_p7), %s8107_s1, 65536, %s174_s27, [#allocation5], %s5939_s15, %s5939_s15, %s5940_s16  }
  0x26   : > { %s5779_s6 = scalar_lea.hbm %s8109_s3, 4096 }
  0x27   : > { %p5780_p8 = scmp.ne.s32.totalorder %s8109_s3, %s5779_s6  ;;  %p5786_p5 = scmp.lt.u32.totalorder %s5779_s6, %s8109_s3 }
  0x29   : > { %p5782_p1 = pnand %p5780_p8, %p6035_p9 }
  0x2b   : > { %p5783_p4 = pneg %p5782_p1 }
  0x2d   : > { %p5788_p10 = pnand %p5786_p5, %p5783_p4 }
  0x2f   : > { %5791 = shalt.err (!%p5788_p10)
}
  0x30   : > { %s5792_s27 = scalar_lea.vmem %s6025_s30, 4096  ;;  %p5800_p0 = scmp.lt.s32.totalorder %s6025_s30, %s6025_s30 }
  0x31   : > { %p5793_p11 = scmp.ne.s32.totalorder %s6025_s30, %s5792_s27  ;;  %p5801_p2 = scmp.lt.s32.totalorder %s5792_s27, %s5792_s27 }
  0x33   : > { %p5795_p12 = pnand %p5793_p11, %p6035_p9  ;;  %p5802_p3 = por %p5801_p2, %p5800_p0 }
  0x35   : > { %p5796_p13 = pneg %p5795_p12 }
  0x37   : > { %p5803_p6 = pnand %p5802_p3, %p5796_p13 }
  0x39   : > { %5806 = shalt.err (!%p5803_p6)
}
  0x3a   : > { %s5941_s12 = smov 128   ;;  %s5942_s13 = smov 8  }
  0x3b   : > { %5281 = dma.hbm_to_vmem [thread:$0]  (!%p6021_p7), %s8109_s3, 4096, %s6025_s30, [#allocation8], %s5941_s12, %s5941_s12, %s5942_s13  }
  0x3c   : > { %s5943_s16 = smov [#allocation6]   ;;  %s5944_s18 = smov [#allocation9]  }
  0x3d   : > { %s187_s17 = sshll.u32 %s5943_s16, 4  ;;  %s211_s26 = sshll.u32 %s5944_s18, 4  ;;  %s188_s17 = int_to_ptr.vmem [resolvable:$true] %s187_s17  ;;  %s6074_s26 = int_to_ptr.vmem [resolvable:$true] %s211_s26 }
  0x3e   : > { %s5807_s7 = scalar_lea.hbm %s8108_s2, 64 }
  0x3f   : > { %p5808_p8 = scmp.ne.s32.totalorder %s8108_s2, %s5807_s7  ;;  %p5814_p5 = scmp.lt.u32.totalorder %s5807_s7, %s8108_s2 }
  0x41   : > { %p5810_p1 = pnand %p5808_p8, %p6035_p9 }
  0x43   : > { %p5811_p4 = pneg %p5810_p1 }
  0x45   : > { %p5816_p10 = pnand %p5814_p5, %p5811_p4 }
  0x47   : > { %5819 = shalt.err (!%p5816_p10)
}
  0x48   : > { %s5820_s27 = scalar_lea.vmem %s188_s17, 64  ;;  %p5828_p0 = scmp.lt.s32.totalorder %s188_s17, %s188_s17 }
  0x49   : > { %p5821_p11 = scmp.ne.s32.totalorder %s188_s17, %s5820_s27  ;;  %p5829_p2 = scmp.lt.s32.totalorder %s5820_s27, %s5820_s27 }
  0x4b   : > { %p5823_p12 = pnand %p5821_p11, %p6035_p9  ;;  %p5830_p3 = por %p5829_p2, %p5828_p0 }
  0x4d   : > { %p5824_p13 = pneg %p5823_p12 }
  0x4f   : > { %p5831_p6 = pnand %p5830_p3, %p5824_p13 }
  0x51   : > { %5834 = shalt.err (!%p5831_p6)
}
  0x52   : > { %5278 = dma.hbm_to_vmem [thread:$0]  (!%p6021_p7), %s8108_s2, 64, %s188_s17, [#allocation5]  }
  0x53   : > { %s5835_s16 = scalar_lea.hbm %s8110_s4, 16 }
  0x54   : > { %p5836_p8 = scmp.ne.s32.totalorder %s8110_s4, %s5835_s16  ;;  %p5842_p5 = scmp.lt.u32.totalorder %s5835_s16, %s8110_s4 }
  0x56   : > { %p5838_p1 = pnand %p5836_p8, %p6035_p9 }
  0x58   : > { %p5839_p4 = pneg %p5838_p1 }
  0x5a   : > { %p5844_p10 = pnand %p5842_p5, %p5839_p4 }
  0x5c   : > { %5847 = shalt.err (!%p5844_p10)
}
  0x5d   : > { %s5848_s17 = scalar_lea.vmem %s6074_s26, 16  ;;  %s5855_s8 = scalar_lea.vmem %s6074_s26, 32 }
  0x5e   : > { %p5849_p11 = scmp.ne.s32.totalorder %s6074_s26, %s5848_s17  ;;  %p5856_p0 = scmp.lt.s32.totalorder %s6074_s26, %s6074_s26 }
  0x5f   : > { %p5857_p2 = scmp.lt.s32.totalorder %s5855_s8, %s5848_s17 }
  0x60   : > { %p5851_p12 = pnand %p5849_p11, %p6035_p9 }
  0x61   : > { %p5858_p3 = por %p5857_p2, %p5856_p0 }
  0x62   : > { %p5852_p13 = pneg %p5851_p12 }
  0x64   : > { %p5859_p6 = pnand %p5858_p3, %p5852_p13 }
  0x66   : > { %5862 = shalt.err (!%p5859_p6)
}
  0x67   : > { %5284 = dma.hbm_to_vmem [thread:$0]  (!%p6021_p7), %s8110_s4, 16, %s6074_s26, [#allocation8]  }
  0x68   : > { %s6119_s11 = sadd.s32 1, %s5935_s21   ;;  %s27_s28 = sadd.s32 1, %s5931_s20 }
  0x69   : > { %s24_s30 = ssub.s32 %s5935_s21, %s6119_s11  ;;  %p34_p8 = scmp.ne.s32.totalorder %s5931_s20, %s5927_s19 }
  0x6a   : > { %p25_p9 = scmp.eq.s32.totalorder %s24_s30, 0  ;;  %p35_p1 = scmp.eq.s32.totalorder %s5935_s21, 0 }
  0x6b   : > { %p5293_p5 = scmp.lt.s32.totalorder %s5935_s21, 2  ;;  %s222_s12 = sand.u32 1, %s5931_s20  }
  0x6c   : > { %s6128_s27 = scalar_select %p25_p9, %s5931_s20, %s27_s28  }
  0x6d   : > { %p36_p4 = por %p35_p1, %p34_p8  ;;  %s4149_s13 = sshll.u32 %s5935_s21, 15 }
  0x6e   : > { %s4069_s14 = sshll.u32 %s222_s12, 11  ;;  %s6136_s18 = scalar_lea.hbm %s8106_s0, %s4149_s13 }
  0x6f   : > { %s226_s26 = scalar_lea.vmem [#allocation2], %s4069_s14  ;;  %p6138_p7 = pnand %p5293_p5, %p36_p4 }
  0x70   : > { %s234_s29 = sshll.u32 %s226_s26, 4  ;;  %s6144_s7 = scalar_lea.sflag [#allocation3], %s222_s12  ;;  %s6142_s29 = int_to_ptr.vmem [resolvable:$true] %s234_s29 }
  0x71   : > { %s5863_s17 = scalar_lea.hbm %s6136_s18, 32768  ;;  %p5865_p11 = pneg %p6138_p7 }
  0x72   : > { %p5864_p10 = scmp.ne.s32.totalorder %s6136_s18, %s5863_s17  ;;  %s5868_s10 = scalar_lea.hbm %s8106_s0, 65536 }
  0x73   : > { %p5869_p0 = scmp.lt.u32.totalorder %s6136_s18, %s8106_s0  ;;  %p5870_p2 = scmp.lt.u32.totalorder %s5868_s10, %s5863_s17 }
  0x74   : > { %p5866_p12 = pnand %p5865_p11, %p5864_p10  ;;  %p5872_p6 = scmp.lt.u32.totalorder %s5863_s17, %s6136_s18 }
  0x75   : > { %p5871_p3 = por %p5870_p2, %p5869_p0 }
  0x76   : > { %p5867_p13 = pneg %p5866_p12 }
  0x77   : > { %p5873_p9 = por %p5872_p6, %p5871_p3 }
  0x79   : > { %p5874_p8 = pnand %p5873_p9, %p5867_p13 }
  0x7b   : > { %5877 = shalt.err (!%p5874_p8)
}
  0x7c   : > { %s5878_s12 = scalar_lea.vmem %s6142_s29, 32768  ;;  %s5945_s13 = smov [#allocation2]  }
  0x7d   : > { %p5879_p1 = scmp.ne.s32.totalorder %s6142_s29, %s5878_s12  ;;  %s5883_s14 = sshll.u32 %s5945_s13, 4  ;;  %s5884_s14 = int_to_ptr.vmem [resolvable:$false] %s5883_s14 }
  0x7e   : > { %s5885_s15 = scalar_lea.vmem %s5884_s14, 65536  ;;  %p5886_p10 = scmp.lt.s32.totalorder %s6142_s29, %s5884_s14 }
  0x7f   : > { %p5881_p4 = pnand %p5879_p1, %p5865_p11  ;;  %p5887_p12 = scmp.lt.s32.totalorder %s5885_s15, %s5878_s12 }
  0x81   : > { %p5882_p5 = pneg %p5881_p4  ;;  %p5888_p0 = por %p5887_p12, %p5886_p10 }
  0x83   : > { %p5889_p2 = pnand %p5888_p0, %p5882_p5 }
  0x85   : > { %5892 = shalt.err (!%p5889_p2)
}
  0x86   : > { %s5946_s16 = smov 1024   ;;  %s5947_s26 = smov 64  }
  0x87   : > { %5288 = dma.hbm_to_vmem [thread:$0]  (!%p6138_p7), %s6136_s18, 32768, %s6142_s29, %s6144_s7, %s5946_s16, %s5946_s16, %s5947_s26  }
  0x88   : > { %p8167_p11 = scmp.ne.s32.totalorder %s8163_s25, 0 }
  0x8a   : > { %246 = sbr.rel (%p8167_p11) target bundleno = 1256 (0x4e8), region = 40 }
  0x91   : > { %s248_s17 = sand.u32 1, %s5927_s19   ;;  %p8168_p13 = scmp.ne.s32.totalorder %s8162_s24, 0 }
  0x92   : > { %s4074_s8 = sshll.u32 %s248_s17, 11  ;;  %s249_s9 = scalar_lea.sflag [#allocation3], %s248_s17 }
  0x93   : > { %s6175_s10 = scalar_lea.vmem [#allocation2], %s4074_s8 }
  0x94   : > { %5910 = dma.done.wait (%p8168_p13), %s249_s9, 32768  }
  0x95   : > { %5912 = vsyncadd (%p8168_p13), %s249_s9, 4294934528  ;;  %p8169_p3 = scmp.ne.s32.totalorder %s8161_s23, 0 }
  0x97   : > { %5914 = dma.done.wait (%p8169_p3), [#allocation5], 65600  }
  0x98   : > { %5916 = vsyncadd (%p8169_p3), [#allocation5], 4294901696 }
  0x99   : > { %5918 = dma.done.wait (%p8169_p3), [#allocation8], 4112  }
  0x9a   : > { %5920 = vsyncadd (%p8169_p3), [#allocation8], 4294963184  ;;  %v559_v0 = vld [vmem:[#allocation4 + $0x8] sm:$0xff]  ;;  %v558_v2 = vld [vmem:[#allocation4] sm:$0xff]  ;;  %s4079_s23 = sshll.u32 %s4061_s22, 5 }
  0x9b   : > { %v563_v1 = vld [vmem:[#allocation4 + $0x28] sm:$0xff]  ;;  %v562_v4 = vld [vmem:[#allocation4 + $0x20] sm:$0xff]  ;;  %p297_p7 = scmp.lt.s32.totalorder %s4079_s23, 63 }
  0x9c   : > { %v4150_v3 = vpack.c.bf16 %v563_v1, %v559_v0  ;;  %v567_v5 = vld [vmem:[#allocation4 + $0x48] sm:$0xff]  ;;  %v4152_v7 = vpack.c.bf16 %v562_v4, %v558_v2  ;;  %v566_v9 = vld [vmem:[#allocation4 + $0x40] sm:$0xff] }
  0x9d   : > { %v571_v6 = vld [vmem:[#allocation4 + $0x68] sm:$0xff]  ;;  %v570_v10 = vld [vmem:[#allocation4 + $0x60] sm:$0xff]  ;;  %s8369_s23 = smov (!%p297_p7, %s4079_s23), 63 }
  0x9e   : > { %v4154_v8 = vpack.c.bf16 %v571_v6, %v567_v5  ;;  %v575_v11 = vld [vmem:[#allocation4 + $0x88] sm:$0xff]  ;;  %4151 = vmatprep.subr.bf16.mxu0 %v4150_v3  ;;  %4710 = vmatprep.subr.bf16.mxu1 %v4150_v3  ;;  %v4156_v13 = vpack.c.bf16 %v570_v10, %v566_v9  ;;  %v574_v15 = vld [vmem:[#allocation4 + $0x80] sm:$0xff]  ;;  %s4080_s24 = sshll.u32 %s8369_s23, 3 }
  0x9f   : > { %v579_v12 = vld [vmem:[#allocation4 + $0xa8] sm:$0xff]  ;;  %4153 = vmatpush1.bf16.msra.mxu0 %v4152_v7  ;;  %4726 = vmatpush1.bf16.msra.mxu1 %v4152_v7  ;;  %v578_v16 = vld [vmem:[#allocation4 + $0xa0] sm:$0xff]  ;;  %s8027_s29 = scalar_lea.vmem %s8111_s5, %s4080_s24 }
  0xa0   : > { %4155 = vmatprep.subr.bf16.mxu0 %v4154_v8  ;;  %4711 = vmatprep.subr.bf16.mxu1 %v4154_v8  ;;  %v4158_v14 = vpack.c.bf16 %v579_v12, %v575_v11  ;;  %v583_v17 = vld [vmem:[#allocation4 + $0xc8] sm:$0xff]  ;;  %v4160_v19 = vpack.c.bf16 %v578_v16, %v574_v15  ;;  %v582_v21 = vld [vmem:[#allocation4 + $0xc0] sm:$0xff] }
  0xa1   : > { %v587_v18 = vld [vmem:[#allocation4 + $0xe8] sm:$0xff]  ;;  %v586_v22 = vld [vmem:[#allocation4 + $0xe0] sm:$0xff] }
  0xa2   : > { %v4162_v20 = vpack.c.bf16 %v587_v18, %v583_v17  ;;  %v591_v23 = vld [vmem:[#allocation4 + $0x108] sm:$0xff]  ;;  %v4164_v25 = vpack.c.bf16 %v586_v22, %v582_v21  ;;  %v590_v27 = vld [vmem:[#allocation4 + $0x100] sm:$0xff] }
  0xa3   : > { %4157 = vmatpush1.bf16.msra.mxu0 %v4156_v13  ;;  %4727 = vmatpush1.bf16.msra.mxu1 %v4156_v13  ;;  %v595_v24 = vld [vmem:[#allocation4 + $0x128] sm:$0xff]  ;;  %v594_v28 = vld [vmem:[#allocation4 + $0x120] sm:$0xff] }
  0xa4   : > { %4159 = vmatprep.subr.bf16.mxu0 %v4158_v14  ;;  %4712 = vmatprep.subr.bf16.mxu1 %v4158_v14  ;;  %v4166_v26 = vpack.c.bf16 %v595_v24, %v591_v23  ;;  %v599_v29 = vld [vmem:[#allocation4 + $0x148] sm:$0xff]  ;;  %v4168_v31 = vpack.c.bf16 %v594_v28, %v590_v27  ;;  %v598_v33 = vld [vmem:[#allocation4 + $0x140] sm:$0xff] }
  0xa5   : > { %v603_v30 = vld [vmem:[#allocation4 + $0x168] sm:$0xff]  ;;  %v602_v34 = vld [vmem:[#allocation4 + $0x160] sm:$0xff] }
  0xa6   : > { %v4170_v32 = vpack.c.bf16 %v603_v30, %v599_v29  ;;  %v607_v35 = vld [vmem:[#allocation4 + $0x188] sm:$0xff]  ;;  %v4172_v37 = vpack.c.bf16 %v602_v34, %v598_v33  ;;  %v606_v38 = vld [vmem:[#allocation4 + $0x180] sm:$0xff] }
  0xa7   : > { %4161 = vmatpush1.bf16.msra.mxu0 %v4160_v19  ;;  %4728 = vmatpush1.bf16.msra.mxu1 %v4160_v19  ;;  %v611_v36 = vld [vmem:[#allocation4 + $0x1a8] sm:$0xff]  ;;  %v610_v40 = vld [vmem:[#allocation4 + $0x1a0] sm:$0xff] }
  0xa8   : > { %4163 = vmatprep.subr.bf16.mxu0 %v4162_v20  ;;  %4713 = vmatprep.subr.bf16.mxu1 %v4162_v20  ;;  %v4174_v39 = vpack.c.bf16 %v611_v36, %v607_v35  ;;  %v6190_v41 = vld [vmem:[%s6175_s10 + $0x8] sm:$0xff]  ;;  %v4176_v45 = vpack.c.bf16 %v610_v40, %v606_v38  ;;  %v614_v47 = vld [vmem:[#allocation4 + $0x1c0] sm:$0xff]  ;;  %v561_v35 = vld [vmem:[#allocation4 + $0x18] sm:$0xff] }
  0xa9   : > { %v431_v42 = vld [vmem:[%s6175_s10 + $0x408] sm:$0xff]  ;;  %1156 = vmatprep.mubr.f32.mxu0 %v6190_v41  ;;  %v618_v48 = vld [vmem:[#allocation4 + $0x1e0] sm:$0xff]  ;;  %v565_v36 = vld [vmem:[#allocation4 + $0x38] sm:$0xff] }
  0xaa   : > { %v615_v43 = vld [vmem:[#allocation4 + $0x1c8] sm:$0xff]  ;;  %1252 = vmatprep.mubr.f32.mxu1 %v431_v42  ;;  %v4180_v51 = vpack.c.bf16 %v618_v48, %v614_v47  ;;  %v622_v53 = vld [vmem:[#allocation4 + $0x200] sm:$0xff]  ;;  %v4406_v40 = vpack.c.bf16 %v565_v36, %v561_v35  ;;  %v569_v47 = vld [vmem:[#allocation4 + $0x58] sm:$0xff] }
  0xab   : > { %4165 = vmatpush1.bf16.msra.mxu0 %v4164_v25  ;;  %4729 = vmatpush1.bf16.msra.mxu1 %v4164_v25  ;;  %v619_v44 = vld [vmem:[#allocation4 + $0x1e8] sm:$0xff]  ;;  %v626_v54 = vld [vmem:[#allocation4 + $0x220] sm:$0xff]  ;;  %v573_v48 = vld [vmem:[#allocation4 + $0x78] sm:$0xff] }
  0xac   : > { %4167 = vmatprep.subr.bf16.mxu0 %v4166_v26  ;;  %4714 = vmatprep.subr.bf16.mxu1 %v4166_v26  ;;  %v4178_v46 = vpack.c.bf16 %v619_v44, %v615_v43  ;;  %v623_v49 = vld [vmem:[#allocation4 + $0x208] sm:$0xff]  ;;  %v4184_v57 = vpack.c.bf16 %v626_v54, %v622_v53  ;;  %v630_v59 = vld [vmem:[#allocation4 + $0x240] sm:$0xff]  ;;  %v560_v43 = vld [vmem:[#allocation4 + $0x10] sm:$0xff] }
  0xad   : > { %v627_v50 = vld [vmem:[#allocation4 + $0x228] sm:$0xff]  ;;  %v634_v60 = vld [vmem:[#allocation4 + $0x260] sm:$0xff]  ;;  %v564_v44 = vld [vmem:[#allocation4 + $0x30] sm:$0xff] }
  0xae   : > { %v4182_v52 = vpack.c.bf16 %v627_v50, %v623_v49  ;;  %v631_v55 = vld [vmem:[#allocation4 + $0x248] sm:$0xff]  ;;  %v4188_v63 = vpack.c.bf16 %v634_v60, %v630_v59  ;;  %v638_v1 = vld [vmem:[#allocation4 + $0x280] sm:$0xff]  ;;  %v4410_v60 = vpack.c.bf16 %v573_v48, %v569_v47  ;;  %v601_v48 = vld [vmem:[#allocation4 + $0x158] sm:$0xff] }
  0xaf   : > { %4169 = vmatpush1.bf16.msra.mxu0 %v4168_v31  ;;  %4730 = vmatpush1.bf16.msra.mxu1 %v4168_v31  ;;  %v635_v56 = vld [vmem:[#allocation4 + $0x268] sm:$0xff]  ;;  %v642_v2 = vld [vmem:[#allocation4 + $0x2a0] sm:$0xff] }
  0xb0   : > { %4171 = vmatprep.subr.bf16.mxu0 %v4170_v32  ;;  %4715 = vmatprep.subr.bf16.mxu1 %v4170_v32  ;;  %v4186_v58 = vpack.c.bf16 %v635_v56, %v631_v55  ;;  %v639_v61 = vld [vmem:[#allocation4 + $0x288] sm:$0xff]  ;;  %v4192_v5 = vpack.c.bf16 %v642_v2, %v638_v1  ;;  %v646_v7 = vld [vmem:[#allocation4 + $0x2c0] sm:$0xff]  ;;  %v568_v55 = vld [vmem:[#allocation4 + $0x50] sm:$0xff] }
  0xb1   : > { %v643_v62 = vld [vmem:[#allocation4 + $0x2a8] sm:$0xff]  ;;  %v650_v8 = vld [vmem:[#allocation4 + $0x2e0] sm:$0xff]  ;;  %v572_v56 = vld [vmem:[#allocation4 + $0x70] sm:$0xff] }
  0xb2   : > { %v4190_v0 = vpack.c.bf16 %v643_v62, %v639_v61  ;;  %v647_v3 = vld [vmem:[#allocation4 + $0x2c8] sm:$0xff]  ;;  %v4196_v11 = vpack.c.bf16 %v650_v8, %v646_v7  ;;  %v654_v13 = vld [vmem:[#allocation4 + $0x300] sm:$0xff]  ;;  %v576_v7 = vld [vmem:[#allocation4 + $0x90] sm:$0xff] }
  0xb3   : > { %4173 = vmatpush1.bf16.msra.mxu0 %v4172_v37  ;;  %4731 = vmatpush1.bf16.msra.mxu1 %v4172_v37  ;;  %v651_v4 = vld [vmem:[#allocation4 + $0x2e8] sm:$0xff]  ;;  %v658_v14 = vld [vmem:[#allocation4 + $0x320] sm:$0xff]  ;;  %v580_v8 = vld [vmem:[#allocation4 + $0xb0] sm:$0xff] }
  0xb4   : > { %4175 = vmatprep.subr.bf16.mxu0 %v4174_v39  ;;  %4716 = vmatprep.subr.bf16.mxu1 %v4174_v39  ;;  %v4194_v6 = vpack.c.bf16 %v651_v4, %v647_v3  ;;  %v655_v9 = vld [vmem:[#allocation4 + $0x308] sm:$0xff]  ;;  %v4200_v17 = vpack.c.bf16 %v658_v14, %v654_v13  ;;  %v662_v19 = vld [vmem:[#allocation4 + $0x340] sm:$0xff]  ;;  %v4412_v4 = vpack.c.bf16 %v572_v56, %v568_v55 }
  0xb5   : > { %v659_v10 = vld [vmem:[#allocation4 + $0x328] sm:$0xff]  ;;  %v666_v20 = vld [vmem:[#allocation4 + $0x360] sm:$0xff] }
  0xb6   : > { %v4198_v12 = vpack.c.bf16 %v659_v10, %v655_v9  ;;  %v663_v15 = vld [vmem:[#allocation4 + $0x348] sm:$0xff]  ;;  %v4204_v23 = vpack.c.bf16 %v666_v20, %v662_v19  ;;  %v670_v25 = vld [vmem:[#allocation4 + $0x380] sm:$0xff]  ;;  %v4416_v20 = vpack.c.bf16 %v580_v8, %v576_v7 }
  0xb7   : > { %4177 = vmatpush1.bf16.msra.mxu0 %v4176_v45  ;;  %4732 = vmatpush1.bf16.msra.mxu1 %v4176_v45  ;;  %v667_v16 = vld [vmem:[#allocation4 + $0x368] sm:$0xff]  ;;  %v674_v26 = vld [vmem:[#allocation4 + $0x3a0] sm:$0xff] }
  0xb8   : > { %4179 = vmatprep.subr.bf16.mxu0 %v4178_v46  ;;  %4717 = vmatprep.subr.bf16.mxu1 %v4178_v46  ;;  %v4202_v18 = vpack.c.bf16 %v667_v16, %v663_v15  ;;  %v671_v21 = vld [vmem:[#allocation4 + $0x388] sm:$0xff]  ;;  %v4208_v29 = vpack.c.bf16 %v674_v26, %v670_v25  ;;  %v678_v31 = vld [vmem:[#allocation4 + $0x3c0] sm:$0xff]  ;;  %v585_v15 = vld [vmem:[#allocation4 + $0xd8] sm:$0xff] }
  0xb9   : > { %v675_v22 = vld [vmem:[#allocation4 + $0x3a8] sm:$0xff]  ;;  %v682_v32 = vld [vmem:[#allocation4 + $0x3e0] sm:$0xff]  ;;  %v589_v16 = vld [vmem:[#allocation4 + $0xf8] sm:$0xff] }
  0xba   : > { %v4206_v24 = vpack.c.bf16 %v675_v22, %v671_v21  ;;  %v679_v27 = vld [vmem:[#allocation4 + $0x3c8] sm:$0xff]  ;;  %v4212_v37 = vpack.c.bf16 %v682_v32, %v678_v31  ;;  %v686_v38 = vld [vmem:[#allocation4 + $0x400] sm:$0xff]  ;;  %v593_v31 = vld [vmem:[#allocation4 + $0x118] sm:$0xff] }
  0xbb   : > { %4181 = vmatpush1.bf16.msra.mxu0 %v4180_v51  ;;  %4733 = vmatpush1.bf16.msra.mxu1 %v4180_v51  ;;  %v683_v28 = vld [vmem:[#allocation4 + $0x3e8] sm:$0xff]  ;;  %v690_v42 = vld [vmem:[#allocation4 + $0x420] sm:$0xff]  ;;  %v597_v32 = vld [vmem:[#allocation4 + $0x138] sm:$0xff] }
  0xbc   : > { %4183 = vmatprep.subr.bf16.mxu0 %v4182_v52  ;;  %4718 = vmatprep.subr.bf16.mxu1 %v4182_v52  ;;  %v4210_v30 = vpack.c.bf16 %v683_v28, %v679_v27  ;;  %v687_v33 = vld [vmem:[#allocation4 + $0x408] sm:$0xff]  ;;  %v6195_v49 = vld [vmem:[%s6175_s10] sm:$0xff]  ;;  %v4216_v51 = vpack.c.bf16 %v690_v42, %v686_v38  ;;  %v4408_v52 = vpack.c.bf16 %v564_v44, %v560_v43 }
  0xbd   : > { %v691_v34 = vld [vmem:[#allocation4 + $0x428] sm:$0xff]  ;;  %v430_v50 = vld [vmem:[%s6175_s10 + $0x400] sm:$0xff]  ;;  %v4418_v28 = vpack.c.bf16 %v589_v16, %v585_v15 }
  0xbe   : > { %v4214_v39 = vpack.c.bf16 %v691_v34, %v687_v33  ;;  %v695_v45 = vld [vmem:[#allocation4 + $0x448] sm:$0xff]  ;;  %v694_v53 = vld [vmem:[#allocation4 + $0x440] sm:$0xff] }
  0xbf   : > { %4185 = vmatpush1.bf16.msra.mxu0 %v4184_v57  ;;  %4734 = vmatpush1.bf16.msra.mxu1 %v4184_v57  ;;  %v699_v46 = vld [vmem:[#allocation4 + $0x468] sm:$0xff]  ;;  %v698_v54 = vld [vmem:[#allocation4 + $0x460] sm:$0xff] }
  0xc0   : > { %4187 = vmatprep.subr.bf16.mxu0 %v4186_v58  ;;  %4719 = vmatprep.subr.bf16.mxu1 %v4186_v58  ;;  %v6199_v57 = vld [vmem:[%s6175_s10 + $0x48] sm:$0xff]  ;;  %v4218_v59 = vpack.c.bf16 %v699_v46, %v695_v45  ;;  %v6204_v1 = vld [vmem:[%s6175_s10 + $0x40] sm:$0xff]  ;;  %v4220_v3 = vpack.c.bf16 %v698_v54, %v694_v53  ;;  %v4422_v45 = vpack.c.bf16 %v597_v32, %v593_v31  ;;  %v620_v31 = vld [vmem:[#allocation4 + $0x1f0] sm:$0xff] }
  0xc1   : > { %v439_v58 = vld [vmem:[%s6175_s10 + $0x448] sm:$0xff]  ;;  %v438_v2 = vld [vmem:[%s6175_s10 + $0x440] sm:$0xff] }
  0xc2   : > { %v703_v61 = vld [vmem:[#allocation4 + $0x488] sm:$0xff]  ;;  %v710_v21 = vld [vmem:[#allocation4 + $0x4c0] sm:$0xff] }
  0xc3   : > { %4189 = vmatpush1.bf16.msra.mxu0 %v4188_v63  ;;  %4735 = vmatpush1.bf16.msra.mxu1 %v4188_v63  ;;  %v707_v62 = vld [vmem:[#allocation4 + $0x4a8] sm:$0xff]  ;;  %v577_v63 = vld [vmem:[#allocation4 + $0x98] sm:$0xff]  ;;  %v714_v22 = vld [vmem:[#allocation4 + $0x4e0] sm:$0xff] }
  0xc4   : > { %4191 = vmatprep.subr.bf16.mxu0 %v4190_v0  ;;  %4720 = vmatprep.subr.bf16.mxu1 %v4190_v0  ;;  %v581_v0 = vld [vmem:[#allocation4 + $0xb8] sm:$0xff]  ;;  %v6209_v9 = vld [vmem:[%s6175_s10 + $0x88] sm:$0xff]  ;;  %v6224_v33 = vld [vmem:[%s6175_s10 + $0xc0] sm:$0xff]  ;;  %v4228_v35 = vpack.c.bf16 %v714_v22, %v710_v21 }
  0xc5   : > { %v447_v10 = vld [vmem:[%s6175_s10 + $0x488] sm:$0xff]  ;;  %v454_v34 = vld [vmem:[%s6175_s10 + $0x4c0] sm:$0xff]  ;;  %v617_v21 = vld [vmem:[#allocation4 + $0x1d8] sm:$0xff] }
  0xc6   : > { %v711_v13 = vld [vmem:[#allocation4 + $0x4c8] sm:$0xff]  ;;  %v722_v38 = vld [vmem:[#allocation4 + $0x520] sm:$0xff]  ;;  %v621_v22 = vld [vmem:[#allocation4 + $0x1f8] sm:$0xff] }
  0xc7   : > { %4193 = vmatpush1.bf16.msra.mxu0 %v4192_v5  ;;  %4736 = vmatpush1.bf16.msra.mxu1 %v4192_v5  ;;  %v702_v5 = vld [vmem:[#allocation4 + $0x480] sm:$0xff]  ;;  %v715_v14 = vld [vmem:[#allocation4 + $0x4e8] sm:$0xff] }
  0xc8   : > { %4195 = vmatprep.subr.bf16.mxu0 %v4194_v6  ;;  %4721 = vmatprep.subr.bf16.mxu1 %v4194_v6  ;;  %v706_v6 = vld [vmem:[#allocation4 + $0x4a0] sm:$0xff]  ;;  %v6219_v25 = vld [vmem:[%s6175_s10 + $0xc8] sm:$0xff]  ;;  %v4226_v27 = vpack.c.bf16 %v715_v14, %v711_v13  ;;  %v612_v13 = vld [vmem:[#allocation4 + $0x1b0] sm:$0xff] }
  0xc9   : > { %v4224_v19 = vpack.c.bf16 %v706_v6, %v702_v5  ;;  %v455_v26 = vld [vmem:[%s6175_s10 + $0x4c8] sm:$0xff]  ;;  %v726_v55 = vld [vmem:[#allocation4 + $0x540] sm:$0xff] }
  0xca   : > { %v6229_v42 = vld [vmem:[%s6175_s10 + $0x108] sm:$0xff]  ;;  %v730_v56 = vld [vmem:[#allocation4 + $0x560] sm:$0xff] }
  0xcb   : > { %4197 = vmatpush1.bf16.msra.mxu0 %v4196_v11  ;;  %4737 = vmatpush1.bf16.msra.mxu1 %v4196_v11  ;;  %v4222_v11 = vpack.c.bf16 %v707_v62, %v703_v61  ;;  %v463_v43 = vld [vmem:[%s6175_s10 + $0x508] sm:$0xff]  ;;  %v6244_v5 = vld [vmem:[%s6175_s10 + $0x140] sm:$0xff]  ;;  %v4236_v7 = vpack.c.bf16 %v730_v56, %v726_v55 }
  0xcc   : > { %4199 = vmatprep.subr.bf16.mxu0 %v4198_v12  ;;  %4722 = vmatprep.subr.bf16.mxu1 %v4198_v12  ;;  %v4414_v12 = vpack.c.bf16 %v581_v0, %v577_v63  ;;  %v727_v46 = vld [vmem:[#allocation4 + $0x548] sm:$0xff]  ;;  %v470_v6 = vld [vmem:[%s6175_s10 + $0x540] sm:$0xff] }
  0xcd   : > { %v731_v47 = vld [vmem:[#allocation4 + $0x568] sm:$0xff] }
  0xce   : > { %v471_v61 = vld [vmem:[%s6175_s10 + $0x548] sm:$0xff]  ;;  %v4234_v62 = vpack.c.bf16 %v731_v47, %v727_v46  ;;  %v750_v47 = vld [vmem:[#allocation4 + $0x600] sm:$0xff] }
  0xcf   : > { %4201 = vmatpush1.bf16.msra.mxu0 %v4200_v17  ;;  %4738 = vmatpush1.bf16.msra.mxu1 %v4200_v17  ;;  %v6214_v17 = vld [vmem:[%s6175_s10 + $0x80] sm:$0xff]  ;;  %v735_v0 = vld [vmem:[#allocation4 + $0x588] sm:$0xff] }
  0xd0   : > { %4203 = vmatprep.subr.bf16.mxu0 %v4202_v18  ;;  %4723 = vmatprep.subr.bf16.mxu1 %v4202_v18  ;;  %v446_v18 = vld [vmem:[%s6175_s10 + $0x480] sm:$0xff]  ;;  %v6249_v14 = vld [vmem:[%s6175_s10 + $0x188] sm:$0xff] }
  0xd1   : > { %v479_v15 = vld [vmem:[%s6175_s10 + $0x588] sm:$0xff] }
  0xd2   : > { %v6259_v32 = vld [vmem:[%s6175_s10 + $0x1c8] sm:$0xff] }
  0xd3   : > { %4205 = vmatpush1.bf16.msra.mxu0 %v4204_v23  ;;  %4739 = vmatpush1.bf16.msra.mxu1 %v4204_v23  ;;  %v584_v23 = vld [vmem:[#allocation4 + $0xd0] sm:$0xff] }
  0xd4   : > { %4207 = vmatprep.subr.bf16.mxu0 %v4206_v24  ;;  %4724 = vmatprep.subr.bf16.mxu1 %v4206_v24  ;;  %v588_v24 = vld [vmem:[#allocation4 + $0xf0] sm:$0xff] }
  0xd5   : > { %v4420_v36 = vpack.c.bf16 %v588_v24, %v584_v23  ;;  %v6254_v23 = vld [vmem:[%s6175_s10 + $0x180] sm:$0xff] }
  0xd6   : > { %v478_v24 = vld [vmem:[%s6175_s10 + $0x580] sm:$0xff] }
  0xd7   : > { %4209 = vmatpush1.bf16.msra.mxu0 %v4208_v29  ;;  %4740 = vmatpush1.bf16.msra.mxu1 %v4208_v29  ;;  %v719_v29 = vld [vmem:[#allocation4 + $0x508] sm:$0xff] }
  0xd8   : > { %4211 = vmatprep.subr.bf16.mxu0 %v4210_v30  ;;  %4725 = vmatprep.subr.bf16.mxu1 %v4210_v30  ;;  %v723_v30 = vld [vmem:[#allocation4 + $0x528] sm:$0xff] }
  0xd9   : > { %v4230_v44 = vpack.c.bf16 %v723_v30, %v719_v29  ;;  %v746_v29 = vld [vmem:[#allocation4 + $0x5e0] sm:$0xff]  ;;  %v616_v30 = vld [vmem:[#allocation4 + $0x1d0] sm:$0xff] }
  0xda   : > { %v4436_v46 = vpack.c.bf16 %v620_v31, %v616_v30  ;;  %v6289_v30 = vld [vmem:[%s6175_s10 + $0x288] sm:$0xff] }
  0xdb   : > { %4213 = vmatpush1.bf16.msra.mxu0 %v4212_v37  ;;  %4741 = vmatpush1.bf16.msra.mxu1 %v4212_v37  ;;  %v718_v37 = vld [vmem:[#allocation4 + $0x500] sm:$0xff]  ;;  %v511_v31 = vld [vmem:[%s6175_s10 + $0x688] sm:$0xff] }
  0xdc   : > { %4215 = vmatprep.subr.bf16.mxu0 %v4214_v39  ;;  %4407 = vmatprep.subr.bf16.mxu1 %v4406_v40  ;;  %v592_v39 = vld [vmem:[#allocation4 + $0x110] sm:$0xff]  ;;  %v4232_v53 = vpack.c.bf16 %v722_v38, %v718_v37  ;;  %v751_v37 = vld [vmem:[#allocation4 + $0x608] sm:$0xff] }
  0xdd   : > { %v596_v40 = vld [vmem:[#allocation4 + $0x130] sm:$0xff]  ;;  %v755_v38 = vld [vmem:[#allocation4 + $0x628] sm:$0xff] }
  0xde   : > { %1157 = vmatmul.mubr.f32.vlgmr.msra.gmra.mrb[0].mxu0 %v6195_v49  ;;  %1253 = vmatmul.mubr.f32.vlgmr.msra.gmra.mrb[0].mxu1 %v430_v50  ;;  %v605_v50 = vld [vmem:[#allocation4 + $0x178] sm:$0xff]  ;;  %v4424_v54 = vpack.c.bf16 %v596_v40, %v592_v39  ;;  %v4246_v55 = vpack.c.bf16 %v755_v38, %v751_v37  ;;  %v779_v37 = vld [vmem:[#allocation4 + $0x6e8] sm:$0xff] }
  0xdf   : > { %4217 = vmatpush1.bf16.msra.mxu0 %v4216_v51  ;;  %4409 = vmatpush1.bf16.msra.mxu1 %v4408_v52  ;;  %v6234_v51 = vld [vmem:[%s6175_s10 + $0x100] sm:$0xff]  ;;  %v4426_v63 = vpack.c.bf16 %v605_v50, %v601_v48  ;;  %v625_v39 = vld [vmem:[#allocation4 + $0x218] sm:$0xff]  ;;  %v624_v50 = vld [vmem:[#allocation4 + $0x210] sm:$0xff] }
  0xe0   : > { %1162 = vmatprep.mubr.f32.mxu0 %v6199_v57  ;;  %1258 = vmatprep.mubr.f32.mxu1 %v439_v58  ;;  %v462_v52 = vld [vmem:[%s6175_s10 + $0x500] sm:$0xff]  ;;  %v600_v58 = vld [vmem:[#allocation4 + $0x150] sm:$0xff]  ;;  %v629_v40 = vld [vmem:[#allocation4 + $0x238] sm:$0xff] }
  0xe1   : > { %4219 = vmatprep.subr.bf16.mxu0 %v4218_v59  ;;  %4411 = vmatprep.subr.bf16.mxu1 %v4410_v60  ;;  %v604_v59 = vld [vmem:[#allocation4 + $0x170] sm:$0xff]  ;;  %v6239_v60 = vld [vmem:[%s6175_s10 + $0x148] sm:$0xff]  ;;  %v754_v48 = vld [vmem:[#allocation4 + $0x620] sm:$0xff]  ;;  %v4438_v56 = vpack.c.bf16 %v629_v40, %v625_v39 }
  0xe2   : > { %1163 = vmatmul.mubr.f32.gmra.mrb[2].mxu0 %v6204_v1  ;;  %1259 = vmatmul.mubr.f32.gmra.mrb[2].mxu1 %v438_v2  ;;  %v739_v2 = vld [vmem:[#allocation4 + $0x5a8] sm:$0xff]  ;;  %v4428_v8 = vpack.c.bf16 %v604_v59, %v600_v58  ;;  %v649_v38 = vld [vmem:[#allocation4 + $0x2d8] sm:$0xff]  ;;  %v6294_v40 = vld [vmem:[%s6175_s10 + $0x280] sm:$0xff] }
  0xe3   : > { %4221 = vmatpush1.bf16.msra.mxu0 %v4220_v3  ;;  %4413 = vmatpush1.bf16.msra.mxu1 %v4412_v4  ;;  %v609_v3 = vld [vmem:[#allocation4 + $0x198] sm:$0xff]  ;;  %v4238_v16 = vpack.c.bf16 %v739_v2, %v735_v0  ;;  %v759_v58 = vld [vmem:[#allocation4 + $0x648] sm:$0xff]  ;;  %v494_v0 = vld [vmem:[%s6175_s10 + $0x600] sm:$0xff]  ;;  %v4248_v2 = vpack.c.bf16 %v754_v48, %v750_v47 }
  0xe4   : > { %1168 = vmatprep.mubr.f32.mxu0 %v6209_v9  ;;  %1264 = vmatprep.mubr.f32.mxu1 %v447_v10  ;;  %v613_v4 = vld [vmem:[#allocation4 + $0x1b8] sm:$0xff]  ;;  %v734_v10 = vld [vmem:[#allocation4 + $0x580] sm:$0xff]  ;;  %v763_v59 = vld [vmem:[#allocation4 + $0x668] sm:$0xff] }
  0xe5   : > { %4223 = vmatprep.subr.bf16.mxu0 %v4222_v11  ;;  %4415 = vmatprep.subr.bf16.mxu1 %v4414_v12  ;;  %v738_v11 = vld [vmem:[#allocation4 + $0x5a0] sm:$0xff]  ;;  %v608_v12 = vld [vmem:[#allocation4 + $0x190] sm:$0xff]  ;;  %v653_v39 = vld [vmem:[#allocation4 + $0x2f8] sm:$0xff] }
  0xe6   : > { %1169 = vmatmul.mubr.f32.gmra.mrb[4].mxu0 %v6214_v17  ;;  %1265 = vmatmul.mubr.f32.gmra.mrb[4].mxu1 %v446_v18  ;;  %v4430_v18 = vpack.c.bf16 %v613_v4, %v609_v3  ;;  %v758_v4 = vld [vmem:[#allocation4 + $0x640] sm:$0xff] }
  0xe7   : > { %4225 = vmatpush1.bf16.msra.mxu0 %v4224_v19  ;;  %4417 = vmatpush1.bf16.msra.mxu1 %v4416_v20  ;;  %v743_v19 = vld [vmem:[#allocation4 + $0x5c8] sm:$0xff]  ;;  %v774_v47 = vld [vmem:[#allocation4 + $0x6c0] sm:$0xff] }
  0xe8   : > { %1174 = vmatprep.mubr.f32.mxu0 %v6219_v25  ;;  %1270 = vmatprep.mubr.f32.mxu1 %v455_v26  ;;  %v747_v20 = vld [vmem:[#allocation4 + $0x5e8] sm:$0xff]  ;;  %v4240_v26 = vpack.c.bf16 %v738_v11, %v734_v10  ;;  %v778_v48 = vld [vmem:[#allocation4 + $0x6e0] sm:$0xff] }
  0xe9   : > { %4227 = vmatprep.subr.bf16.mxu0 %v4226_v27  ;;  %4419 = vmatprep.subr.bf16.mxu1 %v4418_v28  ;;  %v4432_v27 = vpack.c.bf16 %v612_v13, %v608_v12  ;;  %v742_v28 = vld [vmem:[#allocation4 + $0x5c0] sm:$0xff]  ;;  %v6279_v10 = vld [vmem:[%s6175_s10 + $0x248] sm:$0xff]  ;;  %v4250_v12 = vpack.c.bf16 %v763_v59, %v759_v58  ;;  %v4450_v58 = vpack.c.bf16 %v653_v39, %v649_v38 }
  0xea   : > { %1175 = vmatmul.mubr.f32.gmra.mrb[6].mxu0 %v6224_v33  ;;  %1271 = vmatmul.mubr.f32.gmra.mrb[6].mxu1 %v454_v34  ;;  %v487_v34 = vld [vmem:[%s6175_s10 + $0x5c8] sm:$0xff] }
  0xeb   : > { %4229 = vmatpush1.bf16.msra.mxu0 %v4228_v35  ;;  %4421 = vmatpush1.bf16.msra.mxu1 %v4420_v36  ;;  %v4242_v35 = vpack.c.bf16 %v747_v20, %v743_v19  ;;  %v4434_v36 = vpack.c.bf16 %v621_v22, %v617_v21  ;;  %v503_v11 = vld [vmem:[%s6175_s10 + $0x648] sm:$0xff]  ;;  %v645_v19 = vld [vmem:[#allocation4 + $0x2b8] sm:$0xff]  ;;  %v6284_v20 = vld [vmem:[%s6175_s10 + $0x240] sm:$0xff] }
  0xec   : > { %1180 = vmatprep.mubr.f32.mxu0 %v6229_v42  ;;  %1276 = vmatprep.mubr.f32.mxu1 %v463_v43  ;;  %v6264_v43 = vld [vmem:[%s6175_s10 + $0x1c0] sm:$0xff]  ;;  %v783_v59 = vld [vmem:[#allocation4 + $0x708] sm:$0xff] }
  0xed   : > { %4231 = vmatprep.subr.bf16.mxu0 %v4230_v44  ;;  %4423 = vmatprep.subr.bf16.mxu1 %v4422_v45  ;;  %v486_v44 = vld [vmem:[%s6175_s10 + $0x5c0] sm:$0xff]  ;;  %v4244_v45 = vpack.c.bf16 %v746_v29, %v742_v28  ;;  %v640_v28 = vld [vmem:[#allocation4 + $0x290] sm:$0xff]  ;;  %v6322_v38 = vld [vmem:[%s6175_s10 + $0x748] sm:$0xff] }
  0xee   : > { %1181 = vmatmul.mubr.f32.gmra.mrb[8].mxu0 %v6234_v51  ;;  %1277 = vmatmul.mubr.f32.gmra.mrb[8].mxu1 %v462_v52  ;;  %v628_v52 = vld [vmem:[#allocation4 + $0x230] sm:$0xff]  ;;  %v502_v21 = vld [vmem:[%s6175_s10 + $0x640] sm:$0xff] }
  0xef   : > { %4233 = vmatpush1.bf16.msra.mxu0 %v4232_v53  ;;  %4425 = vmatpush1.bf16.msra.mxu1 %v4424_v54  ;;  %v6269_v53 = vld [vmem:[%s6175_s10 + $0x208] sm:$0xff]  ;;  %v4440_v3 = vpack.c.bf16 %v628_v52, %v624_v50  ;;  %v644_v29 = vld [vmem:[#allocation4 + $0x2b0] sm:$0xff] }
  0xf0   : > { %1186 = vmatprep.mubr.f32.mxu0 %v6239_v60  ;;  %1282 = vmatprep.mubr.f32.mxu1 %v471_v61  ;;  %v495_v54 = vld [vmem:[%s6175_s10 + $0x608] sm:$0xff]  ;;  %v633_v61 = vld [vmem:[#allocation4 + $0x258] sm:$0xff]  ;;  %v648_v50 = vld [vmem:[#allocation4 + $0x2d0] sm:$0xff] }
  0xf1   : > { %4235 = vmatprep.subr.bf16.mxu0 %v4234_v62  ;;  %4427 = vmatprep.subr.bf16.mxu1 %v4426_v63  ;;  %v637_v62 = vld [vmem:[#allocation4 + $0x278] sm:$0xff]  ;;  %v6274_v63 = vld [vmem:[%s6175_s10 + $0x200] sm:$0xff]  ;;  %v652_v52 = vld [vmem:[#allocation4 + $0x2f0] sm:$0xff] }
  0xf2   : > { %1187 = vmatmul.mubr.f32.gmra.mrb[10].mxu0 %v6244_v5  ;;  %1283 = vmatmul.mubr.f32.gmra.mrb[10].mxu1 %v470_v6  ;;  %v762_v6 = vld [vmem:[#allocation4 + $0x660] sm:$0xff]  ;;  %v4442_v13 = vpack.c.bf16 %v637_v62, %v633_v61  ;;  %v787_v61 = vld [vmem:[#allocation4 + $0x728] sm:$0xff]  ;;  %v657_v62 = vld [vmem:[#allocation4 + $0x318] sm:$0xff] }
  0xf3   : > { %4237 = vmatpush1.bf16.msra.mxu0 %v4236_v7  ;;  %4429 = vmatpush1.bf16.msra.mxu1 %v4428_v8  ;;  %v632_v7 = vld [vmem:[#allocation4 + $0x250] sm:$0xff]  ;;  %v4252_v22 = vpack.c.bf16 %v762_v6, %v758_v4  ;;  %v4260_v4 = vpack.c.bf16 %v778_v48, %v774_v47  ;;  %v4452_v6 = vpack.c.bf16 %v652_v52, %v648_v50  ;;  %v673_v47 = vld [vmem:[#allocation4 + $0x398] sm:$0xff]  ;;  %v6326_v50 = vld [vmem:[%s6175_s10 + $0x340] sm:$0xff] }
  0xf4   : > { %1192 = vmatprep.mubr.f32.mxu0 %v6249_v14  ;;  %1288 = vmatprep.mubr.f32.mxu1 %v479_v15  ;;  %v636_v8 = vld [vmem:[#allocation4 + $0x270] sm:$0xff]  ;;  %v767_v15 = vld [vmem:[#allocation4 + $0x688] sm:$0xff]  ;;  %v677_v48 = vld [vmem:[#allocation4 + $0x3b8] sm:$0xff] }
  0xf5   : > { %4239 = vmatprep.subr.bf16.mxu0 %v4238_v16  ;;  %4431 = vmatprep.subr.bf16.mxu1 %v4430_v18  ;;  %v771_v16 = vld [vmem:[#allocation4 + $0x6a8] sm:$0xff]  ;;  %v641_v18 = vld [vmem:[#allocation4 + $0x298] sm:$0xff]  ;;  %v6329_v52 = vld [vmem:[%s6175_s10 + $0x740] sm:$0xff] }
  0xf6   : > { %1193 = vmatmul.mubr.f32.gmra.mrb[12].mxu0 %v6254_v23  ;;  %1289 = vmatmul.mubr.f32.gmra.mrb[12].mxu1 %v478_v24  ;;  %v4444_v24 = vpack.c.bf16 %v636_v8, %v632_v7  ;;  %v782_v7 = vld [vmem:[#allocation4 + $0x700] sm:$0xff] }
  0xf7   : > { %4241 = vmatpush1.bf16.msra.mxu0 %v4240_v26  ;;  %4433 = vmatpush1.bf16.msra.mxu1 %v4432_v27  ;;  %v766_v26 = vld [vmem:[#allocation4 + $0x680] sm:$0xff] }
  0xf8   : > { %1198 = vmatprep.mubr.f32.mxu0 %v6259_v32  ;;  %1294 = vmatprep.mubr.f32.mxu1 %v487_v34  ;;  %v770_v27 = vld [vmem:[#allocation4 + $0x6a0] sm:$0xff]  ;;  %v4254_v34 = vpack.c.bf16 %v771_v16, %v767_v15  ;;  %v527_v15 = vld [vmem:[%s6175_s10 + $0x708] sm:$0xff]  ;;  %v4262_v16 = vpack.c.bf16 %v787_v61, %v783_v59  ;;  %v672_v61 = vld [vmem:[#allocation4 + $0x390] sm:$0xff] }
  0xf9   : > { %4243 = vmatprep.subr.bf16.mxu0 %v4242_v35  ;;  %4435 = vmatprep.subr.bf16.mxu1 %v4434_v36  ;;  %v4446_v35 = vpack.c.bf16 %v645_v19, %v641_v18  ;;  %v775_v36 = vld [vmem:[#allocation4 + $0x6c8] sm:$0xff]  ;;  %v786_v8 = vld [vmem:[#allocation4 + $0x720] sm:$0xff] }
  0xfa   : > { %1199 = vmatmul.mubr.f32.gmra.mrb[14].mxu0 %v6264_v43  ;;  %1295 = vmatmul.mubr.f32.gmra.mrb[14].mxu1 %v486_v44  ;;  %v510_v44 = vld [vmem:[%s6175_s10 + $0x680] sm:$0xff]  ;;  %v791_v19 = vld [vmem:[#allocation4 + $0x748] sm:$0xff] }
  0xfb   : > { %4245 = vmatpush1.bf16.msra.mxu0 %v4244_v45  ;;  %4437 = vmatpush1.bf16.msra.mxu1 %v4436_v46  ;;  %v4256_v45 = vpack.c.bf16 %v770_v27, %v766_v26  ;;  %v4448_v46 = vpack.c.bf16 %v644_v29, %v640_v28  ;;  %v6314_v26 = vld [vmem:[%s6175_s10 + $0x300] sm:$0xff]  ;;  %v4264_v28 = vpack.c.bf16 %v786_v8, %v782_v7  ;;  %v807_v7 = vld [vmem:[#allocation4 + $0x7c8] sm:$0xff] }
  0xfc   : > { %1204 = vmatprep.mubr.f32.mxu0 %v6269_v53  ;;  %1300 = vmatprep.mubr.f32.mxu1 %v495_v54  ;;  %v6299_v54 = vld [vmem:[%s6175_s10 + $0x2c8] sm:$0xff]  ;;  %v526_v27 = vld [vmem:[%s6175_s10 + $0x700] sm:$0xff] }
  0xfd   : > { %4247 = vmatprep.subr.bf16.mxu0 %v4246_v55  ;;  %4439 = vmatprep.subr.bf16.mxu1 %v4438_v56  ;;  %v519_v55 = vld [vmem:[%s6175_s10 + $0x6c8] sm:$0xff]  ;;  %v4258_v56 = vpack.c.bf16 %v779_v37, %v775_v36  ;;  %v668_v36 = vld [vmem:[#allocation4 + $0x370] sm:$0xff]  ;;  %v802_v59 = vld [vmem:[#allocation4 + $0x7a0] sm:$0xff] }
  0xfe   : > { %1205 = vmatmul.mubr.f32.gmra.mrb[16].mxu0 %v6274_v63  ;;  %1301 = vmatmul.mubr.f32.gmra.mrb[16].mxu1 %v494_v0  ;;  %v661_v0 = vld [vmem:[#allocation4 + $0x338] sm:$0xff]  ;;  %v6319_v37 = vld [vmem:[%s6175_s10 + $0x348] sm:$0xff] }
  0xff   : > { %4249 = vmatpush1.bf16.msra.mxu0 %v4248_v2  ;;  %4441 = vmatpush1.bf16.msra.mxu1 %v4440_v3  ;;  %v6304_v2 = vld [vmem:[%s6175_s10 + $0x2c0] sm:$0xff]  ;;  %v4454_v18 = vpack.c.bf16 %v661_v0, %v657_v62  ;;  %v676_v62 = vld [vmem:[#allocation4 + $0x3b0] sm:$0xff]  ;;  %v6334_v0 = vld [vmem:[%s6175_s10 + $0x388] sm:$0xff] }
 0x100   : > { %1210 = vmatprep.mubr.f32.mxu0 %v6279_v10  ;;  %1306 = vmatprep.mubr.f32.mxu1 %v503_v11  ;;  %v518_v3 = vld [vmem:[%s6175_s10 + $0x6c0] sm:$0xff]  ;;  %v656_v11 = vld [vmem:[#allocation4 + $0x310] sm:$0xff]  ;;  %v811_v8 = vld [vmem:[#allocation4 + $0x7e8] sm:$0xff] }
 0x101   : > { %4251 = vmatprep.subr.bf16.mxu0 %v4250_v12  ;;  %4443 = vmatprep.subr.bf16.mxu1 %v4442_v13  ;;  %v660_v12 = vld [vmem:[#allocation4 + $0x330] sm:$0xff]  ;;  %v6309_v13 = vld [vmem:[%s6175_s10 + $0x308] sm:$0xff] }
 0x102   : > { %1211 = vmatmul.mubr.f32.gmra.mrb[18].mxu0 %v6284_v20  ;;  %1307 = vmatmul.mubr.f32.gmra.mrb[18].mxu1 %v502_v21  ;;  %v795_v21 = vld [vmem:[#allocation4 + $0x768] sm:$0xff]  ;;  %v4456_v29 = vpack.c.bf16 %v660_v12, %v656_v11  ;;  %v681_v11 = vld [vmem:[#allocation4 + $0x3d8] sm:$0xff] }
 0x103   : > { %4253 = vmatpush1.bf16.msra.mxu0 %v4252_v22  ;;  %4445 = vmatpush1.bf16.msra.mxu1 %v4444_v24  ;;  %v665_v22 = vld [vmem:[#allocation4 + $0x358] sm:$0xff]  ;;  %v4266_v39 = vpack.c.bf16 %v795_v21, %v791_v19  ;;  %v4464_v19 = vpack.c.bf16 %v676_v62, %v672_v61  ;;  %v806_v21 = vld [vmem:[#allocation4 + $0x7c0] sm:$0xff] }
 0x104   : > { %1216 = vmatprep.mubr.f32.mxu0 %v6289_v30  ;;  %1312 = vmatprep.mubr.f32.mxu1 %v511_v31  ;;  %v669_v24 = vld [vmem:[#allocation4 + $0x378] sm:$0xff]  ;;  %v790_v31 = vld [vmem:[#allocation4 + $0x740] sm:$0xff] }
 0x105   : > { %4255 = vmatprep.subr.bf16.mxu0 %v4254_v34  ;;  %4447 = vmatprep.subr.bf16.mxu1 %v4446_v35  ;;  %v794_v34 = vld [vmem:[#allocation4 + $0x760] sm:$0xff]  ;;  %v664_v35 = vld [vmem:[#allocation4 + $0x350] sm:$0xff]  ;;  %v685_v12 = vld [vmem:[#allocation4 + $0x3f8] sm:$0xff] }
 0x106   : > { %1217 = vmatmul.mubr.f32.gmra.mrb[20].mxu0 %v6294_v40  ;;  %1313 = vmatmul.mubr.f32.gmra.mrb[20].mxu1 %v510_v44  ;;  %v4458_v44 = vpack.c.bf16 %v669_v24, %v665_v22  ;;  %v810_v22 = vld [vmem:[#allocation4 + $0x7e0] sm:$0xff]  ;;  %v680_v24 = vld [vmem:[#allocation4 + $0x3d0] sm:$0xff]  ;;  %v697_v61 = vld [vmem:[#allocation4 + $0x458] sm:$0xff] }
 0x107   : > { %4257 = vmatpush1.bf16.msra.mxu0 %v4256_v45  ;;  %4449 = vmatpush1.bf16.msra.mxu1 %v4448_v46  ;;  %v799_v45 = vld [vmem:[#allocation4 + $0x788] sm:$0xff]  ;;  %v701_v62 = vld [vmem:[#allocation4 + $0x478] sm:$0xff] }
 0x108   : > { %1222 = vmatprep.mubr.f32.mxu0 %v6299_v54  ;;  %1318 = vmatprep.mubr.f32.mxu1 %v519_v55  ;;  %v803_v46 = vld [vmem:[#allocation4 + $0x7a8] sm:$0xff]  ;;  %v4268_v55 = vpack.c.bf16 %v794_v34, %v790_v31  ;;  %v4274_v31 = vpack.c.bf16 %v811_v8, %v807_v7  ;;  %v4466_v34 = vpack.c.bf16 %v685_v12, %v681_v11  ;;  %v818_v7 = vld [vmem:[#allocation4 + $0x820] sm:$0xff]  ;;  %v6371_v8 = vld [vmem:[%s6175_s10 + $0x10] sm:$0xff] }
 0x109   : > { %4259 = vmatprep.subr.bf16.mxu0 %v4258_v56  ;;  %4451 = vmatprep.subr.bf16.mxu1 %v4450_v58  ;;  %v4460_v56 = vpack.c.bf16 %v668_v36, %v664_v35  ;;  %v798_v58 = vld [vmem:[#allocation4 + $0x780] sm:$0xff]  ;;  %v689_v35 = vld [vmem:[#allocation4 + $0x418] sm:$0xff] }
 0x10a   : > { %1223 = vmatmul.mubr.f32.gmra.mrb[22].mxu0 %v6304_v2  ;;  %1319 = vmatmul.mubr.f32.gmra.mrb[22].mxu1 %v518_v3  ;;  %v6337_v3 = vld [vmem:[%s6175_s10 + $0x788] sm:$0xff]  ;;  %v693_v36 = vld [vmem:[#allocation4 + $0x438] sm:$0xff] }
 0x10b   : > { %4261 = vmatpush1.bf16.msra.mxu0 %v4260_v4  ;;  %4453 = vmatpush1.bf16.msra.mxu1 %v4452_v6  ;;  %v4270_v4 = vpack.c.bf16 %v803_v46, %v799_v45  ;;  %v4462_v6 = vpack.c.bf16 %v677_v48, %v673_v47  ;;  %v6358_v45 = vld [vmem:[%s6175_s10 + $0x3c0] sm:$0xff]  ;;  %v4276_v47 = vpack.c.bf16 %v810_v22, %v806_v21  ;;  %v6376_v12 = vld [vmem:[%s6175_s10 + $0x58] sm:$0xff]  ;;  %v700_v21 = vld [vmem:[#allocation4 + $0x470] sm:$0xff] }
 0x10c   : > { %1228 = vmatprep.mubr.f32.mxu0 %v6309_v13  ;;  %1324 = vmatprep.mubr.f32.mxu1 %v527_v15  ;;  %v6342_v15 = vld [vmem:[%s6175_s10 + $0x380] sm:$0xff]  ;;  %v705_v22 = vld [vmem:[#allocation4 + $0x498] sm:$0xff] }
 0x10d   : > { %4263 = vmatprep.subr.bf16.mxu0 %v4262_v16  ;;  %4455 = vmatprep.subr.bf16.mxu1 %v4454_v18  ;;  %v6345_v16 = vld [vmem:[%s6175_s10 + $0x780] sm:$0xff]  ;;  %v4272_v18 = vpack.c.bf16 %v802_v59, %v798_v58  ;;  %v6366_v58 = vld [vmem:[%s6175_s10 + $0x18] sm:$0xff]  ;;  %v4470_v59 = vpack.c.bf16 %v693_v36, %v689_v35  ;;  %v6382_v36 = vld [vmem:[%s6175_s10 + $0x50] sm:$0xff] }
 0x10e   : > { %1229 = vmatmul.mubr.f32.gmra.mrb[24].mxu0 %v6314_v26  ;;  %1325 = vmatmul.mubr.f32.gmra.mrb[24].mxu1 %v526_v27  ;;  %v684_v27 = vld [vmem:[#allocation4 + $0x3f0] sm:$0xff]  ;;  %v6361_v46 = vld [vmem:[%s6175_s10 + $0x7c0] sm:$0xff] }
 0x10f   : > { %4265 = vmatpush1.bf16.msra.mxu0 %v4264_v28  ;;  %4457 = vmatpush1.bf16.msra.mxu1 %v4456_v29  ;;  %v6350_v28 = vld [vmem:[%s6175_s10 + $0x3c8] sm:$0xff]  ;;  %v4468_v48 = vpack.c.bf16 %v684_v27, %v680_v24  ;;  %v822_v35 = vld [vmem:[#allocation4 + $0x840] sm:$0xff] }
 0x110   : > { %1234 = vmatprep.mubr.f32.mxu0 %v6319_v37  ;;  %1330 = vmatprep.mubr.f32.mxu1 %v6322_v38  ;;  %v6353_v29 = vld [vmem:[%s6175_s10 + $0x7c8] sm:$0xff] }
 0x111   : > { %4267 = vmatprep.subr.bf16.mxu0 %v4266_v39  ;;  %4459 = vmatprep.subr.bf16.mxu1 %v4458_v44  ;;  %v815_v39 = vld [vmem:[#allocation4 + $0x808] sm:$0xff] }
 0x112   : > { %1235 = vmatmul.mubr.f32.gmra.mrb[26].mxu0 %v6326_v50  ;;  %1331 = vmatmul.mubr.f32.gmra.mrb[26].mxu1 %v6329_v52  ;;  %v819_v44 = vld [vmem:[#allocation4 + $0x828] sm:$0xff] }
 0x113   : > { %4269 = vmatpush1.bf16.msra.mxu0 %v4268_v55  ;;  %4461 = vmatpush1.bf16.msra.mxu1 %v4460_v56  ;;  %v688_v55 = vld [vmem:[#allocation4 + $0x410] sm:$0xff]  ;;  %v823_v27 = vld [vmem:[#allocation4 + $0x848] sm:$0xff] }
 0x114   : > { %1240 = vmatprep.mubr.f32.mxu0 %v6334_v0  ;;  %1336 = vmatprep.mubr.f32.mxu1 %v6337_v3  ;;  %v692_v56 = vld [vmem:[#allocation4 + $0x430] sm:$0xff] }
 0x115   : > { %4271 = vmatprep.subr.bf16.mxu0 %v4270_v4  ;;  %4463 = vmatprep.subr.bf16.mxu1 %v4462_v6  ;;  %v4278_v4 = vpack.c.bf16 %v819_v44, %v815_v39  ;;  %v814_v6 = vld [vmem:[#allocation4 + $0x800] sm:$0xff]  ;;  %v4472_v11 = vpack.c.bf16 %v692_v56, %v688_v55  ;;  %v6386_v39 = vld [vmem:[%s6175_s10 + $0x98] sm:$0xff] }
 0x116   : > { %1241 = vmatmul.mubr.f32.gmra.mrb[28].mxu0 %v6342_v15  ;;  %1337 = vmatmul.mubr.f32.gmra.mrb[28].mxu1 %v6345_v16  ;;  %v4280_v24 = vpack.c.bf16 %v818_v7, %v814_v6  ;;  %v713_v56 = vld [vmem:[#allocation4 + $0x4d8] sm:$0xff]  ;;  %v834_v6 = vld [vmem:[#allocation4 + $0x8a0] sm:$0xff]  ;;  %v6393_v7 = vld [vmem:[%s6175_s10 + $0x90] sm:$0xff] }
 0x117   : > { %4273 = vmatpush1.bf16.msra.mxu0 %v4272_v18  ;;  %4465 = vmatpush1.bf16.msra.mxu1 %v4464_v19  ;;  %v4474_v18 = vpack.c.bf16 %v701_v62, %v697_v61  ;;  %v696_v19 = vld [vmem:[#allocation4 + $0x450] sm:$0xff]  ;;  %v831_v61 = vld [vmem:[#allocation4 + $0x888] sm:$0xff] }
 0x118   : > { %1246 = vmatprep.mubr.f32.mxu0 %v6350_v28  ;;  %1342 = vmatprep.mubr.f32.mxu1 %v6353_v29  ;;  %v4476_v44 = vpack.c.bf16 %v700_v21, %v696_v19  ;;  %v835_v62 = vld [vmem:[#allocation4 + $0x8a8] sm:$0xff]  ;;  %v712_v19 = vld [vmem:[#allocation4 + $0x4d0] sm:$0xff] }
 0x119   : > { %4275 = vmatprep.subr.bf16.mxu0 %v4274_v31  ;;  %4467 = vmatprep.subr.bf16.mxu1 %v4466_v34  ;;  %v827_v31 = vld [vmem:[#allocation4 + $0x868] sm:$0xff]  ;;  %v709_v34 = vld [vmem:[#allocation4 + $0x4b8] sm:$0xff]  ;;  %v716_v21 = vld [vmem:[#allocation4 + $0x4f0] sm:$0xff] }
 0x11a   : > { %1247 = vmatmul.mubr.f32.gmra.mrb[30].mxu0 %v6358_v45  ;;  %1343 = vmatmul.mubr.f32.gmra.mrb[30].mxu1 %v6361_v46  ;;  %v4282_v55 = vpack.c.bf16 %v827_v31, %v823_v27  ;;  %v839_v31 = vld [vmem:[#allocation4 + $0x8c8] sm:$0xff] }
 0x11b   : > { %4277 = vmatpush1.bf16.msra.mxu0 %v4276_v47  ;;  %4469 = vmatpush1.bf16.msra.mxu1 %v4468_v48  ;;  %v704_v47 = vld [vmem:[#allocation4 + $0x490] sm:$0xff] }
 0x11c   : > { %1413 = vmatprep.mubr.f32.mxu0 %v6366_v58  ;;  %2184 = vmatprep.mubr.f32.mxu1 %v6190_v41  ;;  %v826_v41 = vld [vmem:[#allocation4 + $0x860] sm:$0xff]  ;;  %v708_v48 = vld [vmem:[#allocation4 + $0x4b0] sm:$0xff] }
 0x11d   : > { %4471 = vmatprep.subr.bf16.mxu1 %v4470_v59  ;;  %4279 = vmatprep.subr.bf16.mxu0 %v4278_v4  ;;  %v4284_v59 = vpack.c.bf16 %v826_v41, %v822_v35  ;;  %v830_v4 = vld [vmem:[#allocation4 + $0x880] sm:$0xff] }
 0x11e   : > { %1414 = vmatmul.mubr.f32.vlgmr.msra.gmra.mrb[0].mxu0 %v6371_v8  ;;  %2185 = vmatmul.mubr.f32.vlgmr.msra.gmra.mrb[32].mxu1 %v6195_v49  ;;  %v4478_v49 = vpack.c.bf16 %v709_v34, %v705_v22  ;;  %v4286_v22 = vpack.c.bf16 %v835_v62, %v831_v61  ;;  %v4288_v27 = vpack.c.bf16 %v834_v6, %v830_v4  ;;  %v843_v34 = vld [vmem:[#allocation4 + $0x8e8] sm:$0xff]  ;;  %v838_v35 = vld [vmem:[#allocation4 + $0x8c0] sm:$0xff] }
 0x11f   : > { %4473 = vmatpush1.bf16.msra.mxu1 %v4472_v11  ;;  %1419 = vmatprep.mubr.f32.mxu0 %v6376_v12  ;;  %v6396_v11 = vld [vmem:[%s6175_s10 + $0xd8] sm:$0xff]  ;;  %v842_v41 = vld [vmem:[#allocation4 + $0x8e0] sm:$0xff]  ;;  %v847_v62 = vld [vmem:[#allocation4 + $0x908] sm:$0xff] }
 0x120   : > { %2190 = vmatprep.mubr.f32.mxu1 %v6199_v57  ;;  %4475 = vmatprep.subr.bf16.mxu1 %v4474_v18  ;;  %v717_v57 = vld [vmem:[#allocation4 + $0x4f8] sm:$0xff]  ;;  %v4480_v18 = vpack.c.bf16 %v708_v48, %v704_v47  ;;  %v4484_v48 = vpack.c.bf16 %v716_v21, %v712_v19  ;;  %v4292_v61 = vpack.c.bf16 %v842_v41, %v838_v35  ;;  %v846_v4 = vld [vmem:[#allocation4 + $0x900] sm:$0xff] }
 0x121   : > { %4281 = vmatpush1.bf16.msra.mxu0 %v4280_v24  ;;  %v721_v24 = vld [vmem:[#allocation4 + $0x518] sm:$0xff]  ;;  %v850_v6 = vld [vmem:[#allocation4 + $0x920] sm:$0xff] }
 0x122   : > { %1420 = vmatmul.mubr.f32.gmra.mrb[2].mxu0 %v6382_v36  ;;  %2191 = vmatmul.mubr.f32.gmra.mrb[34].mxu1 %v6204_v1  ;;  %v4482_v1 = vpack.c.bf16 %v717_v57, %v713_v56  ;;  %v6406_v47 = vld [vmem:[%s6175_s10 + $0x118] sm:$0xff]  ;;  %v4290_v56 = vpack.c.bf16 %v843_v34, %v839_v31  ;;  %v851_v57 = vld [vmem:[#allocation4 + $0x928] sm:$0xff]  ;;  %v4296_v31 = vpack.c.bf16 %v850_v6, %v846_v4  ;;  %v854_v35 = vld [vmem:[#allocation4 + $0x940] sm:$0xff] }
 0x123   : > { %1425 = vmatprep.mubr.f32.mxu0 %v6386_v39  ;;  %2196 = vmatprep.mubr.f32.mxu1 %v6209_v9  ;;  %v725_v9 = vld [vmem:[#allocation4 + $0x538] sm:$0xff]  ;;  %v855_v34 = vld [vmem:[#allocation4 + $0x948] sm:$0xff]  ;;  %v858_v41 = vld [vmem:[#allocation4 + $0x960] sm:$0xff] }
 0x124   : > { %4477 = vmatpush1.bf16.msra.mxu1 %v4476_v44  ;;  %4283 = vmatprep.subr.bf16.mxu0 %v4282_v55  ;;  %v6403_v44 = vld [vmem:[%s6175_s10 + $0xd0] sm:$0xff]  ;;  %v6416_v19 = vld [vmem:[%s6175_s10 + $0x158] sm:$0xff]  ;;  %v862_v4 = vld [vmem:[#allocation4 + $0x980] sm:$0xff] }
 0x125   : > { %4479 = vmatprep.subr.bf16.mxu1 %v4478_v49  ;;  %4285 = vmatpush1.bf16.msra.mxu0 %v4284_v59  ;;  %v720_v55 = vld [vmem:[#allocation4 + $0x510] sm:$0xff]  ;;  %v729_v59 = vld [vmem:[#allocation4 + $0x558] sm:$0xff]  ;;  %v866_v6 = vld [vmem:[#allocation4 + $0x9a0] sm:$0xff] }
 0x126   : > { %1426 = vmatmul.mubr.f32.gmra.mrb[4].mxu0 %v6393_v7  ;;  %2197 = vmatmul.mubr.f32.gmra.mrb[36].mxu1 %v6214_v17  ;;  %v724_v49 = vld [vmem:[#allocation4 + $0x530] sm:$0xff]  ;;  %v4486_v17 = vpack.c.bf16 %v725_v9, %v721_v24  ;;  %v4294_v24 = vpack.c.bf16 %v851_v57, %v847_v62  ;;  %v859_v9 = vld [vmem:[#allocation4 + $0x968] sm:$0xff]  ;;  %v4300_v62 = vpack.c.bf16 %v858_v41, %v854_v35  ;;  %v870_v35 = vld [vmem:[#allocation4 + $0x9c0] sm:$0xff] }
 0x127   : > { %1431 = vmatprep.mubr.f32.mxu0 %v6396_v11  ;;  %2202 = vmatprep.mubr.f32.mxu1 %v6219_v25  ;;  %v733_v25 = vld [vmem:[#allocation4 + $0x578] sm:$0xff]  ;;  %v4488_v21 = vpack.c.bf16 %v724_v49, %v720_v55  ;;  %v863_v57 = vld [vmem:[#allocation4 + $0x988] sm:$0xff]  ;;  %v874_v41 = vld [vmem:[#allocation4 + $0x9e0] sm:$0xff] }
 0x128   : > { %4481 = vmatpush1.bf16.msra.mxu1 %v4480_v18  ;;  %4287 = vmatprep.subr.bf16.mxu0 %v4286_v22  ;;  %v6413_v18 = vld [vmem:[%s6175_s10 + $0x110] sm:$0xff]  ;;  %v6426_v55 = vld [vmem:[%s6175_s10 + $0x198] sm:$0xff] }
 0x129   : > { %4483 = vmatprep.subr.bf16.mxu1 %v4482_v1  ;;  %4289 = vmatpush1.bf16.msra.mxu0 %v4288_v27  ;;  %v728_v22 = vld [vmem:[#allocation4 + $0x550] sm:$0xff]  ;;  %v737_v27 = vld [vmem:[#allocation4 + $0x598] sm:$0xff] }
 0x12a   : > { %1432 = vmatmul.mubr.f32.gmra.mrb[6].mxu0 %v6403_v44  ;;  %2203 = vmatmul.mubr.f32.gmra.mrb[38].mxu1 %v6224_v33  ;;  %v732_v1 = vld [vmem:[#allocation4 + $0x570] sm:$0xff]  ;;  %v4490_v33 = vpack.c.bf16 %v733_v25, %v729_v59  ;;  %v4298_v59 = vpack.c.bf16 %v859_v9, %v855_v34  ;;  %v867_v25 = vld [vmem:[#allocation4 + $0x9a8] sm:$0xff]  ;;  %v4304_v34 = vpack.c.bf16 %v866_v6, %v862_v4  ;;  %v878_v4 = vld [vmem:[#allocation4 + $0xa00] sm:$0xff] }
 0x12b   : > { %1437 = vmatprep.mubr.f32.mxu0 %v6406_v47  ;;  %2208 = vmatprep.mubr.f32.mxu1 %v6229_v42  ;;  %v741_v42 = vld [vmem:[#allocation4 + $0x5b8] sm:$0xff]  ;;  %v4492_v49 = vpack.c.bf16 %v732_v1, %v728_v22  ;;  %v871_v9 = vld [vmem:[#allocation4 + $0x9c8] sm:$0xff]  ;;  %v882_v6 = vld [vmem:[#allocation4 + $0xa20] sm:$0xff] }
 0x12c   : > { %4485 = vmatpush1.bf16.msra.mxu1 %v4484_v48  ;;  %4291 = vmatprep.subr.bf16.mxu0 %v4290_v56  ;;  %v6423_v48 = vld [vmem:[%s6175_s10 + $0x150] sm:$0xff]  ;;  %v6436_v22 = vld [vmem:[%s6175_s10 + $0x1d8] sm:$0xff] }
 0x12d   : > { %4487 = vmatprep.subr.bf16.mxu1 %v4486_v17  ;;  %4293 = vmatpush1.bf16.msra.mxu0 %v4292_v61  ;;  %v736_v56 = vld [vmem:[#allocation4 + $0x590] sm:$0xff]  ;;  %v745_v61 = vld [vmem:[#allocation4 + $0x5d8] sm:$0xff] }
 0x12e   : > { %1438 = vmatmul.mubr.f32.gmra.mrb[8].mxu0 %v6413_v18  ;;  %2209 = vmatmul.mubr.f32.gmra.mrb[40].mxu1 %v6234_v51  ;;  %v740_v17 = vld [vmem:[#allocation4 + $0x5b0] sm:$0xff]  ;;  %v4494_v51 = vpack.c.bf16 %v741_v42, %v737_v27  ;;  %v4302_v27 = vpack.c.bf16 %v867_v25, %v863_v57  ;;  %v875_v42 = vld [vmem:[#allocation4 + $0x9e8] sm:$0xff]  ;;  %v4308_v57 = vpack.c.bf16 %v874_v41, %v870_v35  ;;  %v886_v35 = vld [vmem:[#allocation4 + $0xa40] sm:$0xff] }
 0x12f   : > { %1443 = vmatprep.mubr.f32.mxu0 %v6416_v19  ;;  %2214 = vmatprep.mubr.f32.mxu1 %v6239_v60  ;;  %v749_v60 = vld [vmem:[#allocation4 + $0x5f8] sm:$0xff]  ;;  %v4496_v1 = vpack.c.bf16 %v740_v17, %v736_v56  ;;  %v879_v25 = vld [vmem:[#allocation4 + $0xa08] sm:$0xff]  ;;  %v890_v41 = vld [vmem:[#allocation4 + $0xa60] sm:$0xff] }
 0x130   : > { %4489 = vmatpush1.bf16.msra.mxu1 %v4488_v21  ;;  %4295 = vmatprep.subr.bf16.mxu0 %v4294_v24  ;;  %v6433_v21 = vld [vmem:[%s6175_s10 + $0x190] sm:$0xff]  ;;  %v6446_v56 = vld [vmem:[%s6175_s10 + $0x218] sm:$0xff] }
 0x131   : > { %4491 = vmatprep.subr.bf16.mxu1 %v4490_v33  ;;  %4297 = vmatpush1.bf16.msra.mxu0 %v4296_v31  ;;  %v744_v24 = vld [vmem:[#allocation4 + $0x5d0] sm:$0xff]  ;;  %v753_v31 = vld [vmem:[#allocation4 + $0x618] sm:$0xff] }
 0x132   : > { %1444 = vmatmul.mubr.f32.gmra.mrb[10].mxu0 %v6423_v48  ;;  %2215 = vmatmul.mubr.f32.gmra.mrb[42].mxu1 %v6244_v5  ;;  %v748_v33 = vld [vmem:[#allocation4 + $0x5f0] sm:$0xff]  ;;  %v4498_v5 = vpack.c.bf16 %v749_v60, %v745_v61  ;;  %v4306_v61 = vpack.c.bf16 %v875_v42, %v871_v9  ;;  %v883_v60 = vld [vmem:[#allocation4 + $0xa28] sm:$0xff]  ;;  %v4312_v9 = vpack.c.bf16 %v882_v6, %v878_v4  ;;  %v894_v4 = vld [vmem:[#allocation4 + $0xa80] sm:$0xff] }
 0x133   : > { %1449 = vmatprep.mubr.f32.mxu0 %v6426_v55  ;;  %2220 = vmatprep.mubr.f32.mxu1 %v6249_v14  ;;  %v757_v14 = vld [vmem:[#allocation4 + $0x638] sm:$0xff]  ;;  %v4500_v17 = vpack.c.bf16 %v748_v33, %v744_v24  ;;  %v887_v42 = vld [vmem:[#allocation4 + $0xa48] sm:$0xff]  ;;  %v898_v6 = vld [vmem:[#allocation4 + $0xaa0] sm:$0xff] }
 0x134   : > { %4493 = vmatpush1.bf16.msra.mxu1 %v4492_v49  ;;  %4299 = vmatprep.subr.bf16.mxu0 %v4298_v59  ;;  %v6443_v49 = vld [vmem:[%s6175_s10 + $0x1d0] sm:$0xff]  ;;  %v6456_v24 = vld [vmem:[%s6175_s10 + $0x258] sm:$0xff] }
 0x135   : > { %4495 = vmatprep.subr.bf16.mxu1 %v4494_v51  ;;  %4301 = vmatpush1.bf16.msra.mxu0 %v4300_v62  ;;  %v752_v59 = vld [vmem:[#allocation4 + $0x610] sm:$0xff]  ;;  %v761_v62 = vld [vmem:[#allocation4 + $0x658] sm:$0xff] }
 0x136   : > { %1450 = vmatmul.mubr.f32.gmra.mrb[12].mxu0 %v6433_v21  ;;  %2221 = vmatmul.mubr.f32.gmra.mrb[44].mxu1 %v6254_v23  ;;  %v756_v51 = vld [vmem:[#allocation4 + $0x630] sm:$0xff]  ;;  %v4502_v23 = vpack.c.bf16 %v757_v14, %v753_v31  ;;  %v4310_v31 = vpack.c.bf16 %v883_v60, %v879_v25  ;;  %v891_v14 = vld [vmem:[#allocation4 + $0xa68] sm:$0xff]  ;;  %v4316_v25 = vpack.c.bf16 %v890_v41, %v886_v35  ;;  %v902_v35 = vld [vmem:[#allocation4 + $0xac0] sm:$0xff] }
 0x137   : > { %1455 = vmatprep.mubr.f32.mxu0 %v6436_v22  ;;  %2226 = vmatprep.mubr.f32.mxu1 %v6259_v32  ;;  %v765_v32 = vld [vmem:[#allocation4 + $0x678] sm:$0xff]  ;;  %v4504_v33 = vpack.c.bf16 %v756_v51, %v752_v59  ;;  %v895_v60 = vld [vmem:[#allocation4 + $0xa88] sm:$0xff]  ;;  %v906_v41 = vld [vmem:[#allocation4 + $0xae0] sm:$0xff] }
 0x138   : > { %4497 = vmatpush1.bf16.msra.mxu1 %v4496_v1  ;;  %4303 = vmatprep.subr.bf16.mxu0 %v4302_v27  ;;  %v6453_v1 = vld [vmem:[%s6175_s10 + $0x210] sm:$0xff]  ;;  %v6466_v59 = vld [vmem:[%s6175_s10 + $0x298] sm:$0xff] }
 0x139   : > { %4499 = vmatprep.subr.bf16.mxu1 %v4498_v5  ;;  %4305 = vmatpush1.bf16.msra.mxu0 %v4304_v34  ;;  %v760_v27 = vld [vmem:[#allocation4 + $0x650] sm:$0xff]  ;;  %v769_v34 = vld [vmem:[#allocation4 + $0x698] sm:$0xff] }
 0x13a   : > { %1456 = vmatmul.mubr.f32.gmra.mrb[14].mxu0 %v6443_v49  ;;  %2227 = vmatmul.mubr.f32.gmra.mrb[46].mxu1 %v6264_v43  ;;  %v764_v5 = vld [vmem:[#allocation4 + $0x670] sm:$0xff]  ;;  %v4506_v43 = vpack.c.bf16 %v765_v32, %v761_v62  ;;  %v4314_v62 = vpack.c.bf16 %v891_v14, %v887_v42  ;;  %v899_v32 = vld [vmem:[#allocation4 + $0xaa8] sm:$0xff]  ;;  %v4320_v42 = vpack.c.bf16 %v898_v6, %v894_v4  ;;  %v910_v4 = vld [vmem:[#allocation4 + $0xb00] sm:$0xff] }
 0x13b   : > { %1461 = vmatprep.mubr.f32.mxu0 %v6446_v56  ;;  %2232 = vmatprep.mubr.f32.mxu1 %v6269_v53  ;;  %v773_v53 = vld [vmem:[#allocation4 + $0x6b8] sm:$0xff]  ;;  %v4508_v51 = vpack.c.bf16 %v764_v5, %v760_v27  ;;  %v903_v14 = vld [vmem:[#allocation4 + $0xac8] sm:$0xff]  ;;  %v914_v6 = vld [vmem:[#allocation4 + $0xb20] sm:$0xff] }
 0x13c   : > { %4501 = vmatpush1.bf16.msra.mxu1 %v4500_v17  ;;  %4307 = vmatprep.subr.bf16.mxu0 %v4306_v61  ;;  %v6463_v17 = vld [vmem:[%s6175_s10 + $0x250] sm:$0xff]  ;;  %v6476_v27 = vld [vmem:[%s6175_s10 + $0x2d8] sm:$0xff] }
 0x13d   : > { %4503 = vmatprep.subr.bf16.mxu1 %v4502_v23  ;;  %4309 = vmatpush1.bf16.msra.mxu0 %v4308_v57  ;;  %v768_v61 = vld [vmem:[#allocation4 + $0x690] sm:$0xff]  ;;  %v777_v57 = vld [vmem:[#allocation4 + $0x6d8] sm:$0xff] }
 0x13e   : > { %1462 = vmatmul.mubr.f32.gmra.mrb[16].mxu0 %v6453_v1  ;;  %2233 = vmatmul.mubr.f32.gmra.mrb[48].mxu1 %v6274_v63  ;;  %v772_v23 = vld [vmem:[#allocation4 + $0x6b0] sm:$0xff]  ;;  %v4510_v63 = vpack.c.bf16 %v773_v53, %v769_v34  ;;  %v4318_v34 = vpack.c.bf16 %v899_v32, %v895_v60  ;;  %v907_v53 = vld [vmem:[#allocation4 + $0xae8] sm:$0xff]  ;;  %v4324_v60 = vpack.c.bf16 %v906_v41, %v902_v35  ;;  %v918_v35 = vld [vmem:[#allocation4 + $0xb40] sm:$0xff] }
 0x13f   : > { %1467 = vmatprep.mubr.f32.mxu0 %v6456_v24  ;;  %2238 = vmatprep.mubr.f32.mxu1 %v6279_v10  ;;  %v781_v10 = vld [vmem:[#allocation4 + $0x6f8] sm:$0xff]  ;;  %v4512_v5 = vpack.c.bf16 %v772_v23, %v768_v61  ;;  %v911_v32 = vld [vmem:[#allocation4 + $0xb08] sm:$0xff]  ;;  %v922_v41 = vld [vmem:[#allocation4 + $0xb60] sm:$0xff] }
 0x140   : > { %4505 = vmatpush1.bf16.msra.mxu1 %v4504_v33  ;;  %4311 = vmatprep.subr.bf16.mxu0 %v4310_v31  ;;  %v6473_v33 = vld [vmem:[%s6175_s10 + $0x290] sm:$0xff]  ;;  %v6486_v61 = vld [vmem:[%s6175_s10 + $0x318] sm:$0xff] }
 0x141   : > { %4507 = vmatprep.subr.bf16.mxu1 %v4506_v43  ;;  %4313 = vmatpush1.bf16.msra.mxu0 %v4312_v9  ;;  %v776_v31 = vld [vmem:[#allocation4 + $0x6d0] sm:$0xff]  ;;  %v785_v9 = vld [vmem:[#allocation4 + $0x718] sm:$0xff] }
 0x142   : > { %1468 = vmatmul.mubr.f32.gmra.mrb[18].mxu0 %v6463_v17  ;;  %2239 = vmatmul.mubr.f32.gmra.mrb[50].mxu1 %v6284_v20  ;;  %v780_v43 = vld [vmem:[#allocation4 + $0x6f0] sm:$0xff]  ;;  %v4514_v20 = vpack.c.bf16 %v781_v10, %v777_v57  ;;  %v4322_v57 = vpack.c.bf16 %v907_v53, %v903_v14  ;;  %v915_v10 = vld [vmem:[#allocation4 + $0xb28] sm:$0xff]  ;;  %v4328_v14 = vpack.c.bf16 %v914_v6, %v910_v4  ;;  %v926_v4 = vld [vmem:[#allocation4 + $0xb80] sm:$0xff] }
 0x143   : > { %1473 = vmatprep.mubr.f32.mxu0 %v6466_v59  ;;  %2244 = vmatprep.mubr.f32.mxu1 %v6289_v30  ;;  %v789_v30 = vld [vmem:[#allocation4 + $0x738] sm:$0xff]  ;;  %v4516_v23 = vpack.c.bf16 %v780_v43, %v776_v31  ;;  %v919_v53 = vld [vmem:[#allocation4 + $0xb48] sm:$0xff]  ;;  %v930_v6 = vld [vmem:[#allocation4 + $0xba0] sm:$0xff] }
 0x144   : > { %4509 = vmatpush1.bf16.msra.mxu1 %v4508_v51  ;;  %4315 = vmatprep.subr.bf16.mxu0 %v4314_v62  ;;  %v6483_v51 = vld [vmem:[%s6175_s10 + $0x2d0] sm:$0xff]  ;;  %v6496_v31 = vld [vmem:[%s6175_s10 + $0x358] sm:$0xff] }
 0x145   : > { %4511 = vmatprep.subr.bf16.mxu1 %v4510_v63  ;;  %4317 = vmatpush1.bf16.msra.mxu0 %v4316_v25  ;;  %v784_v62 = vld [vmem:[#allocation4 + $0x710] sm:$0xff]  ;;  %v793_v25 = vld [vmem:[#allocation4 + $0x758] sm:$0xff] }
 0x146   : > { %1474 = vmatmul.mubr.f32.gmra.mrb[20].mxu0 %v6473_v33  ;;  %2245 = vmatmul.mubr.f32.gmra.mrb[52].mxu1 %v6294_v40  ;;  %v788_v63 = vld [vmem:[#allocation4 + $0x730] sm:$0xff]  ;;  %v4518_v40 = vpack.c.bf16 %v789_v30, %v785_v9  ;;  %v4326_v9 = vpack.c.bf16 %v915_v10, %v911_v32  ;;  %v923_v30 = vld [vmem:[#allocation4 + $0xb68] sm:$0xff] }
 0x147   : > { %1479 = vmatprep.mubr.f32.mxu0 %v6476_v27  ;;  %2250 = vmatprep.mubr.f32.mxu1 %v6299_v54  ;;  %v797_v54 = vld [vmem:[#allocation4 + $0x778] sm:$0xff]  ;;  %v4520_v43 = vpack.c.bf16 %v788_v63, %v784_v62  ;;  %v927_v32 = vld [vmem:[#allocation4 + $0xb88] sm:$0xff] }
 0x148   : > { %4513 = vmatpush1.bf16.msra.mxu1 %v4512_v5  ;;  %4319 = vmatprep.subr.bf16.mxu0 %v4318_v34  ;;  %v6493_v5 = vld [vmem:[%s6175_s10 + $0x310] sm:$0xff]  ;;  %v6506_v62 = vld [vmem:[%s6175_s10 + $0x398] sm:$0xff]  ;;  %v931_v10 = vld [vmem:[#allocation4 + $0xba8] sm:$0xff] }
 0x149   : > { %4515 = vmatprep.subr.bf16.mxu1 %v4514_v20  ;;  %4321 = vmatpush1.bf16.msra.mxu0 %v4320_v42  ;;  %v792_v34 = vld [vmem:[#allocation4 + $0x750] sm:$0xff]  ;;  %v801_v42 = vld [vmem:[#allocation4 + $0x798] sm:$0xff] }
 0x14a   : > { %1480 = vmatmul.mubr.f32.gmra.mrb[22].mxu0 %v6483_v51  ;;  %2251 = vmatmul.mubr.f32.gmra.mrb[54].mxu1 %v6304_v2  ;;  %v796_v20 = vld [vmem:[#allocation4 + $0x770] sm:$0xff]  ;;  %v4522_v2 = vpack.c.bf16 %v797_v54, %v793_v25  ;;  %v4330_v25 = vpack.c.bf16 %v923_v30, %v919_v53  ;;  %v809_v54 = vld [vmem:[#allocation4 + $0x7d8] sm:$0xff]  ;;  %v935_v53 = vld [vmem:[#allocation4 + $0xbc8] sm:$0xff] }
 0x14b   : > { %1485 = vmatprep.mubr.f32.mxu0 %v6486_v61  ;;  %2256 = vmatprep.mubr.f32.mxu1 %v6309_v13  ;;  %v805_v13 = vld [vmem:[#allocation4 + $0x7b8] sm:$0xff]  ;;  %v4524_v63 = vpack.c.bf16 %v796_v20, %v792_v34  ;;  %v939_v30 = vld [vmem:[#allocation4 + $0xbe8] sm:$0xff] }
 0x14c   : > { %4517 = vmatpush1.bf16.msra.mxu1 %v4516_v23  ;;  %4323 = vmatprep.subr.bf16.mxu0 %v4322_v57  ;;  %v6503_v23 = vld [vmem:[%s6175_s10 + $0x350] sm:$0xff]  ;;  %v6516_v34 = vld [vmem:[%s6175_s10 + $0x3d8] sm:$0xff] }
 0x14d   : > { %4519 = vmatprep.subr.bf16.mxu1 %v4518_v40  ;;  %4325 = vmatpush1.bf16.msra.mxu0 %v4324_v60  ;;  %v800_v57 = vld [vmem:[#allocation4 + $0x790] sm:$0xff]  ;;  %v4332_v60 = vpack.c.bf16 %v922_v41, %v918_v35  ;;  %v817_v35 = vld [vmem:[#allocation4 + $0x818] sm:$0xff] }
 0x14e   : > { %1486 = vmatmul.mubr.f32.gmra.mrb[24].mxu0 %v6493_v5  ;;  %2257 = vmatmul.mubr.f32.gmra.mrb[56].mxu1 %v6314_v26  ;;  %v804_v40 = vld [vmem:[#allocation4 + $0x7b0] sm:$0xff]  ;;  %v4526_v26 = vpack.c.bf16 %v805_v13, %v801_v42  ;;  %v934_v13 = vld [vmem:[#allocation4 + $0xbc0] sm:$0xff]  ;;  %v821_v41 = vld [vmem:[#allocation4 + $0x838] sm:$0xff] }
 0x14f   : > { %1491 = vmatprep.mubr.f32.mxu0 %v6496_v31  ;;  %2262 = vmatprep.mubr.f32.mxu1 %v6319_v37  ;;  %v813_v37 = vld [vmem:[#allocation4 + $0x7f8] sm:$0xff]  ;;  %v4528_v20 = vpack.c.bf16 %v804_v40, %v800_v57  ;;  %v812_v42 = vld [vmem:[#allocation4 + $0x7f0] sm:$0xff] }
 0x150   : > { %4521 = vmatpush1.bf16.msra.mxu1 %v4520_v43  ;;  %4327 = vmatprep.subr.bf16.mxu0 %v4326_v9  ;;  %v6513_v43 = vld [vmem:[%s6175_s10 + $0x390] sm:$0xff]  ;;  %v4334_v9 = vpack.c.bf16 %v931_v10, %v927_v32  ;;  %v6526_v57 = vld [vmem:[%s6175_s10 + $0x418] sm:$0xff]  ;;  %v943_v32 = vld [vmem:[#allocation4 + $0xc08] sm:$0xff] }
 0x151   : > { %4523 = vmatprep.subr.bf16.mxu1 %v4522_v2  ;;  %4329 = vmatpush1.bf16.msra.mxu0 %v4328_v14  ;;  %v808_v2 = vld [vmem:[#allocation4 + $0x7d0] sm:$0xff]  ;;  %v4336_v14 = vpack.c.bf16 %v930_v6, %v926_v4  ;;  %v947_v10 = vld [vmem:[#allocation4 + $0xc28] sm:$0xff] }
 0x152   : > { %1492 = vmatmul.mubr.f32.gmra.mrb[26].mxu0 %v6503_v23  ;;  %2263 = vmatmul.mubr.f32.gmra.mrb[58].mxu1 %v6326_v50  ;;  %v4530_v50 = vpack.c.bf16 %v813_v37, %v809_v54  ;;  %v4532_v40 = vpack.c.bf16 %v812_v42, %v808_v2  ;;  %v6536_v54 = vld [vmem:[%s6175_s10 + $0x458] sm:$0xff]  ;;  %v4342_v37 = vpack.c.bf16 %v947_v10, %v943_v32  ;;  %v5727_v4 = vld [vmem:[%s6175_s10 + $0x448] sm:$0xff]  ;;  %v6543_v6 = vld [vmem:[%s6175_s10 + $0x450] sm:$0xff] }
 0x153   : > { %1497 = vmatprep.mubr.f32.mxu0 %v6506_v62  ;;  %2268 = vmatprep.mubr.f32.mxu1 %v6334_v0  ;;  %v938_v0 = vld [vmem:[#allocation4 + $0xbe0] sm:$0xff]  ;;  %v5729_v2 = vld [vmem:[%s6175_s10 + $0x488] sm:$0xff]  ;;  %v6553_v42 = vld [vmem:[%s6175_s10 + $0x490] sm:$0xff] }
 0x154   : > { %4525 = vmatpush1.bf16.msra.mxu1 %v4524_v63  ;;  %4331 = vmatprep.subr.bf16.mxu0 %v4330_v25  ;;  %v6523_v63 = vld [vmem:[%s6175_s10 + $0x3d0] sm:$0xff]  ;;  %v4338_v25 = vpack.c.bf16 %v939_v30, %v935_v53  ;;  %v5731_v53 = vld [vmem:[%s6175_s10 + $0x4c8] sm:$0xff]  ;;  %v5736_v32 = vld [vmem:[%s6175_s10 + $0x540] sm:$0xff] }
 0x155   : > { %4527 = vmatprep.subr.bf16.mxu1 %v4526_v26  ;;  %4333 = vmatpush1.bf16.msra.mxu0 %v4332_v60  ;;  %v4534_v26 = vpack.c.bf16 %v821_v41, %v817_v35  ;;  %v6533_v60 = vld [vmem:[%s6175_s10 + $0x410] sm:$0xff]  ;;  %v5733_v35 = vld [vmem:[%s6175_s10 + $0x508] sm:$0xff] }
 0x156   : > { %1498 = vmatmul.mubr.f32.gmra.mrb[28].mxu0 %v6513_v43  ;;  %2269 = vmatmul.mubr.f32.gmra.mrb[60].mxu1 %v6342_v15  ;;  %v4340_v15 = vpack.c.bf16 %v938_v0, %v934_v13  ;;  %v6563_v30 = vld [vmem:[%s6175_s10 + $0x4d0] sm:$0xff]  ;;  %v6566_v13 = vld [vmem:[%s6175_s10 + $0x518] sm:$0xff]  ;;  %v5732_v0 = vld [vmem:[%s6175_s10 + $0x4c0] sm:$0xff] }
 0x157   : > { %1503 = vmatprep.mubr.f32.mxu0 %v6516_v34  ;;  %2274 = vmatprep.mubr.f32.mxu1 %v6350_v28  ;;  %v5725_v28 = vld [vmem:[%s6175_s10 + $0x408] sm:$0xff]  ;;  %v6573_v41 = vld [vmem:[%s6175_s10 + $0x510] sm:$0xff] }
 0x158   : > { %4529 = vmatpush1.bf16.msra.mxu1 %v4528_v20  ;;  %4335 = vmatprep.subr.bf16.mxu0 %v4334_v9  ;;  %v6546_v20 = vld [vmem:[%s6175_s10 + $0x498] sm:$0xff]  ;;  %v5728_v9 = vld [vmem:[%s6175_s10 + $0x440] sm:$0xff]  ;;  %v5737_v10 = vld [vmem:[%s6175_s10 + $0x588] sm:$0xff] }
 0x159   : > { %4531 = vmatprep.subr.bf16.mxu1 %v4530_v50  ;;  %4337 = vmatpush1.bf16.msra.mxu0 %v4336_v14  ;;  %v6556_v50 = vld [vmem:[%s6175_s10 + $0x4d8] sm:$0xff]  ;;  %v5730_v14 = vld [vmem:[%s6175_s10 + $0x480] sm:$0xff] }
 0x15a   : > { %1504 = vmatmul.mubr.f32.gmra.mrb[30].mxu0 %v6523_v63  ;;  %2275 = vmatmul.mubr.f32.gmra.mrb[62].mxu1 %v6358_v45  ;;  %v5726_v45 = vld [vmem:[%s6175_s10 + $0x400] sm:$0xff] }
 0x15b   : > { %1509 = vmatprep.mubr.f32.mxu0 %v6526_v57  ;;  %2280 = vmatprep.mubr.f32.mxu1 %v5725_v28  ;;  %v6586_v28 = vld [vmem:[%s6175_s10 + $0x598] sm:$0xff] }
 0x15c   : > { %4533 = vmatpush1.bf16.msra.mxu1 %v4532_v40  ;;  %4339 = vmatprep.subr.bf16.mxu0 %v4338_v25  ;;  %v6576_v40 = vld [vmem:[%s6175_s10 + $0x558] sm:$0xff]  ;;  %v5734_v25 = vld [vmem:[%s6175_s10 + $0x500] sm:$0xff]  ;;  %8171 = vst [vmem:[#allocation14_spill] sm:$0xff] %v6586_v28 }
 0x15d   : > { %4341 = vmatpush1.bf16.msra.mxu0 %v4340_v15  ;;  %4535 = vmatprep.subr.bf16.mxu1 %v4534_v26  ;;  %v5735_v15 = vld [vmem:[%s6175_s10 + $0x548] sm:$0xff]  ;;  %v6583_v26 = vld [vmem:[%s6175_s10 + $0x550] sm:$0xff] }
 0x15e   : > { %1510 = vmatmul.mubr.f32.gmra.mrb[32].mxu0 %v6533_v60  ;;  %2281 = vmatmul.mubr.f32.gmra.mrb[64].mxu1 %v5726_v45  ;;  %8170 = vst [vmem:[#allocation13_spill] sm:$0xff] %v6583_v26  ;;  %v6596_v45 = vld [vmem:[%s6175_s10 + $0x5d8] sm:$0xff] }
 0x15f   : > { %1515 = vmatprep.mubr.f32.mxu0 %v6536_v54  ;;  %2286 = vmatprep.mubr.f32.mxu1 %v5727_v4  ;;  %8173 = vst [vmem:[#allocation16_spill] sm:$0xff] %v6596_v45  ;;  %v5738_v4 = vld [vmem:[%s6175_s10 + $0x580] sm:$0xff] }
 0x160   : > { %4343 = vmatprep.subr.bf16.mxu0 %v4342_v37  ;;  %v6593_v37 = vld [vmem:[%s6175_s10 + $0x590] sm:$0xff] }
 0x161   : > { %8172 = vst [vmem:[#allocation15_spill] sm:$0xff] %v6593_v37 }
 0x162   : > { %1516 = vmatmul.mubr.f32.gmra.mrb[34].mxu0 %v6543_v6  ;;  %2287 = vmatmul.mubr.f32.gmra.mrb[66].mxu1 %v5728_v9  ;;  %v5739_v9 = vld [vmem:[%s6175_s10 + $0x5c8] sm:$0xff] }
 0x163   : > { %1521 = vmatprep.mubr.f32.mxu0 %v6546_v20  ;;  %2292 = vmatprep.mubr.f32.mxu1 %v5729_v2  ;;  %v6603_v2 = vld [vmem:[%s6175_s10 + $0x5d0] sm:$0xff] }
 0x164   : > { %8174 = vst [vmem:[#allocation17_spill] sm:$0xff] %v6603_v2 }
 0x166   : > { %1522 = vmatmul.mubr.f32.gmra.mrb[36].mxu0 %v6553_v42  ;;  %2293 = vmatmul.mubr.f32.gmra.mrb[68].mxu1 %v5730_v14  ;;  %v6606_v14 = vld [vmem:[%s6175_s10 + $0x618] sm:$0xff] }
 0x167   : > { %1527 = vmatprep.mubr.f32.mxu0 %v6556_v50  ;;  %2298 = vmatprep.mubr.f32.mxu1 %v5731_v53  ;;  %8175 = vst [vmem:[#allocation18_spill] sm:$0xff] %v6606_v14  ;;  %v5740_v53 = vld [vmem:[%s6175_s10 + $0x5c0] sm:$0xff] }
 0x16a   : > { %1528 = vmatmul.mubr.f32.gmra.mrb[38].mxu0 %v6563_v30  ;;  %2299 = vmatmul.mubr.f32.gmra.mrb[70].mxu1 %v5732_v0  ;;  %v5741_v0 = vld [vmem:[%s6175_s10 + $0x608] sm:$0xff] }
 0x16b   : > { %1533 = vmatprep.mubr.f32.mxu0 %v6566_v13  ;;  %2304 = vmatprep.mubr.f32.mxu1 %v5733_v35  ;;  %v6613_v35 = vld [vmem:[%s6175_s10 + $0x610] sm:$0xff] }
 0x16c   : > { %8176 = vst [vmem:[#allocation19_spill] sm:$0xff] %v6613_v35 }
 0x16e   : > { %1534 = vmatmul.mubr.f32.gmra.mrb[40].mxu0 %v6573_v41  ;;  %2305 = vmatmul.mubr.f32.gmra.mrb[72].mxu1 %v5734_v25  ;;  %v6616_v25 = vld [vmem:[%s6175_s10 + $0x658] sm:$0xff] }
 0x16f   : > { %1539 = vmatprep.mubr.f32.mxu0 %v6576_v40  ;;  %2310 = vmatprep.mubr.f32.mxu1 %v5735_v15  ;;  %8177 = vst [vmem:[#allocation20_spill] sm:$0xff] %v6616_v25  ;;  %v5742_v15 = vld [vmem:[%s6175_s10 + $0x600] sm:$0xff] }
 0x172   : > { %1540 = vmatmul.mubr.f32.gmra.mrb[42].mxu0 %v6583_v26  ;;  %2311 = vmatmul.mubr.f32.gmra.mrb[74].mxu1 %v5736_v32  ;;  %v5743_v32 = vld [vmem:[%s6175_s10 + $0x648] sm:$0xff]  ;;  %v962_v26 = vld [vmem:[#allocation4 + $0xca0] sm:$0xff] }
 0x173   : > { %1545 = vmatprep.mubr.f32.mxu0 %v6586_v28  ;;  %2316 = vmatprep.mubr.f32.mxu1 %v5737_v10  ;;  %v6623_v10 = vld [vmem:[%s6175_s10 + $0x650] sm:$0xff]  ;;  %v963_v28 = vld [vmem:[#allocation4 + $0xca8] sm:$0xff] }
 0x174   : > { %8178 = vst [vmem:[#allocation21_spill] sm:$0xff] %v6623_v10 }
 0x176   : > { %1546 = vmatmul.mubr.f32.gmra.mrb[44].mxu0 %v6593_v37  ;;  %2317 = vmatmul.mubr.f32.gmra.mrb[76].mxu1 %v5738_v4  ;;  %v6626_v4 = vld [vmem:[%s6175_s10 + $0x698] sm:$0xff] }
 0x177   : > { %1551 = vmatprep.mubr.f32.mxu0 %v6596_v45  ;;  %2322 = vmatprep.mubr.f32.mxu1 %v5739_v9  ;;  %8179 = vst [vmem:[#allocation22_spill] sm:$0xff] %v6626_v4  ;;  %v5744_v9 = vld [vmem:[%s6175_s10 + $0x640] sm:$0xff] }
 0x178   : > { %v954_v45 = vld [vmem:[#allocation4 + $0xc60] sm:$0xff] }
 0x17a   : > { %1552 = vmatmul.mubr.f32.gmra.mrb[46].mxu0 %v6603_v2  ;;  %2323 = vmatmul.mubr.f32.gmra.mrb[78].mxu1 %v5740_v53  ;;  %v5745_v53 = vld [vmem:[%s6175_s10 + $0x688] sm:$0xff] }
 0x17b   : > { %1557 = vmatprep.mubr.f32.mxu0 %v6606_v14  ;;  %2328 = vmatprep.mubr.f32.mxu1 %v5741_v0  ;;  %v6633_v0 = vld [vmem:[%s6175_s10 + $0x690] sm:$0xff]  ;;  %v833_v14 = vld [vmem:[#allocation4 + $0x898] sm:$0xff]  ;;  %v951_v2 = vld [vmem:[#allocation4 + $0xc48] sm:$0xff] }
 0x17c   : > { %8180 = vst [vmem:[#allocation23_spill] sm:$0xff] %v6633_v0 }
 0x17e   : > { %1558 = vmatmul.mubr.f32.gmra.mrb[48].mxu0 %v6613_v35  ;;  %2329 = vmatmul.mubr.f32.gmra.mrb[80].mxu1 %v5742_v15  ;;  %v6636_v15 = vld [vmem:[%s6175_s10 + $0x6d8] sm:$0xff]  ;;  %v828_v35 = vld [vmem:[#allocation4 + $0x870] sm:$0xff] }
 0x17f   : > { %1563 = vmatprep.mubr.f32.mxu0 %v6616_v25  ;;  %2334 = vmatprep.mubr.f32.mxu1 %v5743_v32  ;;  %8181 = vst [vmem:[#allocation24_spill] sm:$0xff] %v6636_v15  ;;  %v5746_v32 = vld [vmem:[%s6175_s10 + $0x680] sm:$0xff]  ;;  %v824_v25 = vld [vmem:[#allocation4 + $0x850] sm:$0xff] }
 0x182   : > { %1564 = vmatmul.mubr.f32.gmra.mrb[50].mxu0 %v6623_v10  ;;  %2335 = vmatmul.mubr.f32.gmra.mrb[82].mxu1 %v5744_v9  ;;  %v5747_v10 = vld [vmem:[%s6175_s10 + $0x6c8] sm:$0xff]  ;;  %v6643_v9 = vld [vmem:[%s6175_s10 + $0x6d0] sm:$0xff] }
 0x183   : > { %1569 = vmatprep.mubr.f32.mxu0 %v6626_v4  ;;  %2340 = vmatprep.mubr.f32.mxu1 %v5745_v53  ;;  %8182 = vst [vmem:[#allocation25_spill] sm:$0xff] %v6643_v9  ;;  %v6646_v53 = vld [vmem:[%s6175_s10 + $0x718] sm:$0xff]  ;;  %v5748_v4 = vld [vmem:[%s6175_s10 + $0x6c0] sm:$0xff] }
 0x184   : > { %8183 = vst [vmem:[#allocation26_spill] sm:$0xff] %v6646_v53 }
 0x186   : > { %1570 = vmatmul.mubr.f32.gmra.mrb[52].mxu0 %v6633_v0  ;;  %2341 = vmatmul.mubr.f32.gmra.mrb[84].mxu1 %v5746_v32  ;;  %v5749_v0 = vld [vmem:[%s6175_s10 + $0x708] sm:$0xff]  ;;  %v6653_v32 = vld [vmem:[%s6175_s10 + $0x710] sm:$0xff] }
 0x187   : > { %1575 = vmatprep.mubr.f32.mxu0 %v6636_v15  ;;  %2346 = vmatprep.mubr.f32.mxu1 %v5747_v10  ;;  %8184 = vst [vmem:[#allocation27_spill] sm:$0xff] %v6653_v32  ;;  %v6656_v15 = vld [vmem:[%s6175_s10 + $0x758] sm:$0xff]  ;;  %v5750_v10 = vld [vmem:[%s6175_s10 + $0x700] sm:$0xff] }
 0x188   : > { %8185 = vst [vmem:[#allocation28_spill] sm:$0xff] %v6656_v15 }
 0x18a   : > { %1576 = vmatmul.mubr.f32.gmra.mrb[54].mxu0 %v6643_v9  ;;  %2347 = vmatmul.mubr.f32.gmra.mrb[86].mxu1 %v5748_v4  ;;  %v6663_v4 = vld [vmem:[%s6175_s10 + $0x750] sm:$0xff] }
 0x18b   : > { %1581 = vmatprep.mubr.f32.mxu0 %v6646_v53  ;;  %2352 = vmatprep.mubr.f32.mxu1 %v5749_v0  ;;  %8186 = vst [vmem:[#allocation29_spill] sm:$0xff] %v6663_v4  ;;  %v6666_v53 = vld [vmem:[%s6175_s10 + $0x798] sm:$0xff]  ;;  %v6673_v0 = vld [vmem:[%s6175_s10 + $0x790] sm:$0xff] }
 0x18c   : > { %8187 = vst [vmem:[#allocation30_spill] sm:$0xff] %v6666_v53  ;;  %8188 = vst [vmem:[#allocation31_spill] sm:$0xff] %v6673_v0 }
 0x18e   : > { %1582 = vmatmul.mubr.f32.gmra.mrb[56].mxu0 %v6653_v32  ;;  %2353 = vmatmul.mubr.f32.gmra.mrb[88].mxu1 %v5750_v10  ;;  %v6676_v10 = vld [vmem:[%s6175_s10 + $0x7d8] sm:$0xff]  ;;  %v946_v32 = vld [vmem:[#allocation4 + $0xc20] sm:$0xff] }
 0x18f   : > { %1587 = vmatprep.mubr.f32.mxu0 %v6656_v15  ;;  %2358 = vmatprep.mubr.f32.mxu1 %v6322_v38  ;;  %8189 = vst [vmem:[#allocation32_spill] sm:$0xff] %v6676_v10  ;;  %v6683_v38 = vld [vmem:[%s6175_s10 + $0x7d0] sm:$0xff]  ;;  %v829_v15 = vld [vmem:[#allocation4 + $0x878] sm:$0xff] }
 0x190   : > { %8190 = vst [vmem:[#allocation33_spill] sm:$0xff] %v6683_v38 }
 0x192   : > { %1588 = vmatmul.mubr.f32.gmra.mrb[58].mxu0 %v6663_v4  ;;  %2359 = vmatmul.mubr.f32.gmra.mrb[90].mxu1 %v6329_v52  ;;  %v6686_v52 = vld [vmem:[%s6175_s10 + $0x28] sm:$0xff]  ;;  %v825_v4 = vld [vmem:[#allocation4 + $0x858] sm:$0xff] }
 0x193   : > { %1593 = vmatprep.mubr.f32.mxu0 %v6666_v53  ;;  %2364 = vmatprep.mubr.f32.mxu1 %v6337_v3  ;;  %8191 = vst [vmem:[#allocation34_spill] sm:$0xff] %v6686_v52  ;;  %v816_v53 = vld [vmem:[#allocation4 + $0x810] sm:$0xff]  ;;  %v4538_v9 = vpack.c.bf16 %v829_v15, %v825_v4  ;;  %v6706_v15 = vld [vmem:[%s6175_s10 + $0xa8] sm:$0xff] }
 0x194   : > { %v820_v3 = vld [vmem:[#allocation4 + $0x830] sm:$0xff] }
 0x195   : > { %v832_v4 = vld [vmem:[#allocation4 + $0x890] sm:$0xff] }
 0x196   : > { %1594 = vmatmul.mubr.f32.gmra.mrb[60].mxu0 %v6673_v0  ;;  %2365 = vmatmul.mubr.f32.gmra.mrb[92].mxu1 %v6345_v16  ;;  %v942_v0 = vld [vmem:[#allocation4 + $0xc00] sm:$0xff] }
 0x197   : > { %1599 = vmatprep.mubr.f32.mxu0 %v6676_v10  ;;  %2370 = vmatprep.mubr.f32.mxu1 %v6353_v29  ;;  %v6693_v16 = vld [vmem:[%s6175_s10 + $0x20] sm:$0xff]  ;;  %v4536_v29 = vpack.c.bf16 %v820_v3, %v816_v53  ;;  %v6696_v10 = vld [vmem:[%s6175_s10 + $0x68] sm:$0xff] }
 0x198   : > { %8192 = vst [vmem:[#allocation35_spill] sm:$0xff] %v6693_v16  ;;  %8193 = vst [vmem:[#allocation36_spill] sm:$0xff] %v6696_v10  ;;  %v6702_v53 = vld [vmem:[%s6175_s10 + $0x60] sm:$0xff] }
 0x19a   : > { %1600 = vmatmul.mubr.f32.gmra.mrb[62].mxu0 %v6683_v38  ;;  %2371 = vmatmul.mubr.f32.gmra.mrb[94].mxu1 %v6361_v46  ;;  %v4344_v38 = vpack.c.bf16 %v946_v32, %v942_v0  ;;  %v955_v46 = vld [vmem:[#allocation4 + $0xc68] sm:$0xff]  ;;  %v4540_v32 = vpack.c.bf16 %v828_v35, %v824_v25  ;;  %v836_v0 = vld [vmem:[#allocation4 + $0x8b0] sm:$0xff]  ;;  %v6713_v35 = vld [vmem:[%s6175_s10 + $0xa0] sm:$0xff] }
 0x19b   : > { %1670 = vmatprep.mubr.f32.mxu0 %v6686_v52  ;;  %2441 = vmatprep.mubr.f32.mxu1 %v6366_v58  ;;  %v837_v52 = vld [vmem:[#allocation4 + $0x8b8] sm:$0xff]  ;;  %v950_v58 = vld [vmem:[#allocation4 + $0xc40] sm:$0xff]  ;;  %v4346_v3 = vpack.c.bf16 %v955_v46, %v951_v2  ;;  %v6716_v2 = vld [vmem:[%s6175_s10 + $0xe8] sm:$0xff] }
 0x19c   : > { %v4348_v37 = vpack.c.bf16 %v954_v45, %v950_v58  ;;  %v840_v45 = vld [vmem:[#allocation4 + $0x8d0] sm:$0xff]  ;;  %v967_v46 = vld [vmem:[#allocation4 + $0xcc8] sm:$0xff] }
 0x19d   : > { %v844_v25 = vld [vmem:[#allocation4 + $0x8f0] sm:$0xff]  ;;  %v971_v58 = vld [vmem:[#allocation4 + $0xce8] sm:$0xff] }
 0x19e   : > { %1671 = vmatmul.mubr.f32.vlgmr.msra.gmra.mrb[0].mxu0 %v6693_v16  ;;  %2442 = vmatmul.mubr.f32.vlgmr.msra.gmra.mrb[32].mxu1 %v6371_v8  ;;  %v4542_v8 = vpack.c.bf16 %v837_v52, %v833_v14  ;;  %v841_v16 = vld [vmem:[#allocation4 + $0x8d8] sm:$0xff]  ;;  %v4544_v14 = vpack.c.bf16 %v836_v0, %v832_v4  ;;  %v970_v4 = vld [vmem:[#allocation4 + $0xce0] sm:$0xff]  ;;  %v6726_v0 = vld [vmem:[%s6175_s10 + $0x128] sm:$0xff] }
 0x19f   : > { %4537 = vmatpush1.bf16.msra.mxu1 %v4536_v29  ;;  %1676 = vmatprep.mubr.f32.mxu0 %v6696_v10  ;;  %v959_v29 = vld [vmem:[#allocation4 + $0xc88] sm:$0xff]  ;;  %v958_v10 = vld [vmem:[#allocation4 + $0xc80] sm:$0xff] }
 0x1a0   : > { %2447 = vmatprep.mubr.f32.mxu1 %v6376_v12  ;;  %4539 = vmatprep.subr.bf16.mxu1 %v4538_v9  ;;  %v845_v12 = vld [vmem:[#allocation4 + $0x8f8] sm:$0xff]  ;;  %v4350_v9 = vpack.c.bf16 %v963_v28, %v959_v29  ;;  %v4352_v52 = vpack.c.bf16 %v962_v26, %v958_v10  ;;  %v6723_v28 = vld [vmem:[%s6175_s10 + $0xe0] sm:$0xff]  ;;  %v848_v26 = vld [vmem:[#allocation4 + $0x910] sm:$0xff] }
 0x1a1   : > { %4345 = vmatpush1.bf16.msra.mxu0 %v4344_v38  ;;  %v849_v38 = vld [vmem:[#allocation4 + $0x918] sm:$0xff]  ;;  %v852_v10 = vld [vmem:[#allocation4 + $0x930] sm:$0xff]  ;;  %v975_v29 = vld [vmem:[#allocation4 + $0xd08] sm:$0xff] }
 0x1a2   : > { %1677 = vmatmul.mubr.f32.gmra.mrb[2].mxu0 %v6702_v53  ;;  %2448 = vmatmul.mubr.f32.gmra.mrb[34].mxu1 %v6382_v36  ;;  %v4546_v36 = vpack.c.bf16 %v845_v12, %v841_v16  ;;  %v4354_v16 = vpack.c.bf16 %v971_v58, %v967_v46  ;;  %v979_v12 = vld [vmem:[#allocation4 + $0xd28] sm:$0xff]  ;;  %v865_v58 = vld [vmem:[#allocation4 + $0x998] sm:$0xff] }
 0x1a3   : > { %1682 = vmatprep.mubr.f32.mxu0 %v6706_v15  ;;  %2453 = vmatprep.mubr.f32.mxu1 %v6386_v39  ;;  %v853_v39 = vld [vmem:[#allocation4 + $0x938] sm:$0xff]  ;;  %v4358_v46 = vpack.c.bf16 %v979_v12, %v975_v29 }
 0x1a4   : > { %4541 = vmatpush1.bf16.msra.mxu1 %v4540_v32  ;;  %4347 = vmatprep.subr.bf16.mxu0 %v4346_v3  ;;  %v966_v32 = vld [vmem:[#allocation4 + $0xcc0] sm:$0xff]  ;;  %v857_v3 = vld [vmem:[#allocation4 + $0x958] sm:$0xff] }
 0x1a5   : > { %4543 = vmatprep.subr.bf16.mxu1 %v4542_v8  ;;  %4349 = vmatpush1.bf16.msra.mxu0 %v4348_v37  ;;  %v4548_v37 = vpack.c.bf16 %v844_v25, %v840_v45  ;;  %v4356_v8 = vpack.c.bf16 %v970_v4, %v966_v32  ;;  %v978_v45 = vld [vmem:[#allocation4 + $0xd20] sm:$0xff]  ;;  %v983_v32 = vld [vmem:[#allocation4 + $0xd48] sm:$0xff] }
 0x1a6   : > { %1683 = vmatmul.mubr.f32.gmra.mrb[4].mxu0 %v6713_v35  ;;  %2454 = vmatmul.mubr.f32.gmra.mrb[36].mxu1 %v6393_v7  ;;  %v4550_v7 = vpack.c.bf16 %v853_v39, %v849_v38  ;;  %v6733_v25 = vld [vmem:[%s6175_s10 + $0x120] sm:$0xff]  ;;  %v856_v38 = vld [vmem:[#allocation4 + $0x950] sm:$0xff]  ;;  %v987_v4 = vld [vmem:[#allocation4 + $0xd68] sm:$0xff] }
 0x1a7   : > { %1688 = vmatprep.mubr.f32.mxu0 %v6716_v2  ;;  %2459 = vmatprep.mubr.f32.mxu1 %v6396_v11  ;;  %v861_v11 = vld [vmem:[#allocation4 + $0x978] sm:$0xff]  ;;  %v4362_v29 = vpack.c.bf16 %v987_v4, %v983_v32  ;;  %v876_v32 = vld [vmem:[#allocation4 + $0x9f0] sm:$0xff] }
 0x1a8   : > { %4545 = vmatpush1.bf16.msra.mxu1 %v4544_v14  ;;  %4351 = vmatprep.subr.bf16.mxu0 %v4350_v9  ;;  %v974_v14 = vld [vmem:[#allocation4 + $0xd00] sm:$0xff]  ;;  %v6736_v9 = vld [vmem:[%s6175_s10 + $0x168] sm:$0xff] }
 0x1a9   : > { %4547 = vmatprep.subr.bf16.mxu1 %v4546_v36  ;;  %4353 = vmatpush1.bf16.msra.mxu0 %v4352_v52  ;;  %8194 = vst [vmem:[#allocation37_spill] sm:$0xff] %v6736_v9  ;;  %v4552_v36 = vpack.c.bf16 %v852_v10, %v848_v26  ;;  %v860_v52 = vld [vmem:[#allocation4 + $0x970] sm:$0xff]  ;;  %v4360_v39 = vpack.c.bf16 %v978_v45, %v974_v14  ;;  %v986_v26 = vld [vmem:[#allocation4 + $0xd60] sm:$0xff]  ;;  %v995_v45 = vld [vmem:[#allocation4 + $0xda8] sm:$0xff] }
 0x1aa   : > { %1689 = vmatmul.mubr.f32.gmra.mrb[6].mxu0 %v6723_v28  ;;  %2460 = vmatmul.mubr.f32.gmra.mrb[38].mxu1 %v6403_v44  ;;  %v4554_v44 = vpack.c.bf16 %v861_v11, %v857_v3  ;;  %v6743_v10 = vld [vmem:[%s6175_s10 + $0x160] sm:$0xff]  ;;  %v864_v3 = vld [vmem:[#allocation4 + $0x990] sm:$0xff]  ;;  %v873_v11 = vld [vmem:[#allocation4 + $0x9d8] sm:$0xff] }
 0x1ab   : > { %1694 = vmatprep.mubr.f32.mxu0 %v6726_v0  ;;  %2465 = vmatprep.mubr.f32.mxu1 %v6406_v47  ;;  %v869_v47 = vld [vmem:[#allocation4 + $0x9b8] sm:$0xff] }
 0x1ac   : > { %4549 = vmatpush1.bf16.msra.mxu1 %v4548_v37  ;;  %4355 = vmatprep.subr.bf16.mxu0 %v4354_v16  ;;  %v982_v37 = vld [vmem:[#allocation4 + $0xd40] sm:$0xff]  ;;  %v6746_v16 = vld [vmem:[%s6175_s10 + $0x1a8] sm:$0xff] }
 0x1ad   : > { %4551 = vmatprep.subr.bf16.mxu1 %v4550_v7  ;;  %4357 = vmatpush1.bf16.msra.mxu0 %v4356_v8  ;;  %v4556_v7 = vpack.c.bf16 %v860_v52, %v856_v38  ;;  %v868_v8 = vld [vmem:[#allocation4 + $0x9b0] sm:$0xff]  ;;  %v4364_v14 = vpack.c.bf16 %v986_v26, %v982_v37  ;;  %v990_v38 = vld [vmem:[#allocation4 + $0xd80] sm:$0xff]  ;;  %v881_v37 = vld [vmem:[#allocation4 + $0xa18] sm:$0xff] }
 0x1ae   : > { %1695 = vmatmul.mubr.f32.gmra.mrb[8].mxu0 %v6733_v25  ;;  %2466 = vmatmul.mubr.f32.gmra.mrb[40].mxu1 %v6413_v18  ;;  %v4558_v18 = vpack.c.bf16 %v869_v47, %v865_v58  ;;  %v994_v52 = vld [vmem:[#allocation4 + $0xda0] sm:$0xff]  ;;  %v4560_v58 = vpack.c.bf16 %v868_v8, %v864_v3 }
 0x1af   : > { %1700 = vmatprep.mubr.f32.mxu0 %v6736_v9  ;;  %2471 = vmatprep.mubr.f32.mxu1 %v6416_v19  ;;  %v991_v19 = vld [vmem:[#allocation4 + $0xd88] sm:$0xff]  ;;  %v4368_v26 = vpack.c.bf16 %v994_v52, %v990_v38  ;;  %v998_v3 = vld [vmem:[#allocation4 + $0xdc0] sm:$0xff]  ;;  %v889_v38 = vld [vmem:[#allocation4 + $0xa58] sm:$0xff] }
 0x1b0   : > { %4553 = vmatpush1.bf16.msra.mxu1 %v4552_v36  ;;  %4359 = vmatprep.subr.bf16.mxu0 %v4358_v46  ;;  %v877_v36 = vld [vmem:[#allocation4 + $0x9f8] sm:$0xff]  ;;  %v6757_v46 = vld [vmem:[%s6175_s10 + $0x1a0] sm:$0xff]  ;;  %v4366_v4 = vpack.c.bf16 %v995_v45, %v991_v19  ;;  %v884_v19 = vld [vmem:[#allocation4 + $0xa30] sm:$0xff] }
 0x1b1   : > { %v6748_v12 = vpop.f32.mrb[0].mxu1  ;;  %4555 = vmatprep.subr.bf16.mxu1 %v4554_v44  ;;  %4361 = vmatpush1.bf16.msra.mxu0 %v4360_v39  ;;  %v6760_v44 = vld [vmem:[%s6175_s10 + $0x1e8] sm:$0xff]  ;;  %v872_v39 = vld [vmem:[#allocation4 + $0x9d0] sm:$0xff]  ;;  %v1002_v8 = vld [vmem:[#allocation4 + $0xde0] sm:$0xff] }
 0x1b2   : > { %8195 = vst [vmem:[#allocation38_spill] sm:$0xff] %v6748_v12  ;;  %v6750_v9 = vpop.f32.mrb[1].mxu1  ;;  %1701 = vmatmul.mubr.f32.gmra.mrb[10].mxu0 %v6743_v10  ;;  %2472 = vmatmul.mubr.f32.gmra.mrb[42].mxu1 %v6423_v48  ;;  %v4562_v48 = vpack.c.bf16 %v877_v36, %v873_v11  ;;  %v4564_v11 = vpack.c.bf16 %v876_v32, %v872_v39  ;;  %v1006_v39 = vld [vmem:[#allocation4 + $0xe00] sm:$0xff] }
 0x1b3   : > { %8196 = vst [vmem:[#allocation39_spill] sm:$0xff] %v6750_v9  ;;  %1706 = vmatprep.mubr.f32.mxu0 %v6746_v16  ;;  %2477 = vmatprep.mubr.f32.mxu1 %v6426_v55  ;;  %v999_v55 = vld [vmem:[#allocation4 + $0xdc8] sm:$0xff]  ;;  %v4372_v52 = vpack.c.bf16 %v1002_v8, %v998_v3  ;;  %v6785_v32 = vld [vmem:[%s6175_s10 + $0x220] sm:$0xff]  ;;  %v897_v3 = vld [vmem:[#allocation4 + $0xa98] sm:$0xff] }
 0x1b4   : > { %4557 = vmatpush1.bf16.msra.mxu1 %v4556_v7  ;;  %4363 = vmatprep.subr.bf16.mxu0 %v4362_v29  ;;  %v1003_v9 = vld [vmem:[#allocation4 + $0xde8] sm:$0xff]  ;;  %v885_v7 = vld [vmem:[#allocation4 + $0xa38] sm:$0xff]  ;;  %v6771_v29 = vld [vmem:[%s6175_s10 + $0x1e0] sm:$0xff] }
 0x1b5   : > { %v6762_v47 = vpop.f32.mrb[2].mxu1  ;;  %4559 = vmatprep.subr.bf16.mxu1 %v4558_v18  ;;  %4365 = vmatpush1.bf16.msra.mxu0 %v4364_v14  ;;  %v6774_v18 = vld [vmem:[%s6175_s10 + $0x228] sm:$0xff]  ;;  %v880_v14 = vld [vmem:[#allocation4 + $0xa10] sm:$0xff]  ;;  %v4370_v45 = vpack.c.bf16 %v1003_v9, %v999_v55  ;;  %v1010_v9 = vld [vmem:[#allocation4 + $0xe20] sm:$0xff] }
 0x1b6   : > { %8197 = vst [vmem:[#allocation40_spill] sm:$0xff] %v6762_v47  ;;  %v6764_v12 = vpop.f32.mrb[3].mxu1  ;;  %1707 = vmatmul.mubr.f32.gmra.mrb[12].mxu0 %v6757_v46  ;;  %2478 = vmatmul.mubr.f32.gmra.mrb[44].mxu1 %v6433_v21  ;;  %v4566_v21 = vpack.c.bf16 %v885_v7, %v881_v37  ;;  %v888_v37 = vld [vmem:[#allocation4 + $0xa50] sm:$0xff]  ;;  %v4376_v8 = vpack.c.bf16 %v1010_v9, %v1006_v39  ;;  %v905_v39 = vld [vmem:[#allocation4 + $0xad8] sm:$0xff] }
 0x1b7   : > { %8198 = vst [vmem:[#allocation41_spill] sm:$0xff] %v6764_v12  ;;  %1712 = vmatprep.mubr.f32.mxu0 %v6760_v44  ;;  %2483 = vmatprep.mubr.f32.mxu1 %v6436_v22  ;;  %v1007_v22 = vld [vmem:[#allocation4 + $0xe08] sm:$0xff] }
 0x1b8   : > { %4561 = vmatpush1.bf16.msra.mxu1 %v4560_v58  ;;  %4367 = vmatprep.subr.bf16.mxu0 %v4366_v4  ;;  %v1011_v12 = vld [vmem:[#allocation4 + $0xe28] sm:$0xff]  ;;  %v893_v58 = vld [vmem:[#allocation4 + $0xa78] sm:$0xff] }
 0x1b9   : > { %v6776_v36 = vpop.f32.mrb[4].mxu1  ;;  %4563 = vmatprep.subr.bf16.mxu1 %v4562_v48  ;;  %4369 = vmatpush1.bf16.msra.mxu0 %v4368_v26  ;;  %v6788_v4 = vld [vmem:[%s6175_s10 + $0x268] sm:$0xff]  ;;  %v4568_v48 = vpack.c.bf16 %v884_v19, %v880_v14  ;;  %v892_v26 = vld [vmem:[#allocation4 + $0xa70] sm:$0xff]  ;;  %v4374_v55 = vpack.c.bf16 %v1011_v12, %v1007_v22  ;;  %v1014_v14 = vld [vmem:[#allocation4 + $0xe40] sm:$0xff] }
 0x1ba   : > { %8199 = vst [vmem:[#allocation42_spill] sm:$0xff] %v6776_v36  ;;  %v6778_v47 = vpop.f32.mrb[5].mxu1  ;;  %1713 = vmatmul.mubr.f32.gmra.mrb[14].mxu0 %v6771_v29  ;;  %2484 = vmatmul.mubr.f32.gmra.mrb[46].mxu1 %v6443_v49  ;;  %v4570_v49 = vpack.c.bf16 %v893_v58, %v889_v38  ;;  %v1018_v12 = vld [vmem:[#allocation4 + $0xe60] sm:$0xff]  ;;  %v896_v38 = vld [vmem:[#allocation4 + $0xa90] sm:$0xff] }
 0x1bb   : > { %8200 = vst [vmem:[#allocation43_spill] sm:$0xff] %v6778_v47  ;;  %1718 = vmatprep.mubr.f32.mxu0 %v6774_v18  ;;  %2489 = vmatprep.mubr.f32.mxu1 %v6446_v56  ;;  %v1015_v56 = vld [vmem:[#allocation4 + $0xe48] sm:$0xff]  ;;  %v6799_v19 = vld [vmem:[%s6175_s10 + $0x260] sm:$0xff]  ;;  %v4380_v9 = vpack.c.bf16 %v1018_v12, %v1014_v14  ;;  %v913_v14 = vld [vmem:[#allocation4 + $0xb18] sm:$0xff] }
 0x1bc   : > { %4565 = vmatpush1.bf16.msra.mxu1 %v4564_v11  ;;  %4371 = vmatprep.subr.bf16.mxu0 %v4370_v45  ;;  %v1019_v47 = vld [vmem:[#allocation4 + $0xe68] sm:$0xff]  ;;  %v901_v11 = vld [vmem:[#allocation4 + $0xab8] sm:$0xff] }
 0x1bd   : > { %v6790_v7 = vpop.f32.mrb[6].mxu1  ;;  %4567 = vmatprep.subr.bf16.mxu1 %v4566_v21  ;;  %4373 = vmatpush1.bf16.msra.mxu0 %v4372_v52  ;;  %v6802_v45 = vld [vmem:[%s6175_s10 + $0x2a8] sm:$0xff]  ;;  %v4572_v21 = vpack.c.bf16 %v892_v26, %v888_v37  ;;  %v900_v52 = vld [vmem:[#allocation4 + $0xab0] sm:$0xff]  ;;  %v4378_v22 = vpack.c.bf16 %v1019_v47, %v1015_v56  ;;  %v1022_v37 = vld [vmem:[#allocation4 + $0xe80] sm:$0xff] }
 0x1be   : > { %8201 = vst [vmem:[#allocation44_spill] sm:$0xff] %v6790_v7  ;;  %v6792_v36 = vpop.f32.mrb[7].mxu1  ;;  %1719 = vmatmul.mubr.f32.gmra.mrb[16].mxu0 %v6785_v32  ;;  %2490 = vmatmul.mubr.f32.gmra.mrb[48].mxu1 %v6453_v1  ;;  %v4574_v1 = vpack.c.bf16 %v901_v11, %v897_v3  ;;  %v1026_v47 = vld [vmem:[#allocation4 + $0xea0] sm:$0xff]  ;;  %v904_v3 = vld [vmem:[#allocation4 + $0xad0] sm:$0xff] }
 0x1bf   : > { %8202 = vst [vmem:[#allocation45_spill] sm:$0xff] %v6792_v36  ;;  %1724 = vmatprep.mubr.f32.mxu0 %v6788_v4  ;;  %2495 = vmatprep.mubr.f32.mxu1 %v6456_v24  ;;  %v1023_v24 = vld [vmem:[#allocation4 + $0xe88] sm:$0xff]  ;;  %v6813_v26 = vld [vmem:[%s6175_s10 + $0x2a0] sm:$0xff]  ;;  %v4384_v12 = vpack.c.bf16 %v1026_v47, %v1022_v37  ;;  %v921_v37 = vld [vmem:[#allocation4 + $0xb58] sm:$0xff] }
 0x1c0   : > { %4569 = vmatpush1.bf16.msra.mxu1 %v4568_v48  ;;  %4375 = vmatprep.subr.bf16.mxu0 %v4374_v55  ;;  %v1027_v36 = vld [vmem:[#allocation4 + $0xea8] sm:$0xff]  ;;  %v909_v48 = vld [vmem:[#allocation4 + $0xaf8] sm:$0xff] }
 0x1c1   : > { %v6804_v58 = vpop.f32.mrb[8].mxu1  ;;  %4571 = vmatprep.subr.bf16.mxu1 %v4570_v49  ;;  %4377 = vmatpush1.bf16.msra.mxu0 %v4376_v8  ;;  %v6816_v55 = vld [vmem:[%s6175_s10 + $0x2e8] sm:$0xff]  ;;  %v4576_v49 = vpack.c.bf16 %v900_v52, %v896_v38  ;;  %v908_v8 = vld [vmem:[#allocation4 + $0xaf0] sm:$0xff]  ;;  %v4382_v56 = vpack.c.bf16 %v1027_v36, %v1023_v24  ;;  %v1030_v38 = vld [vmem:[#allocation4 + $0xec0] sm:$0xff] }
 0x1c2   : > { %8203 = vst [vmem:[#allocation46_spill] sm:$0xff] %v6804_v58  ;;  %v6806_v7 = vpop.f32.mrb[9].mxu1  ;;  %1725 = vmatmul.mubr.f32.gmra.mrb[18].mxu0 %v6799_v19  ;;  %2496 = vmatmul.mubr.f32.gmra.mrb[50].mxu1 %v6463_v17  ;;  %v4578_v17 = vpack.c.bf16 %v909_v48, %v905_v39  ;;  %v1034_v36 = vld [vmem:[#allocation4 + $0xee0] sm:$0xff]  ;;  %v912_v39 = vld [vmem:[#allocation4 + $0xb10] sm:$0xff] }
 0x1c3   : > { %8204 = vst [vmem:[#allocation47_spill] sm:$0xff] %v6806_v7  ;;  %1730 = vmatprep.mubr.f32.mxu0 %v6802_v45  ;;  %2501 = vmatprep.mubr.f32.mxu1 %v6466_v59  ;;  %v1031_v59 = vld [vmem:[#allocation4 + $0xec8] sm:$0xff]  ;;  %v6827_v52 = vld [vmem:[%s6175_s10 + $0x2e0] sm:$0xff]  ;;  %v4388_v47 = vpack.c.bf16 %v1034_v36, %v1030_v38  ;;  %v929_v38 = vld [vmem:[#allocation4 + $0xb98] sm:$0xff] }
 0x1c4   : > { %4573 = vmatpush1.bf16.msra.mxu1 %v4572_v21  ;;  %4379 = vmatprep.subr.bf16.mxu0 %v4378_v22  ;;  %v1035_v7 = vld [vmem:[#allocation4 + $0xee8] sm:$0xff]  ;;  %v917_v21 = vld [vmem:[#allocation4 + $0xb38] sm:$0xff] }
 0x1c5   : > { %v6818_v11 = vpop.f32.mrb[10].mxu1  ;;  %4575 = vmatprep.subr.bf16.mxu1 %v4574_v1  ;;  %4381 = vmatpush1.bf16.msra.mxu0 %v4380_v9  ;;  %v6830_v22 = vld [vmem:[%s6175_s10 + $0x328] sm:$0xff]  ;;  %v4580_v1 = vpack.c.bf16 %v908_v8, %v904_v3  ;;  %v916_v9 = vld [vmem:[#allocation4 + $0xb30] sm:$0xff]  ;;  %v4386_v24 = vpack.c.bf16 %v1035_v7, %v1031_v59  ;;  %v1038_v3 = vld [vmem:[#allocation4 + $0xf00] sm:$0xff] }
 0x1c6   : > { %8205 = vst [vmem:[#allocation48_spill] sm:$0xff] %v6818_v11  ;;  %v6820_v58 = vpop.f32.mrb[11].mxu1  ;;  %1731 = vmatmul.mubr.f32.gmra.mrb[20].mxu0 %v6813_v26  ;;  %2502 = vmatmul.mubr.f32.gmra.mrb[52].mxu1 %v6473_v33  ;;  %v4582_v33 = vpack.c.bf16 %v917_v21, %v913_v14  ;;  %v1042_v7 = vld [vmem:[#allocation4 + $0xf20] sm:$0xff]  ;;  %v920_v14 = vld [vmem:[#allocation4 + $0xb50] sm:$0xff] }
 0x1c7   : > { %8206 = vst [vmem:[#allocation49_spill] sm:$0xff] %v6820_v58  ;;  %1736 = vmatprep.mubr.f32.mxu0 %v6816_v55  ;;  %2507 = vmatprep.mubr.f32.mxu1 %v6476_v27  ;;  %v1039_v27 = vld [vmem:[#allocation4 + $0xf08] sm:$0xff]  ;;  %v6841_v8 = vld [vmem:[%s6175_s10 + $0x320] sm:$0xff]  ;;  %v4392_v36 = vpack.c.bf16 %v1042_v7, %v1038_v3 }
 0x1c8   : > { %4577 = vmatpush1.bf16.msra.mxu1 %v4576_v49  ;;  %4383 = vmatprep.subr.bf16.mxu0 %v4382_v56  ;;  %v1043_v58 = vld [vmem:[#allocation4 + $0xf28] sm:$0xff]  ;;  %v925_v49 = vld [vmem:[#allocation4 + $0xb78] sm:$0xff] }
 0x1c9   : > { %v6832_v48 = vpop.f32.mrb[12].mxu1  ;;  %4579 = vmatprep.subr.bf16.mxu1 %v4578_v17  ;;  %4385 = vmatpush1.bf16.msra.mxu0 %v4384_v12  ;;  %v6844_v56 = vld [vmem:[%s6175_s10 + $0x368] sm:$0xff]  ;;  %v4584_v17 = vpack.c.bf16 %v916_v9, %v912_v39  ;;  %v924_v12 = vld [vmem:[#allocation4 + $0xb70] sm:$0xff]  ;;  %v4390_v59 = vpack.c.bf16 %v1043_v58, %v1039_v27  ;;  %v1046_v39 = vld [vmem:[#allocation4 + $0xf40] sm:$0xff] }
 0x1ca   : > { %8207 = vst [vmem:[#allocation50_spill] sm:$0xff] %v6832_v48  ;;  %v6834_v11 = vpop.f32.mrb[13].mxu1  ;;  %1737 = vmatmul.mubr.f32.gmra.mrb[22].mxu0 %v6827_v52  ;;  %2508 = vmatmul.mubr.f32.gmra.mrb[54].mxu1 %v6483_v51  ;;  %v4586_v51 = vpack.c.bf16 %v925_v49, %v921_v37  ;;  %v1050_v58 = vld [vmem:[#allocation4 + $0xf60] sm:$0xff]  ;;  %v928_v37 = vld [vmem:[#allocation4 + $0xb90] sm:$0xff]  ;;  %v1055_v7 = vld [vmem:[#allocation4 + $0xf88] sm:$0xff] }
 0x1cb   : > { %8208 = vst [vmem:[#allocation51_spill] sm:$0xff] %v6834_v11  ;;  %1742 = vmatprep.mubr.f32.mxu0 %v6830_v22  ;;  %2513 = vmatprep.mubr.f32.mxu1 %v6486_v61  ;;  %v1047_v61 = vld [vmem:[#allocation4 + $0xf48] sm:$0xff]  ;;  %v6855_v9 = vld [vmem:[%s6175_s10 + $0x360] sm:$0xff]  ;;  %v4396_v3 = vpack.c.bf16 %v1050_v58, %v1046_v39 }
 0x1cc   : > { %4581 = vmatpush1.bf16.msra.mxu1 %v4580_v1  ;;  %4387 = vmatprep.subr.bf16.mxu0 %v4386_v24  ;;  %v1051_v11 = vld [vmem:[#allocation4 + $0xf68] sm:$0xff]  ;;  %v933_v1 = vld [vmem:[#allocation4 + $0xbb8] sm:$0xff] }
 0x1cd   : > { %v6846_v21 = vpop.f32.mrb[14].mxu1  ;;  %4583 = vmatprep.subr.bf16.mxu1 %v4582_v33  ;;  %4389 = vmatpush1.bf16.msra.mxu0 %v4388_v47  ;;  %v6858_v24 = vld [vmem:[%s6175_s10 + $0x3a8] sm:$0xff]  ;;  %v4588_v33 = vpack.c.bf16 %v924_v12, %v920_v14  ;;  %v932_v47 = vld [vmem:[#allocation4 + $0xbb0] sm:$0xff]  ;;  %v4394_v27 = vpack.c.bf16 %v1051_v11, %v1047_v61  ;;  %v941_v14 = vld [vmem:[#allocation4 + $0xbf8] sm:$0xff] }
 0x1ce   : > { %8209 = vst [vmem:[#allocation52_spill] sm:$0xff] %v6846_v21  ;;  %v6848_v48 = vpop.f32.mrb[15].mxu1  ;;  %1743 = vmatmul.mubr.f32.gmra.mrb[24].mxu0 %v6841_v8  ;;  %2514 = vmatmul.mubr.f32.gmra.mrb[56].mxu1 %v6493_v5  ;;  %v4590_v5 = vpack.c.bf16 %v933_v1, %v929_v38  ;;  %v1058_v11 = vld [vmem:[#allocation4 + $0xfa0] sm:$0xff]  ;;  %v940_v61 = vld [vmem:[#allocation4 + $0xbf0] sm:$0xff]  ;;  %v1063_v58 = vld [vmem:[#allocation4 + $0xfc8] sm:$0xff] }
 0x1cf   : > { %8210 = vst [vmem:[#allocation53_spill] sm:$0xff] %v6848_v48  ;;  %1748 = vmatprep.mubr.f32.mxu0 %v6844_v56  ;;  %2519 = vmatprep.mubr.f32.mxu1 %v6496_v31  ;;  %v1059_v31 = vld [vmem:[#allocation4 + $0xfa8] sm:$0xff]  ;;  %v1054_v48 = vld [vmem:[#allocation4 + $0xf80] sm:$0xff] }
 0x1d0   : > { %4585 = vmatpush1.bf16.msra.mxu1 %v4584_v17  ;;  %4391 = vmatprep.subr.bf16.mxu0 %v4390_v59  ;;  %v937_v17 = vld [vmem:[#allocation4 + $0xbd8] sm:$0xff]  ;;  %v6869_v12 = vld [vmem:[%s6175_s10 + $0x3a0] sm:$0xff]  ;;  %v6872_v59 = vld [vmem:[%s6175_s10 + $0x3e8] sm:$0xff]  ;;  %v4398_v38 = vpack.c.bf16 %v1059_v31, %v1055_v7  ;;  %v4400_v39 = vpack.c.bf16 %v1058_v11, %v1054_v48 }
 0x1d1   : > { %v6860_v49 = vpop.f32.mrb[16].mxu1  ;;  %4587 = vmatprep.subr.bf16.mxu1 %v4586_v51  ;;  %4393 = vmatpush1.bf16.msra.mxu0 %v4392_v36  ;;  %v4592_v51 = vpack.c.bf16 %v932_v47, %v928_v37  ;;  %v936_v36 = vld [vmem:[#allocation4 + $0xbd0] sm:$0xff]  ;;  %v945_v37 = vld [vmem:[#allocation4 + $0xc18] sm:$0xff]  ;;  %v6886_v48 = vld [vmem:[%s6175_s10 + $0x428] sm:$0xff] }
 0x1d2   : > { %8211 = vst [vmem:[#allocation54_spill] sm:$0xff] %v6860_v49  ;;  %v6862_v21 = vpop.f32.mrb[17].mxu1  ;;  %1749 = vmatmul.mubr.f32.gmra.mrb[26].mxu0 %v6855_v9  ;;  %2520 = vmatmul.mubr.f32.gmra.mrb[58].mxu1 %v6503_v23  ;;  %v4594_v23 = vpack.c.bf16 %v941_v14, %v937_v17  ;;  %v949_v47 = vld [vmem:[#allocation4 + $0xc38] sm:$0xff]  ;;  %v6900_v14 = vld [vmem:[%s6175_s10 + $0x468] sm:$0xff] }
 0x1d3   : > { %8212 = vst [vmem:[#allocation55_spill] sm:$0xff] %v6862_v21  ;;  %1754 = vmatprep.mubr.f32.mxu0 %v6858_v24  ;;  %2525 = vmatprep.mubr.f32.mxu1 %v6506_v62  ;;  %v1067_v62 = vld [vmem:[#allocation4 + $0xfe8] sm:$0xff]  ;;  %v1062_v21 = vld [vmem:[#allocation4 + $0xfc0] sm:$0xff]  ;;  %v4598_v31 = vpack.c.bf16 %v949_v47, %v945_v37 }
 0x1d4   : > { %4589 = vmatpush1.bf16.msra.mxu1 %v4588_v33  ;;  %4395 = vmatprep.subr.bf16.mxu0 %v4394_v27  ;;  %v1066_v33 = vld [vmem:[#allocation4 + $0xfe0] sm:$0xff]  ;;  %v8228_v37 = vld [vmem:[#allocation14_spill] sm:$0xff] }
 0x1d5   : > { %v6874_v1 = vpop.f32.mrb[18].mxu1  ;;  %4591 = vmatprep.subr.bf16.mxu1 %v4590_v5  ;;  %4397 = vmatpush1.bf16.msra.mxu0 %v4396_v3  ;;  %v6883_v27 = vld [vmem:[%s6175_s10 + $0x3e0] sm:$0xff]  ;;  %v4596_v5 = vpack.c.bf16 %v940_v61, %v936_v36  ;;  %v4402_v3 = vpack.c.bf16 %v1067_v62, %v1063_v58  ;;  %v6980_v47 = vld [vmem:[%s6175_s10 + $0x5e8] sm:$0xff] }
 0x1d6   : > { %8213 = vst [vmem:[#allocation56_spill] sm:$0xff] %v6874_v1  ;;  %v6876_v49 = vpop.f32.mrb[19].mxu1  ;;  %1755 = vmatmul.mubr.f32.gmra.mrb[28].mxu0 %v6869_v12  ;;  %2526 = vmatmul.mubr.f32.gmra.mrb[60].mxu1 %v6513_v43  ;;  %v4404_v43 = vpack.c.bf16 %v1066_v33, %v1062_v21  ;;  %v8227_v33 = vld [vmem:[#allocation13_spill] sm:$0xff] }
 0x1d7   : > { %8214 = vst [vmem:[#allocation57_spill] sm:$0xff] %v6876_v49  ;;  %1760 = vmatprep.mubr.f32.mxu0 %v6872_v59  ;;  %2531 = vmatprep.mubr.f32.mxu1 %v6516_v34  ;;  %v6897_v34 = vld [vmem:[%s6175_s10 + $0x420] sm:$0xff] }
 0x1d8   : > { %4593 = vmatpush1.bf16.msra.mxu1 %v4592_v51  ;;  %4399 = vmatprep.subr.bf16.mxu0 %v4398_v38  ;;  %v8257_v49 = vld [vmem:[#allocation32_spill] sm:$0xff] }
 0x1d9   : > { %v6888_v7 = vpop.f32.mrb[20].mxu1  ;;  %4595 = vmatprep.subr.bf16.mxu1 %v4594_v23  ;;  %4401 = vmatpush1.bf16.msra.mxu0 %v4400_v39  ;;  %v7067_v1 = vld [vmem:[%s6175_s10 + $0x7e0] sm:$0xff] }
 0x1da   : > { %8215 = vst [vmem:[#allocation58_spill] sm:$0xff] %v6888_v7  ;;  %v6890_v17 = vpop.f32.mrb[21].mxu1  ;;  %1761 = vmatmul.mubr.f32.gmra.mrb[30].mxu0 %v6883_v27  ;;  %2532 = vmatmul.mubr.f32.gmra.mrb[62].mxu1 %v6523_v63  ;;  %v6911_v63 = vld [vmem:[%s6175_s10 + $0x460] sm:$0xff] }
 0x1db   : > { %8216 = vst [vmem:[#allocation59_spill] sm:$0xff] %v6890_v17  ;;  %1766 = vmatprep.mubr.f32.mxu0 %v6886_v48  ;;  %2537 = vmatprep.mubr.f32.mxu1 %v6526_v57  ;;  %v6914_v57 = vld [vmem:[%s6175_s10 + $0x4a8] sm:$0xff]  ;;  %v7057_v7 = vld [vmem:[%s6175_s10 + $0x7a0] sm:$0xff] }
 0x1dc   : > { %4597 = vmatpush1.bf16.msra.mxu1 %v4596_v5  ;;  %4403 = vmatprep.subr.bf16.mxu0 %v4402_v3  ;;  %v8230_v5 = vld [vmem:[#allocation16_spill] sm:$0xff]  ;;  %v8253_v17 = vld [vmem:[#allocation30_spill] sm:$0xff] }
 0x1dd   : > { %v6902_v21 = vpop.f32.mrb[22].mxu1  ;;  %4405 = vmatpush1.bf16.msra.mxu0 %v4404_v43  ;;  %4599 = vmatprep.subr.bf16.mxu1 %v4598_v31  ;;  %v6987_v3 = vld [vmem:[%s6175_s10 + $0x5e0] sm:$0xff]  ;;  %v6990_v43 = vld [vmem:[%s6175_s10 + $0x628] sm:$0xff] }
 0x1de   : > { %8217 = vst [vmem:[#allocation60_spill] sm:$0xff] %v6902_v21  ;;  %v6904_v11 = vpop.f32.mrb[23].mxu1  ;;  %1767 = vmatmul.mubr.f32.gmra.mrb[32].mxu0 %v6897_v34  ;;  %2538 = vmatmul.mubr.f32.gmra.mrb[64].mxu1 %v6533_v60  ;;  %v6925_v60 = vld [vmem:[%s6175_s10 + $0x4a0] sm:$0xff]  ;;  %v7050_v21 = vld [vmem:[%s6175_s10 + $0x7a8] sm:$0xff] }
 0x1df   : > { %8218 = vst [vmem:[#allocation61_spill] sm:$0xff] %v6904_v11  ;;  %1772 = vmatprep.mubr.f32.mxu0 %v6900_v14  ;;  %2543 = vmatprep.mubr.f32.mxu1 %v6536_v54  ;;  %v6928_v54 = vld [vmem:[%s6175_s10 + $0x4e8] sm:$0xff]  ;;  %v8249_v11 = vld [vmem:[#allocation28_spill] sm:$0xff] }
 0x1e0   : > { %v8231_v31 = vld [vmem:[#allocation17_spill] sm:$0xff] }
 0x1e1   : > { %v6916_v51 = vpop.f32.mrb[24].mxu1 }
 0x1e2   : > { %8219 = vst [vmem:[#allocation62_spill] sm:$0xff] %v6916_v51  ;;  %v6918_v38 = vpop.f32.mrb[25].mxu1  ;;  %1773 = vmatmul.mubr.f32.gmra.mrb[34].mxu0 %v6911_v63  ;;  %2544 = vmatmul.mubr.f32.gmra.mrb[66].mxu1 %v6543_v6  ;;  %v6939_v6 = vld [vmem:[%s6175_s10 + $0x4e0] sm:$0xff]  ;;  %v7040_v51 = vld [vmem:[%s6175_s10 + $0x768] sm:$0xff] }
 0x1e3   : > { %8220 = vst [vmem:[#allocation63_spill] sm:$0xff] %v6918_v38  ;;  %1778 = vmatprep.mubr.f32.mxu0 %v6914_v57  ;;  %2549 = vmatprep.mubr.f32.mxu1 %v6546_v20  ;;  %v6942_v20 = vld [vmem:[%s6175_s10 + $0x528] sm:$0xff] }
 0x1e4   : > { %v8245_v38 = vld [vmem:[#allocation26_spill] sm:$0xff] }
 0x1e5   : > { %v6930_v36 = vpop.f32.mrb[26].mxu1 }
 0x1e6   : > { %8221 = vst [vmem:[#allocation64_spill] sm:$0xff] %v6930_v36  ;;  %v6932_v61 = vpop.f32.mrb[27].mxu1  ;;  %1779 = vmatmul.mubr.f32.gmra.mrb[36].mxu0 %v6925_v60  ;;  %2550 = vmatmul.mubr.f32.gmra.mrb[68].mxu1 %v6553_v42  ;;  %v6953_v42 = vld [vmem:[%s6175_s10 + $0x520] sm:$0xff]  ;;  %v7030_v36 = vld [vmem:[%s6175_s10 + $0x728] sm:$0xff] }
 0x1e7   : > { %8222 = vst [vmem:[#allocation65_spill] sm:$0xff] %v6932_v61  ;;  %1784 = vmatprep.mubr.f32.mxu0 %v6928_v54  ;;  %2555 = vmatprep.mubr.f32.mxu1 %v6556_v50  ;;  %v6956_v50 = vld [vmem:[%s6175_s10 + $0x568] sm:$0xff]  ;;  %v8241_v61 = vld [vmem:[#allocation24_spill] sm:$0xff]  ;;  %8243 = vst [vmem:[#allocation17_spill] sm:$0xff] %v7030_v36 }
 0x1e8   : > { %8258 = vst [vmem:[#allocation24_spill] sm:$0xff] %v7067_v1 }
 0x1e9   : > { %v6944_v23 = vpop.f32.mrb[28].mxu1 }
 0x1ea   : > { %8223 = vst [vmem:[#allocation66_spill] sm:$0xff] %v6944_v23  ;;  %v6946_v39 = vpop.f32.mrb[29].mxu1  ;;  %1785 = vmatmul.mubr.f32.gmra.mrb[38].mxu0 %v6939_v6  ;;  %2556 = vmatmul.mubr.f32.gmra.mrb[70].mxu1 %v6563_v30  ;;  %v6967_v30 = vld [vmem:[%s6175_s10 + $0x560] sm:$0xff]  ;;  %v7020_v23 = vld [vmem:[%s6175_s10 + $0x6e8] sm:$0xff] }
 0x1eb   : > { %8224 = vst [vmem:[#allocation67_spill] sm:$0xff] %v6946_v39  ;;  %1790 = vmatprep.mubr.f32.mxu0 %v6942_v20  ;;  %2561 = vmatprep.mubr.f32.mxu1 %v6566_v13  ;;  %v6970_v13 = vld [vmem:[%s6175_s10 + $0x5a8] sm:$0xff] }
 0x1ec   : > { %v8237_v39 = vld [vmem:[#allocation22_spill] sm:$0xff] }
 0x1ed   : > { %v6958_v58 = vpop.f32.mrb[30].mxu1  ;;  %8254 = vst [vmem:[#allocation22_spill] sm:$0xff] %v7057_v7 }
 0x1ee   : > { %8225 = vst [vmem:[#allocation68_spill] sm:$0xff] %v6958_v58  ;;  %v6960_v62 = vpop.f32.mrb[31].mxu1  ;;  %1791 = vmatmul.mubr.f32.gmra.mrb[40].mxu0 %v6953_v42  ;;  %2562 = vmatmul.mubr.f32.gmra.mrb[72].mxu1 %v6573_v41  ;;  %v6977_v41 = vld [vmem:[%s6175_s10 + $0x5a0] sm:$0xff]  ;;  %v7010_v58 = vld [vmem:[%s6175_s10 + $0x6a8] sm:$0xff] }
 0x1ef   : > { %8226 = vst [vmem:[#allocation69_spill] sm:$0xff] %v6960_v62  ;;  %1796 = vmatprep.mubr.f32.mxu0 %v6956_v50  ;;  %2567 = vmatprep.mubr.f32.mxu1 %v6576_v40  ;;  %v8229_v40 = vld [vmem:[#allocation15_spill] sm:$0xff]  ;;  %v8234_v62 = vld [vmem:[#allocation20_spill] sm:$0xff]  ;;  %8235 = vst [vmem:[#allocation13_spill] sm:$0xff] %v7010_v58 }
 0x1f0   : > { %8239 = vst [vmem:[#allocation15_spill] sm:$0xff] %v7020_v23 }
 0x1f2   : > { %1797 = vmatmul.mubr.f32.gmra.mrb[42].mxu0 %v6967_v30  ;;  %2568 = vmatmul.mubr.f32.gmra.mrb[74].mxu1 %v8227_v33  ;;  %v8232_v33 = vld [vmem:[#allocation18_spill] sm:$0xff] }
 0x1f3   : > { %1802 = vmatprep.mubr.f32.mxu0 %v6970_v13  ;;  %2573 = vmatprep.mubr.f32.mxu1 %v8228_v37  ;;  %v6997_v37 = vld [vmem:[%s6175_s10 + $0x620] sm:$0xff] }
 0x1f6   : > { %1803 = vmatmul.mubr.f32.gmra.mrb[44].mxu0 %v6977_v41  ;;  %2574 = vmatmul.mubr.f32.gmra.mrb[76].mxu1 %v8229_v40  ;;  %v7000_v40 = vld [vmem:[%s6175_s10 + $0x668] sm:$0xff] }
 0x1f7   : > { %1808 = vmatprep.mubr.f32.mxu0 %v6980_v47  ;;  %2579 = vmatprep.mubr.f32.mxu1 %v8230_v5  ;;  %v8233_v5 = vld [vmem:[#allocation19_spill] sm:$0xff] }
 0x1f8   : > { %8247 = vst [vmem:[#allocation19_spill] sm:$0xff] %v7040_v51 }
 0x1fa   : > { %1809 = vmatmul.mubr.f32.gmra.mrb[46].mxu0 %v6987_v3  ;;  %2580 = vmatmul.mubr.f32.gmra.mrb[78].mxu1 %v8231_v31  ;;  %v7007_v31 = vld [vmem:[%s6175_s10 + $0x660] sm:$0xff] }
 0x1fb   : > { %1814 = vmatprep.mubr.f32.mxu0 %v6990_v43  ;;  %2585 = vmatprep.mubr.f32.mxu1 %v8232_v33  ;;  %v8236_v33 = vld [vmem:[#allocation21_spill] sm:$0xff] }
 0x1fc   : > { %8251 = vst [vmem:[#allocation21_spill] sm:$0xff] %v7050_v21 }
 0x1fe   : > { %1815 = vmatmul.mubr.f32.gmra.mrb[48].mxu0 %v6997_v37  ;;  %2586 = vmatmul.mubr.f32.gmra.mrb[80].mxu1 %v8233_v5  ;;  %v7017_v5 = vld [vmem:[%s6175_s10 + $0x6a0] sm:$0xff] }
 0x1ff   : > { %1820 = vmatprep.mubr.f32.mxu0 %v7000_v40  ;;  %2591 = vmatprep.mubr.f32.mxu1 %v8234_v62  ;;  %8238 = vst [vmem:[#allocation14_spill] sm:$0xff] %v7017_v5  ;;  %v8240_v62 = vld [vmem:[#allocation23_spill] sm:$0xff] }
 0x202   : > { %1821 = vmatmul.mubr.f32.gmra.mrb[50].mxu0 %v7007_v31  ;;  %2592 = vmatmul.mubr.f32.gmra.mrb[82].mxu1 %v8236_v33  ;;  %v7027_v33 = vld [vmem:[%s6175_s10 + $0x6e0] sm:$0xff] }
 0x203   : > { %1826 = vmatprep.mubr.f32.mxu0 %v7010_v58  ;;  %2597 = vmatprep.mubr.f32.mxu1 %v8237_v39  ;;  %8242 = vst [vmem:[#allocation16_spill] sm:$0xff] %v7027_v33  ;;  %v8244_v39 = vld [vmem:[#allocation25_spill] sm:$0xff]  ;;  %v965_v58 = vld [vmem:[#allocation4 + $0xcb8] sm:$0xff] }
 0x206   : > { %1827 = vmatmul.mubr.f32.gmra.mrb[52].mxu0 %v7017_v5  ;;  %2598 = vmatmul.mubr.f32.gmra.mrb[84].mxu1 %v8240_v62  ;;  %v7037_v62 = vld [vmem:[%s6175_s10 + $0x720] sm:$0xff]  ;;  %v8262_v5 = vld [vmem:[#allocation35_spill] sm:$0xff] }
 0x207   : > { %1832 = vmatprep.mubr.f32.mxu0 %v7020_v23  ;;  %2603 = vmatprep.mubr.f32.mxu1 %v8241_v61  ;;  %8246 = vst [vmem:[#allocation18_spill] sm:$0xff] %v7037_v62  ;;  %v8248_v61 = vld [vmem:[#allocation27_spill] sm:$0xff] }
 0x208   : > { %v956_v23 = vld [vmem:[#allocation4 + $0xc70] sm:$0xff] }
 0x20a   : > { %1833 = vmatmul.mubr.f32.gmra.mrb[54].mxu0 %v7027_v33  ;;  %2604 = vmatmul.mubr.f32.gmra.mrb[86].mxu1 %v8244_v39  ;;  %v7047_v39 = vld [vmem:[%s6175_s10 + $0x760] sm:$0xff]  ;;  %v952_v33 = vld [vmem:[#allocation4 + $0xc50] sm:$0xff] }
 0x20b   : > { %1838 = vmatprep.mubr.f32.mxu0 %v7030_v36  ;;  %2609 = vmatprep.mubr.f32.mxu1 %v8245_v38  ;;  %8250 = vst [vmem:[#allocation20_spill] sm:$0xff] %v7047_v39  ;;  %v8252_v38 = vld [vmem:[#allocation29_spill] sm:$0xff] }
 0x20e   : > { %1839 = vmatmul.mubr.f32.gmra.mrb[56].mxu0 %v7037_v62  ;;  %2610 = vmatmul.mubr.f32.gmra.mrb[88].mxu1 %v8248_v61  ;;  %v7060_v61 = vld [vmem:[%s6175_s10 + $0x7e8] sm:$0xff] }
 0x20f   : > { %1844 = vmatprep.mubr.f32.mxu0 %v7040_v51  ;;  %2615 = vmatprep.mubr.f32.mxu1 %v8249_v11  ;;  %8255 = vst [vmem:[#allocation23_spill] sm:$0xff] %v7060_v61  ;;  %v8256_v11 = vld [vmem:[#allocation31_spill] sm:$0xff]  ;;  %v8259_v62 = vld [vmem:[#allocation33_spill] sm:$0xff] }
 0x210   : > { %v957_v51 = vld [vmem:[#allocation4 + $0xc78] sm:$0xff] }
 0x212   : > { %1845 = vmatmul.mubr.f32.gmra.mrb[58].mxu0 %v7047_v39  ;;  %2616 = vmatmul.mubr.f32.gmra.mrb[90].mxu1 %v8252_v38  ;;  %v7070_v38 = vld [vmem:[%s6175_s10 + $0x38] sm:$0xff] }
 0x213   : > { %1850 = vmatprep.mubr.f32.mxu0 %v7050_v21  ;;  %2621 = vmatprep.mubr.f32.mxu1 %v8253_v17  ;;  %v944_v21 = vld [vmem:[#allocation4 + $0xc10] sm:$0xff]  ;;  %v953_v39 = vld [vmem:[#allocation4 + $0xc58] sm:$0xff] }
 0x214   : > { %v948_v17 = vld [vmem:[#allocation4 + $0xc30] sm:$0xff]  ;;  %v4602_v36 = vpack.c.bf16 %v957_v51, %v953_v39  ;;  %v4604_v51 = vpack.c.bf16 %v956_v23, %v952_v33 }
 0x215   : > { %v972_v33 = vld [vmem:[#allocation4 + $0xcf0] sm:$0xff] }
 0x216   : > { %1851 = vmatmul.mubr.f32.gmra.mrb[60].mxu0 %v7057_v7  ;;  %2622 = vmatmul.mubr.f32.gmra.mrb[92].mxu1 %v8256_v11  ;;  %v8260_v11 = vld [vmem:[#allocation34_spill] sm:$0xff]  ;;  %v7080_v7 = vld [vmem:[%s6175_s10 + $0x78] sm:$0xff] }
 0x217   : > { %1856 = vmatprep.mubr.f32.mxu0 %v7060_v61  ;;  %2627 = vmatprep.mubr.f32.mxu1 %v8257_v49  ;;  %v7077_v61 = vld [vmem:[%s6175_s10 + $0x30] sm:$0xff]  ;;  %v4600_v49 = vpack.c.bf16 %v948_v17, %v944_v21  ;;  %v7090_v21 = vld [vmem:[%s6175_s10 + $0xb8] sm:$0xff] }
 0x218   : > { %8261 = vst [vmem:[#allocation25_spill] sm:$0xff] %v7077_v61  ;;  %8264 = vst [vmem:[#allocation26_spill] sm:$0xff] %v7090_v21  ;;  %v960_v17 = vld [vmem:[#allocation4 + $0xc90] sm:$0xff] }
 0x21a   : > { %1857 = vmatmul.mubr.f32.gmra.mrb[62].mxu0 %v7067_v1  ;;  %2628 = vmatmul.mubr.f32.gmra.mrb[94].mxu1 %v8259_v62  ;;  %v961_v1 = vld [vmem:[#allocation4 + $0xc98] sm:$0xff]  ;;  %v7086_v62 = vld [vmem:[%s6175_s10 + $0x70] sm:$0xff] }
 0x21b   : > { %1927 = vmatprep.mubr.f32.mxu0 %v7070_v38  ;;  %2698 = vmatprep.mubr.f32.mxu1 %v8260_v11  ;;  %v8263_v11 = vld [vmem:[#allocation36_spill] sm:$0xff]  ;;  %v4606_v39 = vpack.c.bf16 %v965_v58, %v961_v1  ;;  %v968_v58 = vld [vmem:[#allocation4 + $0xcd0] sm:$0xff] }
 0x21e   : > { %1928 = vmatmul.mubr.f32.vlgmr.msra.gmra.mrb[0].mxu0 %v7077_v61  ;;  %2699 = vmatmul.mubr.f32.vlgmr.msra.gmra.mrb[32].mxu1 %v8262_v5  ;;  %v964_v61 = vld [vmem:[#allocation4 + $0xcb0] sm:$0xff]  ;;  %v969_v5 = vld [vmem:[#allocation4 + $0xcd8] sm:$0xff] }
 0x21f   : > { %4601 = vmatpush1.bf16.msra.mxu1 %v4600_v49  ;;  %1933 = vmatprep.mubr.f32.mxu0 %v7080_v7  ;;  %v973_v49 = vld [vmem:[#allocation4 + $0xcf8] sm:$0xff]  ;;  %v4608_v1 = vpack.c.bf16 %v964_v61, %v960_v17  ;;  %v4612_v61 = vpack.c.bf16 %v972_v33, %v968_v58  ;;  %v976_v17 = vld [vmem:[#allocation4 + $0xd10] sm:$0xff] }
 0x220   : > { %2704 = vmatprep.mubr.f32.mxu1 %v8263_v11  ;;  %4603 = vmatprep.subr.bf16.mxu1 %v4602_v36  ;;  %v7097_v11 = vld [vmem:[%s6175_s10 + $0xb0] sm:$0xff]  ;;  %v7100_v36 = vld [vmem:[%s6175_s10 + $0xf8] sm:$0xff]  ;;  %v4610_v23 = vpack.c.bf16 %v973_v49, %v969_v5 }
 0x221   : > { %v980_v5 = vld [vmem:[#allocation4 + $0xd30] sm:$0xff]  ;;  %v989_v49 = vld [vmem:[#allocation4 + $0xd78] sm:$0xff] }
 0x222   : > { %1934 = vmatmul.mubr.f32.gmra.mrb[2].mxu0 %v7086_v62  ;;  %2705 = vmatmul.mubr.f32.gmra.mrb[34].mxu1 %v6702_v53  ;;  %v977_v53 = vld [vmem:[#allocation4 + $0xd18] sm:$0xff]  ;;  %v984_v58 = vld [vmem:[#allocation4 + $0xd50] sm:$0xff] }
 0x223   : > { %1939 = vmatprep.mubr.f32.mxu0 %v7090_v21  ;;  %2710 = vmatprep.mubr.f32.mxu1 %v6706_v15  ;;  %v981_v21 = vld [vmem:[#allocation4 + $0xd38] sm:$0xff]  ;;  %v7107_v15 = vld [vmem:[%s6175_s10 + $0xf0] sm:$0xff] }
 0x224   : > { %4605 = vmatpush1.bf16.msra.mxu1 %v4604_v51  ;;  %v7110_v51 = vld [vmem:[%s6175_s10 + $0x138] sm:$0xff]  ;;  %v988_v33 = vld [vmem:[#allocation4 + $0xd70] sm:$0xff] }
 0x225   : > { %4607 = vmatprep.subr.bf16.mxu1 %v4606_v39  ;;  %8265 = vst [vmem:[#allocation27_spill] sm:$0xff] %v7110_v51  ;;  %v4614_v39 = vpack.c.bf16 %v981_v21, %v977_v53  ;;  %v4616_v21 = vpack.c.bf16 %v980_v5, %v976_v17  ;;  %v997_v53 = vld [vmem:[#allocation4 + $0xdb8] sm:$0xff]  ;;  %v992_v5 = vld [vmem:[#allocation4 + $0xd90] sm:$0xff] }
 0x226   : > { %1940 = vmatmul.mubr.f32.gmra.mrb[4].mxu0 %v7097_v11  ;;  %2711 = vmatmul.mubr.f32.gmra.mrb[36].mxu1 %v6713_v35  ;;  %v985_v35 = vld [vmem:[#allocation4 + $0xd58] sm:$0xff] }
 0x227   : > { %1945 = vmatprep.mubr.f32.mxu0 %v7100_v36  ;;  %2716 = vmatprep.mubr.f32.mxu1 %v6716_v2  ;;  %v7117_v2 = vld [vmem:[%s6175_s10 + $0x130] sm:$0xff] }
 0x228   : > { %4609 = vmatpush1.bf16.msra.mxu1 %v4608_v1  ;;  %v7120_v1 = vld [vmem:[%s6175_s10 + $0x178] sm:$0xff] }
 0x229   : > { %4611 = vmatprep.subr.bf16.mxu1 %v4610_v23  ;;  %v4618_v23 = vpack.c.bf16 %v989_v49, %v985_v35  ;;  %v996_v35 = vld [vmem:[#allocation4 + $0xdb0] sm:$0xff]  ;;  %v1005_v49 = vld [vmem:[#allocation4 + $0xdf8] sm:$0xff] }
 0x22a   : > { %1946 = vmatmul.mubr.f32.gmra.mrb[6].mxu0 %v7107_v15  ;;  %2717 = vmatmul.mubr.f32.gmra.mrb[38].mxu1 %v6723_v28  ;;  %v993_v28 = vld [vmem:[#allocation4 + $0xd98] sm:$0xff] }
 0x22b   : > { %1951 = vmatprep.mubr.f32.mxu0 %v7110_v51  ;;  %2722 = vmatprep.mubr.f32.mxu1 %v6726_v0  ;;  %v8266_v0 = vld [vmem:[#allocation37_spill] sm:$0xff]  ;;  %v7127_v51 = vld [vmem:[%s6175_s10 + $0x170] sm:$0xff]  ;;  %v4622_v17 = vpack.c.bf16 %v997_v53, %v993_v28  ;;  %v1013_v53 = vld [vmem:[#allocation4 + $0xe38] sm:$0xff] }
 0x22c   : > { %4613 = vmatpush1.bf16.msra.mxu1 %v4612_v61  ;;  %v7130_v61 = vld [vmem:[%s6175_s10 + $0x1b8] sm:$0xff]  ;;  %v1004_v28 = vld [vmem:[#allocation4 + $0xdf0] sm:$0xff] }
 0x22d   : > { %4615 = vmatprep.subr.bf16.mxu1 %v4614_v39  ;;  %v4620_v39 = vpack.c.bf16 %v988_v33, %v984_v58  ;;  %v1000_v33 = vld [vmem:[#allocation4 + $0xdd0] sm:$0xff] }
 0x22e   : > { %1952 = vmatmul.mubr.f32.gmra.mrb[8].mxu0 %v7117_v2  ;;  %2723 = vmatmul.mubr.f32.gmra.mrb[40].mxu1 %v6733_v25  ;;  %v1001_v25 = vld [vmem:[#allocation4 + $0xdd8] sm:$0xff] }
 0x22f   : > { %1957 = vmatprep.mubr.f32.mxu0 %v7120_v1  ;;  %2728 = vmatprep.mubr.f32.mxu1 %v8266_v0  ;;  %v7137_v0 = vld [vmem:[%s6175_s10 + $0x1b0] sm:$0xff]  ;;  %v4626_v58 = vpack.c.bf16 %v1005_v49, %v1001_v25  ;;  %v1021_v49 = vld [vmem:[#allocation4 + $0xe78] sm:$0xff] }
 0x230   : > { %4617 = vmatpush1.bf16.msra.mxu1 %v4616_v21  ;;  %v7140_v21 = vld [vmem:[%s6175_s10 + $0x1f8] sm:$0xff]  ;;  %v1012_v25 = vld [vmem:[#allocation4 + $0xe30] sm:$0xff] }
 0x231   : > { %4619 = vmatprep.subr.bf16.mxu1 %v4618_v23  ;;  %v4624_v23 = vpack.c.bf16 %v996_v35, %v992_v5  ;;  %v1008_v35 = vld [vmem:[#allocation4 + $0xe10] sm:$0xff] }
 0x232   : > { %1958 = vmatmul.mubr.f32.gmra.mrb[10].mxu0 %v7127_v51  ;;  %2729 = vmatmul.mubr.f32.gmra.mrb[42].mxu1 %v6743_v10  ;;  %v1009_v10 = vld [vmem:[#allocation4 + $0xe18] sm:$0xff] }
 0x233   : > { %1963 = vmatprep.mubr.f32.mxu0 %v7130_v61  ;;  %2734 = vmatprep.mubr.f32.mxu1 %v6746_v16  ;;  %v7147_v16 = vld [vmem:[%s6175_s10 + $0x1f0] sm:$0xff]  ;;  %v4630_v5 = vpack.c.bf16 %v1013_v53, %v1009_v10  ;;  %v1029_v53 = vld [vmem:[#allocation4 + $0xeb8] sm:$0xff] }
 0x234   : > { %4621 = vmatpush1.bf16.msra.mxu1 %v4620_v39  ;;  %v7150_v39 = vld [vmem:[%s6175_s10 + $0x238] sm:$0xff]  ;;  %v1020_v10 = vld [vmem:[#allocation4 + $0xe70] sm:$0xff] }
 0x235   : > { %4623 = vmatprep.subr.bf16.mxu1 %v4622_v17  ;;  %v4628_v17 = vpack.c.bf16 %v1004_v28, %v1000_v33  ;;  %v1016_v28 = vld [vmem:[#allocation4 + $0xe50] sm:$0xff] }
 0x236   : > { %1964 = vmatmul.mubr.f32.gmra.mrb[12].mxu0 %v7137_v0  ;;  %2735 = vmatmul.mubr.f32.gmra.mrb[44].mxu1 %v6757_v46  ;;  %v1017_v46 = vld [vmem:[#allocation4 + $0xe58] sm:$0xff] }
 0x237   : > { %1969 = vmatprep.mubr.f32.mxu0 %v7140_v21  ;;  %2740 = vmatprep.mubr.f32.mxu1 %v6760_v44  ;;  %v7157_v44 = vld [vmem:[%s6175_s10 + $0x230] sm:$0xff]  ;;  %v4634_v33 = vpack.c.bf16 %v1021_v49, %v1017_v46  ;;  %v1037_v49 = vld [vmem:[#allocation4 + $0xef8] sm:$0xff] }
 0x238   : > { %4625 = vmatpush1.bf16.msra.mxu1 %v4624_v23  ;;  %v7160_v23 = vld [vmem:[%s6175_s10 + $0x278] sm:$0xff]  ;;  %v1028_v46 = vld [vmem:[#allocation4 + $0xeb0] sm:$0xff] }
 0x239   : > { %4627 = vmatprep.subr.bf16.mxu1 %v4626_v58  ;;  %v4632_v58 = vpack.c.bf16 %v1012_v25, %v1008_v35  ;;  %v1024_v25 = vld [vmem:[#allocation4 + $0xe90] sm:$0xff] }
 0x23a   : > { %1970 = vmatmul.mubr.f32.gmra.mrb[14].mxu0 %v7147_v16  ;;  %2741 = vmatmul.mubr.f32.gmra.mrb[46].mxu1 %v6771_v29  ;;  %v1025_v29 = vld [vmem:[#allocation4 + $0xe98] sm:$0xff] }
 0x23b   : > { %1975 = vmatprep.mubr.f32.mxu0 %v7150_v39  ;;  %2746 = vmatprep.mubr.f32.mxu1 %v6774_v18  ;;  %v7167_v18 = vld [vmem:[%s6175_s10 + $0x270] sm:$0xff]  ;;  %v4638_v35 = vpack.c.bf16 %v1029_v53, %v1025_v29  ;;  %v1045_v53 = vld [vmem:[#allocation4 + $0xf38] sm:$0xff] }
 0x23c   : > { %4629 = vmatpush1.bf16.msra.mxu1 %v4628_v17  ;;  %v7170_v17 = vld [vmem:[%s6175_s10 + $0x2b8] sm:$0xff]  ;;  %v1036_v29 = vld [vmem:[#allocation4 + $0xef0] sm:$0xff] }
 0x23d   : > { %4631 = vmatprep.subr.bf16.mxu1 %v4630_v5  ;;  %v4636_v5 = vpack.c.bf16 %v1020_v10, %v1016_v28  ;;  %v1032_v10 = vld [vmem:[#allocation4 + $0xed0] sm:$0xff] }
 0x23e   : > { %1976 = vmatmul.mubr.f32.gmra.mrb[16].mxu0 %v7157_v44  ;;  %2747 = vmatmul.mubr.f32.gmra.mrb[48].mxu1 %v6785_v32  ;;  %v1033_v32 = vld [vmem:[#allocation4 + $0xed8] sm:$0xff] }
 0x23f   : > { %1981 = vmatprep.mubr.f32.mxu0 %v7160_v23  ;;  %2752 = vmatprep.mubr.f32.mxu1 %v6788_v4  ;;  %v7177_v4 = vld [vmem:[%s6175_s10 + $0x2b0] sm:$0xff]  ;;  %v4642_v28 = vpack.c.bf16 %v1037_v49, %v1033_v32  ;;  %v1053_v49 = vld [vmem:[#allocation4 + $0xf78] sm:$0xff] }
 0x240   : > { %4633 = vmatpush1.bf16.msra.mxu1 %v4632_v58  ;;  %v7180_v58 = vld [vmem:[%s6175_s10 + $0x2f8] sm:$0xff]  ;;  %v1044_v32 = vld [vmem:[#allocation4 + $0xf30] sm:$0xff] }
 0x241   : > { %4635 = vmatprep.subr.bf16.mxu1 %v4634_v33  ;;  %v4640_v33 = vpack.c.bf16 %v1028_v46, %v1024_v25  ;;  %v1040_v46 = vld [vmem:[#allocation4 + $0xf10] sm:$0xff] }
 0x242   : > { %1982 = vmatmul.mubr.f32.gmra.mrb[18].mxu0 %v7167_v18  ;;  %2753 = vmatmul.mubr.f32.gmra.mrb[50].mxu1 %v6799_v19  ;;  %v1041_v19 = vld [vmem:[#allocation4 + $0xf18] sm:$0xff] }
 0x243   : > { %1987 = vmatprep.mubr.f32.mxu0 %v7170_v17  ;;  %2758 = vmatprep.mubr.f32.mxu1 %v6802_v45  ;;  %v7187_v45 = vld [vmem:[%s6175_s10 + $0x2f0] sm:$0xff]  ;;  %v4646_v25 = vpack.c.bf16 %v1045_v53, %v1041_v19  ;;  %v1061_v53 = vld [vmem:[#allocation4 + $0xfb8] sm:$0xff] }
 0x244   : > { %4637 = vmatpush1.bf16.msra.mxu1 %v4636_v5  ;;  %v7190_v5 = vld [vmem:[%s6175_s10 + $0x338] sm:$0xff]  ;;  %v1052_v19 = vld [vmem:[#allocation4 + $0xf70] sm:$0xff] }
 0x245   : > { %4639 = vmatprep.subr.bf16.mxu1 %v4638_v35  ;;  %v4644_v35 = vpack.c.bf16 %v1036_v29, %v1032_v10  ;;  %v1048_v29 = vld [vmem:[#allocation4 + $0xf50] sm:$0xff] }
 0x246   : > { %1988 = vmatmul.mubr.f32.gmra.mrb[20].mxu0 %v7177_v4  ;;  %2759 = vmatmul.mubr.f32.gmra.mrb[52].mxu1 %v6813_v26  ;;  %v1049_v26 = vld [vmem:[#allocation4 + $0xf58] sm:$0xff] }
 0x247   : > { %1993 = vmatprep.mubr.f32.mxu0 %v7180_v58  ;;  %2764 = vmatprep.mubr.f32.mxu1 %v6816_v55  ;;  %v7197_v55 = vld [vmem:[%s6175_s10 + $0x330] sm:$0xff]  ;;  %v4650_v10 = vpack.c.bf16 %v1053_v49, %v1049_v26  ;;  %v1069_v49 = vld [vmem:[#allocation4 + $0xff8] sm:$0xff] }
 0x248   : > { %4641 = vmatpush1.bf16.msra.mxu1 %v4640_v33  ;;  %v7200_v33 = vld [vmem:[%s6175_s10 + $0x378] sm:$0xff]  ;;  %v1060_v26 = vld [vmem:[#allocation4 + $0xfb0] sm:$0xff] }
 0x249   : > { %4643 = vmatprep.subr.bf16.mxu1 %v4642_v28  ;;  %v4648_v28 = vpack.c.bf16 %v1044_v32, %v1040_v46  ;;  %v1056_v32 = vld [vmem:[#allocation4 + $0xf90] sm:$0xff] }
 0x24a   : > { %1994 = vmatmul.mubr.f32.gmra.mrb[22].mxu0 %v7187_v45  ;;  %2765 = vmatmul.mubr.f32.gmra.mrb[54].mxu1 %v6827_v52  ;;  %v1057_v52 = vld [vmem:[#allocation4 + $0xf98] sm:$0xff] }
 0x24b   : > { %1999 = vmatprep.mubr.f32.mxu0 %v7190_v5  ;;  %2770 = vmatprep.mubr.f32.mxu1 %v6830_v22  ;;  %v7207_v22 = vld [vmem:[%s6175_s10 + $0x370] sm:$0xff]  ;;  %v4654_v46 = vpack.c.bf16 %v1061_v53, %v1057_v52  ;;  %v7230_v52 = vld [vmem:[%s6175_s10 + $0x438] sm:$0xff] }
 0x24c   : > { %4645 = vmatpush1.bf16.msra.mxu1 %v4644_v35  ;;  %v7210_v35 = vld [vmem:[%s6175_s10 + $0x3b8] sm:$0xff] }
 0x24d   : > { %4647 = vmatprep.subr.bf16.mxu1 %v4646_v25  ;;  %v4652_v25 = vpack.c.bf16 %v1052_v19, %v1048_v29  ;;  %v1064_v19 = vld [vmem:[#allocation4 + $0xfd0] sm:$0xff] }
 0x24e   : > { %2000 = vmatmul.mubr.f32.gmra.mrb[24].mxu0 %v7197_v55  ;;  %2771 = vmatmul.mubr.f32.gmra.mrb[56].mxu1 %v6841_v8  ;;  %v1065_v8 = vld [vmem:[#allocation4 + $0xfd8] sm:$0xff] }
 0x24f   : > { %2005 = vmatprep.mubr.f32.mxu0 %v7200_v33  ;;  %2776 = vmatprep.mubr.f32.mxu1 %v6844_v56  ;;  %v7217_v56 = vld [vmem:[%s6175_s10 + $0x3b0] sm:$0xff]  ;;  %v4658_v29 = vpack.c.bf16 %v1069_v49, %v1065_v8  ;;  %v8270_v8 = vld [vmem:[#allocation16_spill] sm:$0xff]  ;;  %v8271_v49 = vld [vmem:[#allocation17_spill] sm:$0xff] }
 0x250   : > { %4649 = vmatpush1.bf16.msra.mxu1 %v4648_v28  ;;  %v7220_v28 = vld [vmem:[%s6175_s10 + $0x3f8] sm:$0xff] }
 0x251   : > { %4651 = vmatprep.subr.bf16.mxu1 %v4650_v10  ;;  %v4656_v10 = vpack.c.bf16 %v1060_v26, %v1056_v32  ;;  %v8269_v32 = vld [vmem:[#allocation15_spill] sm:$0xff] }
 0x252   : > { %2006 = vmatmul.mubr.f32.gmra.mrb[26].mxu0 %v7207_v22  ;;  %2777 = vmatmul.mubr.f32.gmra.mrb[58].mxu1 %v6855_v9  ;;  %v1068_v9 = vld [vmem:[#allocation4 + $0xff0] sm:$0xff]  ;;  %v7350_v26 = vld [vmem:[%s6175_s10 + $0x738] sm:$0xff] }
 0x253   : > { %2011 = vmatprep.mubr.f32.mxu0 %v7210_v35  ;;  %2782 = vmatprep.mubr.f32.mxu1 %v6858_v24  ;;  %v7227_v24 = vld [vmem:[%s6175_s10 + $0x3f0] sm:$0xff]  ;;  %v4660_v53 = vpack.c.bf16 %v1068_v9, %v1064_v19 }
 0x254   : > { %4653 = vmatpush1.bf16.msra.mxu1 %v4652_v25  ;;  %v7250_v25 = vld [vmem:[%s6175_s10 + $0x4b8] sm:$0xff]  ;;  %v8274_v19 = vld [vmem:[#allocation18_spill] sm:$0xff] }
 0x255   : > { %4655 = vmatprep.subr.bf16.mxu1 %v4654_v46  ;;  %v7340_v46 = vld [vmem:[%s6175_s10 + $0x6f8] sm:$0xff] }
 0x256   : > { %2012 = vmatmul.mubr.f32.gmra.mrb[28].mxu0 %v7217_v56  ;;  %2783 = vmatmul.mubr.f32.gmra.mrb[60].mxu1 %v6869_v12  ;;  %v7237_v12 = vld [vmem:[%s6175_s10 + $0x430] sm:$0xff] }
 0x257   : > { %2017 = vmatprep.mubr.f32.mxu0 %v7220_v28  ;;  %2788 = vmatprep.mubr.f32.mxu1 %v6872_v59  ;;  %v7240_v59 = vld [vmem:[%s6175_s10 + $0x478] sm:$0xff] }
 0x258   : > { %4657 = vmatpush1.bf16.msra.mxu1 %v4656_v10  ;;  %v7357_v10 = vld [vmem:[%s6175_s10 + $0x730] sm:$0xff] }
 0x259   : > { %4659 = vmatprep.subr.bf16.mxu1 %v4658_v29  ;;  %8272 = vst [vmem:[#allocation28_spill] sm:$0xff] %v7357_v10  ;;  %v7360_v29 = vld [vmem:[%s6175_s10 + $0x778] sm:$0xff] }
 0x25a   : > { %2018 = vmatmul.mubr.f32.gmra.mrb[30].mxu0 %v7227_v24  ;;  %2789 = vmatmul.mubr.f32.gmra.mrb[62].mxu1 %v6883_v27  ;;  %v7247_v27 = vld [vmem:[%s6175_s10 + $0x470] sm:$0xff]  ;;  %8273 = vst [vmem:[#allocation29_spill] sm:$0xff] %v7360_v29 }
 0x25b   : > { %2023 = vmatprep.mubr.f32.mxu0 %v7230_v52  ;;  %2794 = vmatprep.mubr.f32.mxu1 %v6886_v48  ;;  %v7257_v48 = vld [vmem:[%s6175_s10 + $0x4b0] sm:$0xff] }
 0x25c   : > { %4661 = vmatpush1.bf16.msra.mxu1 %v4660_v53  ;;  %v8275_v9 = vld [vmem:[#allocation19_spill] sm:$0xff] }
 0x25d   : > { %v7367_v53 = vld [vmem:[%s6175_s10 + $0x770] sm:$0xff] }
 0x25e   : > { %2024 = vmatmul.mubr.f32.gmra.mrb[32].mxu0 %v7237_v12  ;;  %2795 = vmatmul.mubr.f32.gmra.mrb[64].mxu1 %v6897_v34  ;;  %v7260_v34 = vld [vmem:[%s6175_s10 + $0x4f8] sm:$0xff]  ;;  %8276 = vst [vmem:[#allocation30_spill] sm:$0xff] %v7367_v53 }
 0x25f   : > { %2029 = vmatprep.mubr.f32.mxu0 %v7240_v59  ;;  %2800 = vmatprep.mubr.f32.mxu1 %v6900_v14  ;;  %v7267_v14 = vld [vmem:[%s6175_s10 + $0x4f0] sm:$0xff] }
 0x262   : > { %2030 = vmatmul.mubr.f32.gmra.mrb[34].mxu0 %v7247_v27  ;;  %2801 = vmatmul.mubr.f32.gmra.mrb[66].mxu1 %v6911_v63  ;;  %v7270_v63 = vld [vmem:[%s6175_s10 + $0x538] sm:$0xff] }
 0x263   : > { %2035 = vmatprep.mubr.f32.mxu0 %v7250_v25  ;;  %2806 = vmatprep.mubr.f32.mxu1 %v6914_v57  ;;  %v7277_v57 = vld [vmem:[%s6175_s10 + $0x530] sm:$0xff] }
 0x266   : > { %2036 = vmatmul.mubr.f32.gmra.mrb[36].mxu0 %v7257_v48  ;;  %2807 = vmatmul.mubr.f32.gmra.mrb[68].mxu1 %v6925_v60  ;;  %v7280_v60 = vld [vmem:[%s6175_s10 + $0x578] sm:$0xff] }
 0x267   : > { %2041 = vmatprep.mubr.f32.mxu0 %v7260_v34  ;;  %2812 = vmatprep.mubr.f32.mxu1 %v6928_v54  ;;  %v7287_v54 = vld [vmem:[%s6175_s10 + $0x570] sm:$0xff] }
 0x26a   : > { %2042 = vmatmul.mubr.f32.gmra.mrb[38].mxu0 %v7267_v14  ;;  %2813 = vmatmul.mubr.f32.gmra.mrb[70].mxu1 %v6939_v6  ;;  %v7290_v6 = vld [vmem:[%s6175_s10 + $0x5b8] sm:$0xff] }
 0x26b   : > { %2047 = vmatprep.mubr.f32.mxu0 %v7270_v63  ;;  %2818 = vmatprep.mubr.f32.mxu1 %v6942_v20  ;;  %v7297_v20 = vld [vmem:[%s6175_s10 + $0x5b0] sm:$0xff] }
 0x26e   : > { %2048 = vmatmul.mubr.f32.gmra.mrb[40].mxu0 %v7277_v57  ;;  %2819 = vmatmul.mubr.f32.gmra.mrb[72].mxu1 %v6953_v42  ;;  %v7300_v42 = vld [vmem:[%s6175_s10 + $0x5f8] sm:$0xff] }
 0x26f   : > { %2053 = vmatprep.mubr.f32.mxu0 %v7280_v60  ;;  %2824 = vmatprep.mubr.f32.mxu1 %v6956_v50  ;;  %v7307_v50 = vld [vmem:[%s6175_s10 + $0x5f0] sm:$0xff] }
 0x272   : > { %2054 = vmatmul.mubr.f32.gmra.mrb[42].mxu0 %v7287_v54  ;;  %2825 = vmatmul.mubr.f32.gmra.mrb[74].mxu1 %v6967_v30  ;;  %v7310_v30 = vld [vmem:[%s6175_s10 + $0x638] sm:$0xff] }
 0x273   : > { %2059 = vmatprep.mubr.f32.mxu0 %v7290_v6  ;;  %2830 = vmatprep.mubr.f32.mxu1 %v6970_v13  ;;  %v7317_v13 = vld [vmem:[%s6175_s10 + $0x630] sm:$0xff] }
 0x276   : > { %2060 = vmatmul.mubr.f32.gmra.mrb[44].mxu0 %v7297_v20  ;;  %2831 = vmatmul.mubr.f32.gmra.mrb[76].mxu1 %v6977_v41  ;;  %v7320_v41 = vld [vmem:[%s6175_s10 + $0x678] sm:$0xff] }
 0x277   : > { %2065 = vmatprep.mubr.f32.mxu0 %v7300_v42  ;;  %2836 = vmatprep.mubr.f32.mxu1 %v6980_v47  ;;  %v7327_v47 = vld [vmem:[%s6175_s10 + $0x670] sm:$0xff] }
 0x27a   : > { %2066 = vmatmul.mubr.f32.gmra.mrb[46].mxu0 %v7307_v50  ;;  %2837 = vmatmul.mubr.f32.gmra.mrb[78].mxu1 %v6987_v3  ;;  %v7330_v3 = vld [vmem:[%s6175_s10 + $0x6b8] sm:$0xff] }
 0x27b   : > { %2071 = vmatprep.mubr.f32.mxu0 %v7310_v30  ;;  %2842 = vmatprep.mubr.f32.mxu1 %v6990_v43  ;;  %v8267_v43 = vld [vmem:[#allocation13_spill] sm:$0xff] }
 0x27e   : > { %2072 = vmatmul.mubr.f32.gmra.mrb[48].mxu0 %v7317_v13  ;;  %2843 = vmatmul.mubr.f32.gmra.mrb[80].mxu1 %v6997_v37  ;;  %v7337_v37 = vld [vmem:[%s6175_s10 + $0x6b0] sm:$0xff] }
 0x27f   : > { %2077 = vmatprep.mubr.f32.mxu0 %v7320_v41  ;;  %2848 = vmatprep.mubr.f32.mxu1 %v7000_v40  ;;  %v8268_v40 = vld [vmem:[#allocation14_spill] sm:$0xff] }
 0x282   : > { %2078 = vmatmul.mubr.f32.gmra.mrb[50].mxu0 %v7327_v47  ;;  %2849 = vmatmul.mubr.f32.gmra.mrb[82].mxu1 %v7007_v31  ;;  %v7347_v31 = vld [vmem:[%s6175_s10 + $0x6f0] sm:$0xff] }
 0x283   : > { %2083 = vmatprep.mubr.f32.mxu0 %v7330_v3  ;;  %2854 = vmatprep.mubr.f32.mxu1 %v8267_v43  ;;  %v7370_v43 = vld [vmem:[%s6175_s10 + $0x7b8] sm:$0xff] }
 0x284   : > { %8277 = vst [vmem:[#allocation31_spill] sm:$0xff] %v7370_v43 }
 0x286   : > { %2084 = vmatmul.mubr.f32.gmra.mrb[52].mxu0 %v7337_v37  ;;  %2855 = vmatmul.mubr.f32.gmra.mrb[84].mxu1 %v8268_v40  ;;  %v8278_v40 = vld [vmem:[#allocation20_spill] sm:$0xff] }
 0x287   : > { %2089 = vmatprep.mubr.f32.mxu0 %v7340_v46  ;;  %2860 = vmatprep.mubr.f32.mxu1 %v8269_v32  ;;  %v8279_v32 = vld [vmem:[#allocation21_spill] sm:$0xff] }
 0x28a   : > { %2090 = vmatmul.mubr.f32.gmra.mrb[54].mxu0 %v7347_v31  ;;  %2861 = vmatmul.mubr.f32.gmra.mrb[86].mxu1 %v8270_v8  ;;  %v7377_v8 = vld [vmem:[%s6175_s10 + $0x7b0] sm:$0xff] }
 0x28b   : > { %2095 = vmatprep.mubr.f32.mxu0 %v7350_v26  ;;  %2866 = vmatprep.mubr.f32.mxu1 %v8271_v49  ;;  %v7380_v49 = vld [vmem:[%s6175_s10 + $0x7f8] sm:$0xff] }
 0x28c   : > { %8280 = vst [vmem:[#allocation32_spill] sm:$0xff] %v7380_v49 }
 0x28e   : > { %2096 = vmatmul.mubr.f32.gmra.mrb[56].mxu0 %v7357_v10  ;;  %2867 = vmatmul.mubr.f32.gmra.mrb[88].mxu1 %v8274_v19  ;;  %v3660_v19 = vld [vmem:[#allocation7] sm:$0xff] }
 0x28f   : > { %2101 = vmatprep.mubr.f32.mxu0 %v7360_v29  ;;  %2872 = vmatprep.mubr.f32.mxu1 %v8275_v9  ;;  %v3661_v29 = vld [vmem:[#allocation7 + $0x8] sm:$0xff] }
 0x290   : > { %v8281_v9 = vld [vmem:[#allocation22_spill] sm:$0xff]  ;;  %v4663_v10 = vpack.c.bf16 %v3661_v29, %v3660_v19  ;;  %v3663_v29 = vld [vmem:[#allocation7 + $0x18] sm:$0xff]  ;;  %v8284_v19 = vld [vmem:[#allocation25_spill] sm:$0xff] }
 0x292   : > { %2102 = vmatmul.mubr.f32.gmra.mrb[58].mxu0 %v7367_v53  ;;  %2873 = vmatmul.mubr.f32.gmra.mrb[90].mxu1 %v8278_v40  ;;  %v8282_v53 = vld [vmem:[#allocation23_spill] sm:$0xff] }
 0x293   : > { %2107 = vmatprep.mubr.f32.mxu0 %v7370_v43  ;;  %2878 = vmatprep.mubr.f32.mxu1 %v8279_v32  ;;  %v7387_v40 = vld [vmem:[%s6175_s10 + $0x7f0] sm:$0xff]  ;;  %v5948_v43 = vmov 0.0|0.0   ;;  %v8283_v32 = vld [vmem:[#allocation24_spill] sm:$0xff] }
 0x294   : > { %4662 = vmatprep.subr.bf16.mxu0 %v5948_v43 }
 0x295   : > { %4664 = vmatpush1.bf16.msra.mxu0 %v4663_v10  ;;  %v8285_v10 = vld [vmem:[#allocation26_spill] sm:$0xff] }
 0x296   : > { %2108 = vmatmul.mubr.f32.gmra.mrb[60].mxu0 %v7377_v8  ;;  %2879 = vmatmul.mubr.f32.gmra.mrb[92].mxu1 %v8281_v9  ;;  %v3662_v9 = vld [vmem:[#allocation7 + $0x10] sm:$0xff] }
 0x297   : > { %2113 = vmatprep.mubr.f32.mxu0 %v7380_v49  ;;  %2884 = vmatprep.mubr.f32.mxu1 %v8282_v53  ;;  %v4666_v49 = vpack.c.bf16 %v3663_v29, %v3662_v9  ;;  %v3664_v53 = vld [vmem:[#allocation7 + $0x20] sm:$0xff]  ;;  %v3667_v9 = vld [vmem:[#allocation7 + $0x38] sm:$0xff] }
 0x298   : > { %4665 = vmatprep.subr.bf16.mxu0 %v5948_v43 }
 0x299   : > { %4667 = vmatpush1.bf16.msra.mxu0 %v4666_v49  ;;  %v3666_v49 = vld [vmem:[#allocation7 + $0x30] sm:$0xff] }
 0x29a   : > { %2114 = vmatmul.mubr.f32.gmra.mrb[62].mxu0 %v7387_v40  ;;  %2885 = vmatmul.mubr.f32.gmra.mrb[94].mxu1 %v8283_v32  ;;  %v3665_v32 = vld [vmem:[#allocation7 + $0x28] sm:$0xff] }
 0x29b   : > { %2955 = vmatprep.mubr.f32.mxu1 %v7070_v38  ;;  %4668 = vmatprep.subr.bf16.mxu0 %v5948_v43  ;;  %v4669_v38 = vpack.c.bf16 %v3665_v32, %v3664_v53  ;;  %v8288_v53 = vld [vmem:[#allocation29_spill] sm:$0xff] }
 0x29d   : > { %4670 = vmatpush1.bf16.msra.mxu0 %v4669_v38 }
 0x29e   : > { %2956 = vmatmul.mubr.f32.vlgmr.msra.gmra.mrb[32].mxu1 %v8284_v19  ;;  %4671 = vmatprep.subr.bf16.mxu0 %v5948_v43  ;;  %v3690_v19 = vld [vmem:[#allocation7 + $0xf0] sm:$0xff] }
 0x29f   : > { %2961 = vmatprep.mubr.f32.mxu1 %v7080_v7  ;;  %v8286_v7 = vld [vmem:[#allocation27_spill] sm:$0xff] }
 0x2a2   : > { %2962 = vmatmul.mubr.f32.gmra.mrb[34].mxu1 %v7086_v62  ;;  %v4672_v62 = vpack.c.bf16 %v3667_v9, %v3666_v49 }
 0x2a3   : > { %2967 = vmatprep.mubr.f32.mxu1 %v8285_v10  ;;  %v3691_v10 = vld [vmem:[#allocation7 + $0xf8] sm:$0xff] }
 0x2a4   : > { %4673 = vmatpush1.bf16.msra.mxu0 %v4672_v62  ;;  %v4708_v32 = vpack.c.bf16 %v3691_v10, %v3690_v19  ;;  %v8297_v19 = vld [vmem:[#allocation43_spill] sm:$0xff] }
 0x2a5   : > { %4674 = vmatprep.subr.bf16.mxu0 %v5948_v43 }
 0x2a6   : > { %2968 = vmatmul.mubr.f32.gmra.mrb[36].mxu1 %v7097_v11  ;;  %v3668_v11 = vld [vmem:[#allocation7 + $0x40] sm:$0xff] }
 0x2a7   : > { %2973 = vmatprep.mubr.f32.mxu1 %v7100_v36  ;;  %v3669_v36 = vld [vmem:[#allocation7 + $0x48] sm:$0xff] }
 0x2aa   : > { %2974 = vmatmul.mubr.f32.gmra.mrb[38].mxu1 %v7107_v15  ;;  %v4675_v15 = vpack.c.bf16 %v3669_v36, %v3668_v11 }
 0x2ab   : > { %2979 = vmatprep.mubr.f32.mxu1 %v8286_v7  ;;  %v8290_v7 = vld [vmem:[#allocation31_spill] sm:$0xff] }
 0x2ac   : > { %4676 = vmatpush1.bf16.msra.mxu0 %v4675_v15 }
 0x2ad   : > { %4677 = vmatprep.subr.bf16.mxu0 %v5948_v43 }
 0x2ae   : > { %2980 = vmatmul.mubr.f32.gmra.mrb[40].mxu1 %v7117_v2  ;;  %v3670_v2 = vld [vmem:[#allocation7 + $0x50] sm:$0xff] }
 0x2af   : > { %2985 = vmatprep.mubr.f32.mxu1 %v7120_v1  ;;  %v3671_v1 = vld [vmem:[#allocation7 + $0x58] sm:$0xff] }
 0x2b2   : > { %2986 = vmatmul.mubr.f32.gmra.mrb[42].mxu1 %v7127_v51  ;;  %v4678_v51 = vpack.c.bf16 %v3671_v1, %v3670_v2  ;;  %v1072_v2 = vlaneseq }
 0x2b3   : > { %2991 = vmatprep.mubr.f32.mxu1 %v7130_v61  ;;  %v3672_v61 = vld [vmem:[#allocation7 + $0x60] sm:$0xff] }
 0x2b4   : > { %4679 = vmatpush1.bf16.msra.mxu0 %v4678_v51 }
 0x2b5   : > { %4680 = vmatprep.subr.bf16.mxu0 %v5948_v43 }
 0x2b6   : > { %2992 = vmatmul.mubr.f32.gmra.mrb[44].mxu1 %v7137_v0  ;;  %v3673_v0 = vld [vmem:[#allocation7 + $0x68] sm:$0xff] }
 0x2b7   : > { %2997 = vmatprep.mubr.f32.mxu1 %v7140_v21  ;;  %v4681_v21 = vpack.c.bf16 %v3673_v0, %v3672_v61  ;;  %v7523_v61 = vshrl.u32 %v1072_v2, 7 }
 0x2b9   : > { %4682 = vmatpush1.bf16.msra.mxu0 %v4681_v21  ;;  %v1074_v21 = vsub.s32 0, %v7523_v61 }
 0x2ba   : > { %2998 = vmatmul.mubr.f32.gmra.mrb[46].mxu1 %v7147_v16  ;;  %4683 = vmatprep.subr.bf16.mxu0 %v5948_v43  ;;  %v3674_v16 = vld [vmem:[#allocation7 + $0x70] sm:$0xff] }
 0x2bb   : > { %3003 = vmatprep.mubr.f32.mxu1 %v7150_v39  ;;  %v3675_v39 = vld [vmem:[#allocation7 + $0x78] sm:$0xff] }
 0x2be   : > { %3004 = vmatmul.mubr.f32.gmra.mrb[48].mxu1 %v7157_v44  ;;  %v4684_v44 = vpack.c.bf16 %v3675_v39, %v3674_v16  ;;  %v7530_v16 = vld [vmem:[#allocation6] sm:$0xf] }
 0x2bf   : > { %3009 = vmatprep.mubr.f32.mxu1 %v7160_v23  ;;  %v3676_v23 = vld [vmem:[#allocation7 + $0x80] sm:$0xff] }
 0x2c0   : > { %4685 = vmatpush1.bf16.msra.mxu0 %v4684_v44 }
 0x2c1   : > { %4686 = vmatprep.subr.bf16.mxu0 %v5948_v43 }
 0x2c2   : > { %3010 = vmatmul.mubr.f32.gmra.mrb[50].mxu1 %v7167_v18  ;;  %v3677_v18 = vld [vmem:[#allocation7 + $0x88] sm:$0xff] }
 0x2c3   : > { %3015 = vmatprep.mubr.f32.mxu1 %v7170_v17  ;;  %v4687_v17 = vpack.c.bf16 %v3677_v18, %v3676_v23  ;;  %v7538_v23 = vrot.slane %v7530_v16, %v1074_v21  ;;  %v8299_v21 = vld [vmem:[#allocation45_spill] sm:$0xff] }
 0x2c5   : > { %4688 = vmatpush1.bf16.msra.mxu0 %v4687_v17 }
 0x2c6   : > { %3016 = vmatmul.mubr.f32.gmra.mrb[52].mxu1 %v7177_v4  ;;  %4689 = vmatprep.subr.bf16.mxu0 %v5948_v43  ;;  %v3678_v4 = vld [vmem:[#allocation7 + $0x90] sm:$0xff] }
 0x2c7   : > { %3021 = vmatprep.mubr.f32.mxu1 %v7180_v58  ;;  %v3679_v58 = vld [vmem:[#allocation7 + $0x98] sm:$0xff] }
 0x2ca   : > { %3022 = vmatmul.mubr.f32.gmra.mrb[54].mxu1 %v7187_v45  ;;  %v4690_v45 = vpack.c.bf16 %v3679_v58, %v3678_v4  ;;  %v8292_v58 = vld [vmem:[#allocation38_spill] sm:$0xff] }
 0x2cb   : > { %3027 = vmatprep.mubr.f32.mxu1 %v7190_v5  ;;  %v3680_v5 = vld [vmem:[#allocation7 + $0xa0] sm:$0xff] }
 0x2cc   : > { %4691 = vmatpush1.bf16.msra.mxu0 %v4690_v45  ;;  %v1255_v45 = vadd.f32 %v8292_v58, %v7538_v23 }
 0x2cd   : > { %4692 = vmatprep.subr.bf16.mxu0 %v5948_v43 }
 0x2ce   : > { %3028 = vmatmul.mubr.f32.gmra.mrb[56].mxu1 %v7197_v55  ;;  %v3681_v55 = vld [vmem:[#allocation7 + $0xa8] sm:$0xff] }
 0x2cf   : > { %3033 = vmatprep.mubr.f32.mxu1 %v7200_v33  ;;  %v4693_v33 = vpack.c.bf16 %v3681_v55, %v3680_v5  ;;  %v8293_v5 = vld [vmem:[#allocation39_spill] sm:$0xff] }
 0x2d1   : > { %4694 = vmatpush1.bf16.msra.mxu0 %v4693_v33 }
 0x2d2   : > { %3034 = vmatmul.mubr.f32.gmra.mrb[58].mxu1 %v7207_v22  ;;  %4695 = vmatprep.subr.bf16.mxu0 %v5948_v43  ;;  %v3682_v22 = vld [vmem:[#allocation7 + $0xb0] sm:$0xff] }
 0x2d3   : > { %3039 = vmatprep.mubr.f32.mxu1 %v7210_v35  ;;  %v3683_v35 = vld [vmem:[#allocation7 + $0xb8] sm:$0xff] }
 0x2d6   : > { %3040 = vmatmul.mubr.f32.gmra.mrb[60].mxu1 %v7217_v56  ;;  %v4696_v56 = vpack.c.bf16 %v3683_v35, %v3682_v22 }
 0x2d7   : > { %3045 = vmatprep.mubr.f32.mxu1 %v7220_v28 }
 0x2d8   : > { %4697 = vmatpush1.bf16.msra.mxu0 %v4696_v56 }
 0x2d9   : > { %4698 = vmatprep.subr.bf16.mxu0 %v5948_v43 }
 0x2da   : > { %3046 = vmatmul.mubr.f32.gmra.mrb[62].mxu1 %v7227_v24 }
 0x2db   : > { %3051 = vmatprep.mubr.f32.mxu1 %v7230_v52 }
 0x2de   : > { %3052 = vmatmul.mubr.f32.gmra.mrb[64].mxu1 %v7237_v12 }
 0x2df   : > { %3057 = vmatprep.mubr.f32.mxu1 %v7240_v59 }
 0x2e2   : > { %3058 = vmatmul.mubr.f32.gmra.mrb[66].mxu1 %v7247_v27 }
 0x2e3   : > { %3063 = vmatprep.mubr.f32.mxu1 %v7250_v25 }
 0x2e6   : > { %3064 = vmatmul.mubr.f32.gmra.mrb[68].mxu1 %v7257_v48 }
 0x2e7   : > { %3069 = vmatprep.mubr.f32.mxu1 %v7260_v34  ;;  %v3684_v34 = vld [vmem:[#allocation7 + $0xc0] sm:$0xff] }
 0x2ea   : > { %3070 = vmatmul.mubr.f32.gmra.mrb[70].mxu1 %v7267_v14  ;;  %v3685_v14 = vld [vmem:[#allocation7 + $0xc8] sm:$0xff] }
 0x2eb   : > { %3075 = vmatprep.mubr.f32.mxu1 %v7270_v63 }
 0x2ee   : > { %3076 = vmatmul.mubr.f32.gmra.mrb[72].mxu1 %v7277_v57  ;;  %v4699_v57 = vpack.c.bf16 %v3685_v14, %v3684_v34  ;;  %v8294_v34 = vld [vmem:[#allocation40_spill] sm:$0xff] }
 0x2ef   : > { %3081 = vmatprep.mubr.f32.mxu1 %v7280_v60  ;;  %v1261_v14 = vadd.f32 %v8294_v34, %v7538_v23  ;;  %v8300_v34 = vld [vmem:[#allocation46_spill] sm:$0xff] }
 0x2f0   : > { %4700 = vmatpush1.bf16.msra.mxu0 %v4699_v57  ;;  %v8295_v57 = vld [vmem:[#allocation41_spill] sm:$0xff] }
 0x2f1   : > { %v7446_v28 = vpop.f32.mrb[0].mxu0  ;;  %4701 = vmatprep.subr.bf16.mxu0 %v5948_v43 }
 0x2f2   : > { %v7449_v24 = vpop.f32.mrb[1].mxu0  ;;  %3082 = vmatmul.mubr.f32.gmra.mrb[74].mxu1 %v7287_v54  ;;  %v3686_v54 = vld [vmem:[#allocation7 + $0xd0] sm:$0xff] }
 0x2f3   : > { %3087 = vmatprep.mubr.f32.mxu1 %v7290_v6  ;;  %v3687_v6 = vld [vmem:[#allocation7 + $0xd8] sm:$0xff] }
 0x2f5   : > { %v7453_v52 = vpop.f32.mrb[2].mxu0 }
 0x2f6   : > { %v7455_v12 = vpop.f32.mrb[3].mxu0  ;;  %3088 = vmatmul.mubr.f32.gmra.mrb[76].mxu1 %v7297_v20 }
 0x2f7   : > { %3093 = vmatprep.mubr.f32.mxu1 %v7300_v42  ;;  %v4702_v42 = vpack.c.bf16 %v3687_v6, %v3686_v54 }
 0x2f9   : > { %v7459_v59 = vpop.f32.mrb[4].mxu0  ;;  %4703 = vmatpush1.bf16.msra.mxu0 %v4702_v42 }
 0x2fa   : > { %v7461_v27 = vpop.f32.mrb[5].mxu0  ;;  %3094 = vmatmul.mubr.f32.gmra.mrb[78].mxu1 %v7307_v50  ;;  %4704 = vmatprep.subr.bf16.mxu0 %v5948_v43 }
 0x2fb   : > { %3099 = vmatprep.mubr.f32.mxu1 %v7310_v30 }
 0x2fd   : > { %v7465_v25 = vpop.f32.mrb[6].mxu0 }
 0x2fe   : > { %v7467_v48 = vpop.f32.mrb[7].mxu0  ;;  %3100 = vmatmul.mubr.f32.gmra.mrb[80].mxu1 %v7317_v13 }
 0x2ff   : > { %3105 = vmatprep.mubr.f32.mxu1 %v7320_v41  ;;  %v3688_v41 = vld [vmem:[#allocation7 + $0xe0] sm:$0xff] }
 0x301   : > { %v7471_v63 = vpop.f32.mrb[8].mxu0 }
 0x302   : > { %v7473_v60 = vpop.f32.mrb[9].mxu0  ;;  %3106 = vmatmul.mubr.f32.gmra.mrb[82].mxu1 %v7327_v47  ;;  %v3689_v47 = vld [vmem:[#allocation7 + $0xe8] sm:$0xff] }
 0x303   : > { %3111 = vmatprep.mubr.f32.mxu1 %v7330_v3  ;;  %v4705_v3 = vpack.c.bf16 %v3689_v47, %v3688_v41 }
 0x305   : > { %v7478_v20 = vpop.f32.mrb[10].mxu0  ;;  %4706 = vmatpush1.bf16.msra.mxu0 %v4705_v3  ;;  %v8296_v3 = vld [vmem:[#allocation42_spill] sm:$0xff] }
 0x306   : > { %v7480_v50 = vpop.f32.mrb[11].mxu0  ;;  %3112 = vmatmul.mubr.f32.gmra.mrb[84].mxu1 %v7337_v37  ;;  %4707 = vmatprep.subr.bf16.mxu0 %v5948_v43  ;;  %v8291_v43 = vld [vmem:[#allocation32_spill] sm:$0xff] }
 0x307   : > { %3117 = vmatprep.mubr.f32.mxu1 %v7340_v46  ;;  %v8287_v46 = vld [vmem:[#allocation28_spill] sm:$0xff] }
 0x309   : > { %v7485_v30 = vpop.f32.mrb[12].mxu0  ;;  %4709 = vmatpush1.bf16.msra.mxu0 %v4708_v32 }
 0x30a   : > { %v7487_v13 = vpop.f32.mrb[13].mxu0  ;;  %3118 = vmatmul.mubr.f32.gmra.mrb[86].mxu1 %v7347_v31 }
 0x30b   : > { %3123 = vmatprep.mubr.f32.mxu1 %v7350_v26  ;;  %v8289_v26 = vld [vmem:[#allocation30_spill] sm:$0xff] }
 0x30d   : > { %v7491_v29 = vpop.f32.mrb[14].mxu0 }
 0x30e   : > { %v7493_v37 = vpop.f32.mrb[15].mxu0  ;;  %3124 = vmatmul.mubr.f32.gmra.mrb[88].mxu1 %v8287_v46  ;;  %v1267_v46 = vadd.f32 %v8296_v3, %v7538_v23  ;;  %v4746_v3 = vadd.f32 %v7459_v59, %v7538_v23 }
 0x30f   : > { %3129 = vmatprep.mubr.f32.mxu1 %v8288_v53 }
 0x311   : > { %v7498_v31 = vpop.f32.mrb[16].mxu0 }
 0x312   : > { %v7500_v38 = vpop.f32.mrb[17].mxu0  ;;  %3130 = vmatmul.mubr.f32.gmra.mrb[90].mxu1 %v8289_v26 }
 0x313   : > { %3135 = vmatprep.mubr.f32.mxu1 %v8290_v7 }
 0x315   : > { %v7504_v49 = vpop.f32.mrb[18].mxu0 }
 0x316   : > { %v7506_v9 = vpop.f32.mrb[19].mxu0  ;;  %3136 = vmatmul.mubr.f32.gmra.mrb[92].mxu1 %v7377_v8 }
 0x317   : > { %3141 = vmatprep.mubr.f32.mxu1 %v8291_v43  ;;  %v8298_v43 = vld [vmem:[#allocation44_spill] sm:$0xff] }
 0x318   : > { %v1273_v2 = vadd.f32 %v8298_v43, %v7538_v23 }
 0x319   : > { %v7510_v62 = vpop.f32.mrb[20].mxu0 }
 0x31a   : > { %v7512_v11 = vpop.f32.mrb[21].mxu0  ;;  %3142 = vmatmul.mubr.f32.gmra.mrb[94].mxu1 %v7387_v40  ;;  %v1078_v40 = vsub.s32 1, %v7523_v61 }
 0x31c   : > { %v7541_v18 = vrot.slane %v7530_v16, %v1078_v40 }
 0x31d   : > { %v7515_v36 = vpop.f32.mrb[22].mxu0 }
 0x31e   : > { %v7517_v15 = vpop.f32.mrb[23].mxu0  ;;  %v1257_v55 = vadd.f32 %v8293_v5, %v7541_v18  ;;  %v1263_v54 = vadd.f32 %v8295_v57, %v7541_v18  ;;  %v1269_v10 = vadd.f32 %v8297_v19, %v7541_v18  ;;  %v1275_v40 = vadd.f32 %v8299_v21, %v7541_v18 }
 0x31f   : > { %v4744_v57 = vadd.f32 %v7453_v52, %v7538_v23  ;;  %v4747_v19 = vadd.f32 %v7461_v27, %v7541_v18  ;;  %v8302_v52 = vld [vmem:[#allocation48_spill] sm:$0xff]  ;;  %v4749_v59 = vadd.f32 %v7467_v48, %v7541_v18  ;;  %v4750_v27 = vadd.f32 %v7471_v63, %v7538_v23 }
 0x320   : > { %v4752_v48 = vadd.f32 %v7478_v20, %v7538_v23  ;;  %v4753_v63 = vadd.f32 %v7480_v50, %v7541_v18  ;;  %v4756_v50 = vadd.f32 %v7491_v29, %v7538_v23 }
 0x321   : > { %v7519_v1 = vpop.f32.mrb[24].mxu0 }
 0x322   : > { %v7521_v51 = vpop.f32.mrb[25].mxu0 }
 0x325   : > { %v7525_v8 = vpop.f32.mrb[26].mxu0 }
 0x326   : > { %v7527_v0 = vpop.f32.mrb[27].mxu0 }
 0x329   : > { %v7533_v39 = vpop.f32.mrb[28].mxu0 }
 0x32a   : > { %v7535_v44 = vpop.f32.mrb[29].mxu0 }
 0x32d   : > { %v7543_v17 = vpop.f32.mrb[30].mxu0 }
 0x32e   : > { %v7545_v4 = vpop.f32.mrb[31].mxu0 }
 0x331   : > { %v2025_v33 = vpop.f32.mrb[32].mxu0 }
 0x332   : > { %v7551_v22 = vadd.f32 %v2025_v33, %v1255_v45  ;;  %v2027_v35 = vpop.f32.mrb[33].mxu0  ;;  %v4742_v45 = vadd.f32 %v7446_v28, %v7538_v23  ;;  %v4743_v33 = vadd.f32 %v7449_v24, %v7541_v18  ;;  %v4745_v28 = vadd.f32 %v7455_v12, %v7541_v18 }
 0x333   : > { %v7553_v56 = vadd.f32 %v2027_v35, %v1257_v55  ;;  %v4748_v12 = vadd.f32 %v7465_v25, %v7538_v23 }
 0x334   : > { %5341 = vtanh.f32 %v4742_v45  ;;  %v8304_v45 = vld [vmem:[#allocation50_spill] sm:$0xff] }
 0x335   : > { %v2031_v6 = vpop.f32.mrb[34].mxu0  ;;  %5343 = vtanh.f32 %v4743_v33  ;;  %v8305_v33 = vld [vmem:[#allocation51_spill] sm:$0xff] }
 0x336   : > { %v7559_v42 = vadd.f32 %v2031_v6, %v1261_v14  ;;  %v2033_v41 = vpop.f32.mrb[35].mxu0  ;;  %v1279_v14 = vadd.f32 %v8300_v34, %v7538_v23  ;;  %5345 = vtanh.f32 %v4744_v57  ;;  %v1293_v34 = vadd.f32 %v8305_v33, %v7541_v18 }
 0x337   : > { %v7561_v47 = vadd.f32 %v2033_v41, %v1263_v54  ;;  %v8301_v54 = vld [vmem:[#allocation47_spill] sm:$0xff]  ;;  %5347 = vtanh.f32 %v4745_v28 }
 0x338   : > { %v1281_v6 = vadd.f32 %v8301_v54, %v7541_v18  ;;  %5349 = vtanh.f32 %v4746_v3 }
 0x339   : > { %v2037_v53 = vpop.f32.mrb[36].mxu0  ;;  %5351 = vtanh.f32 %v4747_v19 }
 0x33a   : > { %v7567_v32 = vadd.f32 %v2037_v53, %v1267_v46  ;;  %v2039_v26 = vpop.f32.mrb[37].mxu0  ;;  %v1285_v53 = vadd.f32 %v8302_v52, %v7538_v23  ;;  %5353 = vtanh.f32 %v4748_v12  ;;  %v4758_v12 = vadd.f32 %v7498_v31, %v7538_v23 }
 0x33b   : > { %v7569_v7 = vadd.f32 %v2039_v26, %v1269_v10  ;;  %v8303_v26 = vld [vmem:[#allocation49_spill] sm:$0xff]  ;;  %5355 = vtanh.f32 %v4749_v59  ;;  %v4759_v59 = vadd.f32 %v7500_v38, %v7541_v18  ;;  %v4760_v31 = vadd.f32 %v7504_v49, %v7538_v23 }
 0x33c   : > { %v1287_v43 = vadd.f32 %v8303_v26, %v7541_v18  ;;  %5357 = vtanh.f32 %v4750_v27  ;;  %v4761_v38 = vadd.f32 %v7506_v9, %v7541_v18  ;;  %v8310_v9 = vld [vmem:[#allocation56_spill] sm:$0xff] }
 0x33d   : > { %v2043_v58 = vpop.f32.mrb[38].mxu0 }
 0x33e   : > { %v7577_v5 = vadd.f32 %v2043_v58, %v1273_v2  ;;  %v2045_v55 = vpop.f32.mrb[39].mxu0  ;;  %v4751_v58 = vadd.f32 %v7473_v60, %v7541_v18  ;;  %v4754_v60 = vadd.f32 %v7485_v30, %v7538_v23  ;;  %v7631_v28 = vpop.eup %5341  ;;  %v8307_v30 = vld [vmem:[#allocation53_spill] sm:$0xff] }
 0x33f   : > { %v7581_v35 = vadd.f32 %v2045_v55, %v1275_v40  ;;  %v1291_v55 = vadd.f32 %v8304_v45, %v7538_v23  ;;  %v1299_v19 = vadd.f32 %v8307_v30, %v7541_v18  ;;  %v8309_v45 = vld [vmem:[#allocation55_spill] sm:$0xff] }
 0x340   : > { %5359 = vtanh.f32 %v4751_v58 }
 0x341   : > { %v2049_v41 = vpop.f32.mrb[40].mxu0  ;;  %5361 = vtanh.f32 %v4752_v48 }
 0x342   : > { %v7593_v24 = vadd.f32 %v2049_v41, %v1279_v14  ;;  %v2051_v46 = vpop.f32.mrb[41].mxu0  ;;  %v8306_v41 = vld [vmem:[#allocation52_spill] sm:$0xff]  ;;  %5363 = vtanh.f32 %v4753_v63 }
 0x343   : > { %v7597_v10 = vadd.f32 %v2051_v46, %v1281_v6  ;;  %v4755_v6 = vadd.f32 %v7487_v13, %v7541_v18  ;;  %v1297_v3 = vadd.f32 %v8306_v41, %v7538_v23  ;;  %v7637_v46 = vpop.eup %5343  ;;  %v4757_v13 = vadd.f32 %v7493_v37, %v7541_v18  ;;  %v8308_v37 = vld [vmem:[#allocation54_spill] sm:$0xff] }
 0x344   : > { %5365 = vtanh.f32 %v4754_v60  ;;  %v4763_v60 = vadd.f32 %v7512_v11, %v7541_v18  ;;  %v1309_v41 = vadd.f32 %v8310_v9, %v7538_v23  ;;  %v4765_v11 = vadd.f32 %v7517_v15, %v7541_v18  ;;  %v8312_v15 = vld [vmem:[#allocation58_spill] sm:$0xff] }
 0x345   : > { %v2055_v2 = vpop.f32.mrb[42].mxu0  ;;  %5367 = vtanh.f32 %v4755_v6 }
 0x346   : > { %v7609_v21 = vadd.f32 %v2055_v2, %v1285_v53  ;;  %v2057_v40 = vpop.f32.mrb[43].mxu0  ;;  %v7643_v53 = vpop.eup %5345  ;;  %5369 = vtanh.f32 %v4756_v50  ;;  %v8311_v50 = vld [vmem:[#allocation57_spill] sm:$0xff] }
 0x347   : > { %v7613_v25 = vadd.f32 %v2057_v40, %v1287_v43  ;;  %v7649_v29 = vpop.eup %5347  ;;  %v1303_v40 = vadd.f32 %v8308_v37, %v7538_v23  ;;  %5371 = vtanh.f32 %v4757_v13  ;;  %v1311_v30 = vadd.f32 %v8311_v50, %v7541_v18 }
 0x348   : > { %v7655_v27 = vpop.eup %5349  ;;  %5373 = vtanh.f32 %v4758_v12 }
 0x349   : > { %v2061_v14 = vpop.f32.mrb[44].mxu0  ;;  %v7661_v58 = vpop.eup %5351  ;;  %5375 = vtanh.f32 %v4759_v59  ;;  %v4767_v59 = vadd.f32 %v7521_v51, %v7541_v18  ;;  %v4769_v51 = vadd.f32 %v7527_v0, %v7541_v18  ;;  %v8314_v0 = vld [vmem:[#allocation60_spill] sm:$0xff] }
 0x34a   : > { %v7625_v57 = vadd.f32 %v2061_v14, %v1291_v55  ;;  %v2063_v54 = vpop.f32.mrb[45].mxu0  ;;  %v1305_v55 = vadd.f32 %v8309_v45, %v7541_v18  ;;  %v7667_v33 = vpop.eup %5353  ;;  %5377 = vtanh.f32 %v4760_v31  ;;  %v1315_v31 = vadd.f32 %v8312_v15, %v7538_v23 }
 0x34b   : > { %v7629_v20 = vadd.f32 %v2063_v54, %v1293_v34  ;;  %v4762_v34 = vadd.f32 %v7510_v62, %v7538_v23  ;;  %v7673_v49 = vpop.eup %5355  ;;  %v4764_v62 = vadd.f32 %v7515_v36, %v7538_v23  ;;  %5379 = vtanh.f32 %v4761_v38 }
 0x34c   : > { %v7679_v6 = vpop.eup %5357 }
 0x34d   : > { %v2067_v52 = vpop.f32.mrb[46].mxu0  ;;  %5381 = vtanh.f32 %v4762_v34 }
 0x34e   : > { %v7647_v26 = vadd.f32 %v2067_v52, %v1297_v3  ;;  %v2069_v43 = vpop.f32.mrb[47].mxu0  ;;  %v7685_v3 = vpop.eup %5359  ;;  %v4766_v52 = vadd.f32 %v7519_v1, %v7538_v23  ;;  %5383 = vtanh.f32 %v4763_v60  ;;  %v4768_v1 = vadd.f32 %v7525_v8, %v7538_v23 }
 0x34f   : > { %v7653_v2 = vadd.f32 %v2069_v43, %v1299_v19  ;;  %v7691_v13 = vpop.eup %5361  ;;  %5385 = vtanh.f32 %v4764_v62 }
 0x350   : > { %v7697_v36 = vpop.eup %5363  ;;  %5387 = vtanh.f32 %v4765_v11 }
 0x351   : > { %v2073_v48 = vpop.f32.mrb[48].mxu0  ;;  %5389 = vtanh.f32 %v4766_v52 }
 0x352   : > { %v7671_v63 = vadd.f32 %v2073_v48, %v1303_v40  ;;  %v2075_v14 = vpop.f32.mrb[49].mxu0  ;;  %v7703_v40 = vpop.eup %5365  ;;  %5391 = vtanh.f32 %v4767_v59 }
 0x353   : > { %v7677_v54 = vadd.f32 %v2075_v14, %v1305_v55  ;;  %v7709_v45 = vpop.eup %5367  ;;  %v8313_v55 = vld [vmem:[#allocation59_spill] sm:$0xff]  ;;  %v4770_v14 = vadd.f32 %v7533_v39, %v7538_v23  ;;  %5393 = vtanh.f32 %v4768_v1  ;;  %v4772_v39 = vadd.f32 %v7543_v17, %v7538_v23 }
 0x354   : > { %v1317_v38 = vadd.f32 %v8313_v55, %v7541_v18  ;;  %v7715_v34 = vpop.eup %5369  ;;  %5395 = vtanh.f32 %v4769_v51 }
 0x355   : > { %v2079_v19 = vpop.f32.mrb[50].mxu0  ;;  %v7721_v8 = vpop.eup %5371  ;;  %5397 = vtanh.f32 %v4770_v14 }
 0x356   : > { %v7695_v12 = vadd.f32 %v2079_v19, %v1309_v41  ;;  %v2081_v43 = vpop.f32.mrb[51].mxu0  ;;  %v4771_v41 = vadd.f32 %v7535_v44, %v7541_v18  ;;  %v7727_v50 = vpop.eup %5373  ;;  %v8315_v19 = vld [vmem:[#allocation61_spill] sm:$0xff]  ;;  %v4773_v44 = vadd.f32 %v7545_v4, %v7541_v18  ;;  %v8317_v4 = vld [vmem:[#allocation63_spill] sm:$0xff] }
 0x357   : > { %v7701_v37 = vadd.f32 %v2081_v43, %v1311_v30  ;;  %v1321_v30 = vadd.f32 %v8314_v0, %v7538_v23  ;;  %v7733_v11 = vpop.eup %5375  ;;  %v1323_v52 = vadd.f32 %v8315_v19, %v7541_v18 }
 0x358   : > { %v7739_v59 = vpop.eup %5377  ;;  %5399 = vtanh.f32 %v4771_v41 }
 0x359   : > { %v2085_v48 = vpop.f32.mrb[52].mxu0  ;;  %v7743_v1 = vpop.eup %5379  ;;  %5401 = vtanh.f32 %v4772_v39 }
 0x35a   : > { %v7719_v60 = vadd.f32 %v2085_v48, %v1315_v31  ;;  %v2087_v9 = vpop.f32.mrb[53].mxu0  ;;  %v7747_v55 = vpop.eup %5381  ;;  %5403 = vtanh.f32 %v4773_v44 }
 0x35b   : > { %v7725_v62 = vadd.f32 %v2087_v9, %v1317_v38  ;;  %v8316_v38 = vld [vmem:[#allocation62_spill] sm:$0xff]  ;;  %v7751_v48 = vpop.eup %5383  ;;  %v1329_v9 = vadd.f32 %v8317_v4, %v7541_v18  ;;  %5405 = vtanh.f32 %v7551_v22  ;;  %v8319_v22 = vld [vmem:[#allocation65_spill] sm:$0xff] }
 0x35c   : > { %v1327_v51 = vadd.f32 %v8316_v38, %v7538_v23  ;;  %v7755_v0 = vpop.eup %5385  ;;  %5407 = vtanh.f32 %v7553_v56  ;;  %v1335_v38 = vadd.f32 %v8319_v22, %v7541_v18 }
 0x35d   : > { %v2091_v43 = vpop.f32.mrb[54].mxu0  ;;  %v7760_v19 = vpop.eup %5387  ;;  %5409 = vtanh.f32 %v7559_v42 }
 0x35e   : > { %v7741_v15 = vadd.f32 %v2091_v43, %v1321_v30  ;;  %v2093_v31 = vpop.f32.mrb[55].mxu0  ;;  %v7765_v39 = vpop.eup %5389  ;;  %v8318_v43 = vld [vmem:[#allocation64_spill] sm:$0xff]  ;;  %5411 = vtanh.f32 %v7561_v47 }
 0x35f   : > { %v7745_v17 = vadd.f32 %v2093_v31, %v1323_v52  ;;  %v1333_v31 = vadd.f32 %v8318_v43, %v7538_v23  ;;  %v7770_v44 = vpop.eup %5391  ;;  %5413 = vtanh.f32 %v7567_v32  ;;  %v8322_v43 = vld [vmem:[#allocation66_spill] sm:$0xff]  ;;  %v8323_v32 = vld [vmem:[#allocation67_spill] sm:$0xff] }
 0x360   : > { %v7775_v4 = vpop.eup %5393  ;;  %5415 = vtanh.f32 %v7569_v7  ;;  %v1339_v22 = vadd.f32 %v8322_v43, %v7538_v23 }
 0x361   : > { %v2097_v14 = vpop.f32.mrb[56].mxu0  ;;  %5417 = vtanh.f32 %v7577_v5 }
 0x362   : > { %v7758_v41 = vadd.f32 %v2097_v14, %v1327_v51  ;;  %v2099_v30 = vpop.f32.mrb[57].mxu0  ;;  %v7780_v14 = vpop.eup %5395  ;;  %5419 = vtanh.f32 %v7581_v35  ;;  %v8327_v35 = vld [vmem:[#allocation68_spill] sm:$0xff] }
 0x363   : > { %v7763_v52 = vadd.f32 %v2099_v30, %v1329_v9  ;;  %8320 = vst [vmem:[#allocation33_spill] sm:$0xff] %v7780_v14  ;;  %v7785_v30 = vpop.eup %5397  ;;  %5421 = vtanh.f32 %v7593_v24 }
 0x364   : > { %v7790_v47 = vpop.eup %5399  ;;  %5423 = vtanh.f32 %v7597_v10 }
 0x365   : > { %v2103_v51 = vpop.f32.mrb[58].mxu0  ;;  %v7795_v14 = vpop.eup %5401  ;;  %5425 = vtanh.f32 %v7609_v21 }
 0x366   : > { %v7778_v56 = vadd.f32 %v2103_v51, %v1333_v31  ;;  %v2105_v9 = vpop.f32.mrb[59].mxu0  ;;  %v1341_v31 = vadd.f32 %v8323_v32, %v7541_v18  ;;  %8324 = vst [vmem:[#allocation35_spill] sm:$0xff] %v7795_v14  ;;  %v7801_v43 = vpop.eup %5403  ;;  %v1086_v32 = vsub.s32 3, %v7523_v61  ;;  %v1345_v14 = vadd.f32 %v8327_v35, %v7538_v23 }
 0x367   : > { %v7783_v42 = vadd.f32 %v2105_v9, %v1335_v38  ;;  %v1082_v9 = vsub.s32 2, %v7523_v61  ;;  %5427 = vtanh.f32 %v7613_v25 }
 0x368   : > { %5429 = vtanh.f32 %v7625_v57 }
 0x369   : > { %8321 = vst [vmem:[#allocation34_spill] sm:$0xff] %v7783_v42  ;;  %v2109_v51 = vpop.f32.mrb[60].mxu0  ;;  %v7807_v42 = vpop.eup %5405  ;;  %5431 = vtanh.f32 %v7629_v20 }
 0x36a   : > { %v7798_v7 = vadd.f32 %v2109_v51, %v1339_v22  ;;  %v2111_v38 = vpop.f32.mrb[61].mxu0  ;;  %v7812_v24 = vpop.eup %5407  ;;  %v8328_v22 = vld [vmem:[#allocation69_spill] sm:$0xff]  ;;  %5433 = vtanh.f32 %v7647_v26 }
 0x36b   : > { %v7804_v5 = vadd.f32 %v2111_v38, %v1341_v31  ;;  %v1347_v51 = vadd.f32 %v8328_v22, %v7541_v18  ;;  %v7817_v10 = vpop.eup %5409  ;;  %v7823_v38 = vrot.slane %v7530_v16, %v1082_v9  ;;  %v7831_v18 = vrot.slane %v7530_v16, %v1086_v32 }
 0x36c   : > { %8325 = vst [vmem:[#allocation36_spill] sm:$0xff] %v7798_v7  ;;  %v7825_v23 = vpop.eup %5411  ;;  %5435 = vtanh.f32 %v7653_v2 }
 0x36d   : > { %8326 = vst [vmem:[#allocation37_spill] sm:$0xff] %v7804_v5  ;;  %v2115_v7 = vpop.f32.mrb[62].mxu0  ;;  %v7833_v25 = vpop.eup %5413  ;;  %5437 = vtanh.f32 %v7671_v63 }
 0x36e   : > { %v7820_v61 = vadd.f32 %v2115_v7, %v1345_v14  ;;  %v2117_v31 = vpop.f32.mrb[63].mxu0  ;;  %v7836_v57 = vpop.eup %5415  ;;  %5439 = vtanh.f32 %v7677_v54 }
 0x36f   : > { %v7828_v21 = vadd.f32 %v2117_v31, %v1347_v51  ;;  %v7839_v7 = vpop.eup %5417  ;;  %5441 = vtanh.f32 %v7695_v12 }
 0x370   : > { %8329 = vst [vmem:[#allocation13_spill] sm:$0xff] %v7820_v61  ;;  %v7843_v35 = vpop.eup %5419  ;;  %5443 = vtanh.f32 %v7701_v37 }
 0x371   : > { %8330 = vst [vmem:[#allocation14_spill] sm:$0xff] %v7828_v21  ;;  %v2957_v14 = vpop.f32.mrb[32].mxu1  ;;  %v7847_v32 = vpop.eup %5421 }
 0x372   : > { %v4838_v20 = vadd.f32 %v2957_v14, %v7823_v38  ;;  %v2959_v9 = vpop.f32.mrb[33].mxu1  ;;  %v7850_v2 = vpop.eup %5423 }
 0x373   : > { %v4839_v16 = vadd.f32 %v2959_v9, %v7831_v18  ;;  %v7853_v51 = vpop.eup %5425 }
 0x374   : > { %v4081_v26 = vmul.f32 -1.442695, %v4838_v20  ;;  %v7856_v54 = vpop.eup %5427 }
 0x375   : > { %v4082_v22 = vmul.f32 -1.442695, %v4839_v16  ;;  %v2963_v63 = vpop.f32.mrb[34].mxu1  ;;  %v7859_v21 = vpop.eup %5429 }
 0x376   : > { %5445 = vpow2.f32 %v4081_v26  ;;  %v4840_v31 = vadd.f32 %v2963_v63, %v7823_v38  ;;  %v2965_v14 = vpop.f32.mrb[35].mxu1  ;;  %v7862_v20 = vpop.eup %5431 }
 0x377   : > { %5447 = vpow2.f32 %v4082_v22  ;;  %v4841_v9 = vadd.f32 %v2965_v14, %v7831_v18  ;;  %8331 = vst [vmem:[#allocation15_spill] sm:$0xff] %v7862_v20  ;;  %v7865_v26 = vpop.eup %5433 }
 0x378   : > { %5449 = vtanh.f32 %v7719_v60  ;;  %v4083_v12 = vmul.f32 -1.442695, %v4840_v31  ;;  %8332 = vst [vmem:[#allocation16_spill] sm:$0xff] %v7865_v26  ;;  %v7868_v22 = vpop.eup %5435 }
 0x379   : > { %5451 = vtanh.f32 %v7725_v62  ;;  %v4084_v37 = vmul.f32 -1.442695, %v4841_v9  ;;  %v2969_v16 = vpop.f32.mrb[36].mxu1  ;;  %8333 = vst [vmem:[#allocation17_spill] sm:$0xff] %v7868_v22  ;;  %v7871_v5 = vpop.eup %5437 }
 0x37a   : > { %5453 = vpow2.f32 %v4083_v12  ;;  %v4842_v63 = vadd.f32 %v2969_v16, %v7823_v38  ;;  %v2971_v61 = vpop.f32.mrb[37].mxu1  ;;  %8334 = vst [vmem:[#allocation18_spill] sm:$0xff] %v7871_v5  ;;  %v7874_v31 = vpop.eup %5439 }
 0x37b   : > { %5455 = vpow2.f32 %v4084_v37  ;;  %v4843_v14 = vadd.f32 %v2971_v61, %v7831_v18  ;;  %8335 = vst [vmem:[#allocation19_spill] sm:$0xff] %v7874_v31  ;;  %v7877_v12 = vpop.eup %5441 }
 0x37c   : > { %5457 = vtanh.f32 %v7741_v15  ;;  %v4085_v60 = vmul.f32 -1.442695, %v4842_v63  ;;  %8336 = vst [vmem:[#allocation20_spill] sm:$0xff] %v7877_v12  ;;  %v7880_v37 = vpop.eup %5443 }
 0x37d   : > { %5459 = vtanh.f32 %v7745_v17  ;;  %v4086_v62 = vmul.f32 -1.442695, %v4843_v14  ;;  %v2975_v9 = vpop.f32.mrb[38].mxu1  ;;  %8337 = vst [vmem:[#allocation21_spill] sm:$0xff] %v7880_v37 }
 0x37e   : > { %5461 = vpow2.f32 %v4085_v60  ;;  %v4844_v16 = vadd.f32 %v2975_v9, %v7823_v38  ;;  %v2977_v22 = vpop.f32.mrb[39].mxu1 }
 0x37f   : > { %5463 = vpow2.f32 %v4086_v62  ;;  %v4845_v61 = vadd.f32 %v2977_v22, %v7831_v18 }
 0x380   : > { %v5446_v5 = vpop.eup %5445  ;;  %5465 = vtanh.f32 %v7758_v41  ;;  %v4087_v15 = vmul.f32 -1.442695, %v4844_v16 }
 0x381   : > { %v5448_v63 = vpop.eup %5447  ;;  %5467 = vtanh.f32 %v7763_v52  ;;  %v3404_v17 = vadd.f32 1.0, %v5446_v5  ;;  %v4088_v14 = vmul.f32 -1.442695, %v4845_v61  ;;  %v2981_v31 = vpop.f32.mrb[40].mxu1 }
 0x382   : > { %v7885_v12 = vpop.eup %5449  ;;  %v3405_v60 = vadd.f32 1.0, %v5448_v63  ;;  %5469 = vpow2.f32 %v4087_v15  ;;  %v4846_v9 = vadd.f32 %v2981_v31, %v7823_v38  ;;  %v2983_v37 = vpop.f32.mrb[41].mxu1 }
 0x383   : > { %8338 = vst [vmem:[#allocation22_spill] sm:$0xff] %v7885_v12  ;;  %v7888_v62 = vpop.eup %5451  ;;  %5471 = vrcp.f32 %v3404_v17  ;;  %v4847_v22 = vadd.f32 %v2983_v37, %v7831_v18 }
 0x384   : > { %8339 = vst [vmem:[#allocation23_spill] sm:$0xff] %v7888_v62  ;;  %v5454_v41 = vpop.eup %5453  ;;  %5473 = vrcp.f32 %v3405_v60  ;;  %v4089_v16 = vmul.f32 -1.442695, %v4846_v9 }
 0x385   : > { %v5456_v26 = vpop.eup %5455  ;;  %v3406_v52 = vadd.f32 1.0, %v5454_v41  ;;  %5475 = vpow2.f32 %v4088_v14  ;;  %v4090_v5 = vmul.f32 -1.442695, %v4847_v22  ;;  %v2987_v61 = vpop.f32.mrb[42].mxu1 }
 0x386   : > { %v7891_v20 = vpop.eup %5457  ;;  %v3407_v63 = vadd.f32 1.0, %v5456_v26  ;;  %5477 = vpow2.f32 %v4089_v16  ;;  %v4848_v31 = vadd.f32 %v2987_v61, %v7823_v38  ;;  %v2989_v15 = vpop.f32.mrb[43].mxu1 }
 0x387   : > { %8340 = vst [vmem:[#allocation24_spill] sm:$0xff] %v7891_v20  ;;  %v7894_v12 = vpop.eup %5459  ;;  %5479 = vrcp.f32 %v3406_v52  ;;  %v4849_v37 = vadd.f32 %v2989_v15, %v7831_v18 }
 0x388   : > { %8341 = vst [vmem:[#allocation25_spill] sm:$0xff] %v7894_v12  ;;  %v5462_v17 = vpop.eup %5461  ;;  %5481 = vrcp.f32 %v3407_v63  ;;  %v4091_v60 = vmul.f32 -1.442695, %v4848_v31 }
 0x389   : > { %v5464_v9 = vpop.eup %5463  ;;  %v3408_v41 = vadd.f32 1.0, %v5462_v17  ;;  %5483 = vpow2.f32 %v4090_v5  ;;  %v4092_v14 = vmul.f32 -1.442695, %v4849_v37  ;;  %v2993_v22 = vpop.f32.mrb[44].mxu1 }
 0x38a   : > { %v7897_v62 = vpop.eup %5465  ;;  %v3409_v26 = vadd.f32 1.0, %v5464_v9  ;;  %5485 = vpow2.f32 %v4091_v60  ;;  %v4850_v16 = vadd.f32 %v2993_v22, %v7823_v38  ;;  %v2995_v61 = vpop.f32.mrb[45].mxu1 }
 0x38b   : > { %8342 = vst [vmem:[#allocation26_spill] sm:$0xff] %v7897_v62  ;;  %v7900_v20 = vpop.eup %5467  ;;  %5487 = vrcp.f32 %v3408_v41  ;;  %v4851_v52 = vadd.f32 %v2995_v61, %v7831_v18 }
 0x38c   : > { %8343 = vst [vmem:[#allocation27_spill] sm:$0xff] %v7900_v20  ;;  %v5470_v15 = vpop.eup %5469  ;;  %5489 = vrcp.f32 %v3409_v26  ;;  %v4093_v63 = vmul.f32 -1.442695, %v4850_v16 }
 0x38d   : > { %v5472_v31 = vpop.eup %5471  ;;  %v3410_v17 = vadd.f32 1.0, %v5470_v15  ;;  %5491 = vpow2.f32 %v4092_v14  ;;  %v4094_v5 = vmul.f32 -1.442695, %v4851_v52  ;;  %v2999_v37 = vpop.f32.mrb[46].mxu1 }
 0x38e   : > { %v5474_v12 = vpop.eup %5473  ;;  %5493 = vpow2.f32 %v4093_v63  ;;  %v4852_v60 = vadd.f32 %v2999_v37, %v7823_v38  ;;  %v3001_v9 = vpop.f32.mrb[47].mxu1  ;;  %v3596_v22 = vmul.f32 %v5472_v31, %v7631_v28 }
 0x38f   : > { %v5476_v62 = vpop.eup %5475  ;;  %5495 = vrcp.f32 %v3410_v17  ;;  %v4853_v41 = vadd.f32 %v3001_v9, %v7831_v18  ;;  %v3597_v61 = vmul.f32 %v5474_v12, %v7637_v46 }
 0x390   : > { %v5478_v26 = vpop.eup %5477  ;;  %v3411_v16 = vadd.f32 1.0, %v5476_v62  ;;  %5497 = vpow2.f32 %v4094_v5  ;;  %v4095_v15 = vmul.f32 -1.442695, %v4852_v60 }
 0x391   : > { %v5480_v14 = vpop.eup %5479  ;;  %5499 = vtanh.f32 %v7778_v56  ;;  %v3412_v52 = vadd.f32 1.0, %v5478_v26  ;;  %v4096_v63 = vmul.f32 -1.442695, %v4853_v41  ;;  %v3005_v20 = vpop.f32.mrb[48].mxu1  ;;  %3763 = vmatprep.mubr.f32.mxu0 %v3597_v61 }
 0x392   : > { %v5482_v37 = vpop.eup %5481  ;;  %5501 = vrcp.f32 %v3411_v16  ;;  %v4854_v28 = vadd.f32 %v3005_v20, %v7823_v38  ;;  %v3007_v31 = vpop.f32.mrb[49].mxu1  ;;  %3764 = vmatmul.mubr.f32.vlgmr.msra.gmra.mrb[64].mxu0 %v3596_v22  ;;  %v3598_v17 = vmul.f32 %v5480_v14, %v7643_v53 }
 0x393   : > { %v5484_v46 = vpop.eup %5483  ;;  %5503 = vrcp.f32 %v3412_v52  ;;  %v4855_v12 = vadd.f32 %v3007_v31, %v7831_v18  ;;  %v3599_v62 = vmul.f32 %v5482_v37, %v7649_v29 }
 0x394   : > { %v5486_v5 = vpop.eup %5485  ;;  %v3413_v56 = vadd.f32 1.0, %v5484_v46  ;;  %5505 = vpow2.f32 %v4095_v15  ;;  %v4097_v60 = vmul.f32 -1.442695, %v4854_v28 }
 0x395   : > { %v5488_v9 = vpop.eup %5487  ;;  %v3414_v41 = vadd.f32 1.0, %v5486_v5  ;;  %5507 = vpow2.f32 %v4096_v63  ;;  %v4098_v61 = vmul.f32 -1.442695, %v4855_v12  ;;  %v3011_v26 = vpop.f32.mrb[50].mxu1  ;;  %3768 = vmatprep.mubr.f32.mxu0 %v3599_v62 }
 0x396   : > { %v5490_v20 = vpop.eup %5489  ;;  %5509 = vrcp.f32 %v3413_v56  ;;  %v4856_v53 = vadd.f32 %v3011_v26, %v7823_v38  ;;  %v3013_v22 = vpop.f32.mrb[51].mxu1  ;;  %3769 = vmatmul.mubr.f32.gmra.mrb[66].mxu0 %v3598_v17  ;;  %v3600_v16 = vmul.f32 %v5488_v9, %v7655_v27 }
 0x397   : > { %v5492_v14 = vpop.eup %5491  ;;  %5511 = vrcp.f32 %v3414_v41  ;;  %v4857_v29 = vadd.f32 %v3013_v22, %v7831_v18  ;;  %v3601_v15 = vmul.f32 %v5490_v20, %v7661_v58 }
 0x398   : > { %v5494_v52 = vpop.eup %5493  ;;  %v3415_v37 = vadd.f32 1.0, %v5492_v14  ;;  %5513 = vpow2.f32 %v4097_v60  ;;  %v4099_v63 = vmul.f32 -1.442695, %v4856_v53 }
 0x399   : > { %v5496_v28 = vpop.eup %5495  ;;  %v3416_v31 = vadd.f32 1.0, %v5494_v52  ;;  %5515 = vpow2.f32 %v4098_v61  ;;  %v3017_v46 = vpop.f32.mrb[52].mxu1  ;;  %3773 = vmatprep.mubr.f32.mxu0 %v3601_v15  ;;  %v4100_v17 = vmul.f32 -1.442695, %v4857_v29 }
 0x39a   : > { %v5498_v12 = vpop.eup %5497  ;;  %5517 = vrcp.f32 %v3415_v37  ;;  %v4858_v27 = vadd.f32 %v3017_v46, %v7823_v38  ;;  %v3019_v62 = vpop.f32.mrb[53].mxu1  ;;  %3774 = vmatmul.mubr.f32.gmra.mrb[68].mxu0 %v3600_v16  ;;  %v3602_v5 = vmul.f32 %v5496_v28, %v7667_v33 }
 0x39b   : > { %v7918_v56 = vpop.eup %5499  ;;  %5519 = vrcp.f32 %v3416_v31  ;;  %v3417_v58 = vadd.f32 1.0, %v5498_v12  ;;  %v4859_v60 = vadd.f32 %v3019_v62, %v7831_v18 }
 0x39c   : > { %v5502_v9 = vpop.eup %5501  ;;  %5521 = vpow2.f32 %v4099_v63  ;;  %v4101_v41 = vmul.f32 -1.442695, %v4858_v27 }
 0x39d   : > { %v5504_v61 = vpop.eup %5503  ;;  %5523 = vrcp.f32 %v3417_v58  ;;  %v4102_v26 = vmul.f32 -1.442695, %v4859_v60  ;;  %v3023_v20 = vpop.f32.mrb[54].mxu1  ;;  %v3603_v53 = vmul.f32 %v5502_v9, %v7673_v49 }
 0x39e   : > { %v5506_v22 = vpop.eup %5505  ;;  %5525 = vpow2.f32 %v4100_v17  ;;  %v4860_v16 = vadd.f32 %v3023_v20, %v7823_v38  ;;  %v3025_v33 = vpop.f32.mrb[55].mxu1  ;;  %v3604_v14 = vmul.f32 %v5504_v61, %v7679_v6 }
 0x39f   : > { %v5508_v29 = vpop.eup %5507  ;;  %v3418_v15 = vadd.f32 1.0, %v5506_v22  ;;  %5527 = vpow2.f32 %v4101_v41  ;;  %3778 = vmatprep.mubr.f32.mxu0 %v3603_v53  ;;  %v4861_v52 = vadd.f32 %v3025_v33, %v7831_v18 }
 0x3a0   : > { %v5510_v37 = vpop.eup %5509  ;;  %v3419_v63 = vadd.f32 1.0, %v5508_v29  ;;  %5529 = vpow2.f32 %v4102_v26  ;;  %v4103_v28 = vmul.f32 -1.442695, %v4860_v16  ;;  %3779 = vmatmul.mubr.f32.gmra.mrb[70].mxu0 %v3602_v5 }
 0x3a1   : > { %v5512_v31 = vpop.eup %5511  ;;  %5531 = vrcp.f32 %v3418_v15  ;;  %v4104_v49 = vmul.f32 -1.442695, %v4861_v52  ;;  %v3029_v46 = vpop.f32.mrb[56].mxu1  ;;  %v3605_v12 = vmul.f32 %v5510_v37, %v7685_v3 }
 0x3a2   : > { %v5514_v17 = vpop.eup %5513  ;;  %5533 = vrcp.f32 %v3419_v63  ;;  %v4862_v6 = vadd.f32 %v3029_v46, %v7823_v38  ;;  %v3031_v27 = vpop.f32.mrb[57].mxu1  ;;  %v3606_v62 = vmul.f32 %v5512_v31, %v7691_v13 }
 0x3a3   : > { %v5516_v58 = vpop.eup %5515  ;;  %v3420_v60 = vadd.f32 1.0, %v5514_v17  ;;  %5535 = vpow2.f32 %v4103_v28  ;;  %3783 = vmatprep.mubr.f32.mxu0 %v3605_v12  ;;  %v4863_v9 = vadd.f32 %v3031_v27, %v7831_v18 }
 0x3a4   : > { %v5518_v5 = vpop.eup %5517  ;;  %v3421_v41 = vadd.f32 1.0, %v5516_v58  ;;  %5537 = vpow2.f32 %v4104_v49  ;;  %v4105_v61 = vmul.f32 -1.442695, %v4862_v6  ;;  %3784 = vmatmul.mubr.f32.gmra.mrb[72].mxu0 %v3604_v14 }
 0x3a5   : > { %v5520_v26 = vpop.eup %5519  ;;  %5539 = vrcp.f32 %v3420_v60  ;;  %v4106_v3 = vmul.f32 -1.442695, %v4863_v9  ;;  %v3035_v20 = vpop.f32.mrb[58].mxu1  ;;  %v3607_v53 = vmul.f32 %v5518_v5, %v7697_v36 }
 0x3a6   : > { %v5522_v22 = vpop.eup %5521  ;;  %5541 = vrcp.f32 %v3421_v41  ;;  %v4864_v13 = vadd.f32 %v3035_v20, %v7823_v38  ;;  %v3037_v16 = vpop.f32.mrb[59].mxu1  ;;  %v3608_v33 = vmul.f32 %v5520_v26, %v7703_v40 }
 0x3a7   : > { %v5524_v29 = vpop.eup %5523  ;;  %v3422_v15 = vadd.f32 1.0, %v5522_v22  ;;  %5543 = vpow2.f32 %v4105_v61  ;;  %3788 = vmatprep.mubr.f32.mxu0 %v3607_v53  ;;  %v4865_v52 = vadd.f32 %v3037_v16, %v7831_v18 }
 0x3a8   : > { %v5526_v14 = vpop.eup %5525  ;;  %5545 = vpow2.f32 %v4106_v3  ;;  %v4107_v37 = vmul.f32 -1.442695, %v4864_v13  ;;  %3789 = vmatmul.mubr.f32.gmra.mrb[74].mxu0 %v3606_v62  ;;  %v3609_v63 = vmul.f32 %v5524_v29, %v7709_v45 }
 0x3a9   : > { %v5528_v36 = vpop.eup %5527  ;;  %5547 = vrcp.f32 %v3422_v15  ;;  %v3423_v28 = vadd.f32 1.0, %v5526_v14  ;;  %v3041_v31 = vpop.f32.mrb[60].mxu1  ;;  %v4108_v40 = vmul.f32 -1.442695, %v4865_v52 }
 0x3aa   : > { %v5530_v49 = vpop.eup %5529  ;;  %v3424_v46 = vadd.f32 1.0, %v5528_v36  ;;  %5549 = vpow2.f32 %v4107_v37  ;;  %v4866_v12 = vadd.f32 %v3041_v31, %v7823_v38  ;;  %3793 = vmatprep.mubr.f32.mxu0 %v3609_v63  ;;  %v3043_v17 = vpop.f32.mrb[61].mxu1 }
 0x3ab   : > { %v5532_v6 = vpop.eup %5531  ;;  %5551 = vrcp.f32 %v3423_v28  ;;  %v3425_v27 = vadd.f32 1.0, %v5530_v49  ;;  %v4867_v58 = vadd.f32 %v3043_v17, %v7831_v18 }
 0x3ac   : > { %v5534_v62 = vpop.eup %5533  ;;  %5553 = vrcp.f32 %v3424_v46  ;;  %v4109_v45 = vmul.f32 -1.442695, %v4866_v12  ;;  %3794 = vmatmul.mubr.f32.gmra.mrb[76].mxu0 %v3608_v33  ;;  %v3610_v60 = vmul.f32 %v5532_v6, %v7715_v34 }
 0x3ad   : > { %v5536_v9 = vpop.eup %5535  ;;  %5555 = vrcp.f32 %v3425_v27  ;;  %v3047_v5 = vpop.f32.mrb[62].mxu1  ;;  %v3611_v41 = vmul.f32 %v5534_v62, %v7721_v8  ;;  %v4110_v3 = vmul.f32 -1.442695, %v4867_v58 }
 0x3ae   : > { %v5538_v61 = vpop.eup %5537  ;;  %v3426_v26 = vadd.f32 1.0, %v5536_v9  ;;  %5557 = vpow2.f32 %v4108_v40  ;;  %v4868_v20 = vadd.f32 %v3047_v5, %v7823_v38  ;;  %v3049_v53 = vpop.f32.mrb[63].mxu1 }
 0x3af   : > { %v5540_v22 = vpop.eup %5539  ;;  %v3427_v13 = vadd.f32 1.0, %v5538_v61  ;;  %5559 = vpow2.f32 %v4109_v45  ;;  %3798 = vmatprep.mubr.f32.mxu0 %v3611_v41  ;;  %v4869_v16 = vadd.f32 %v3049_v53, %v7831_v18 }
 0x3b0   : > { %v5542_v33 = vpop.eup %5541  ;;  %5561 = vrcp.f32 %v3426_v26  ;;  %v4111_v34 = vmul.f32 -1.442695, %v4868_v20  ;;  %3799 = vmatmul.mubr.f32.gmra.mrb[78].mxu0 %v3610_v60  ;;  %v3612_v29 = vmul.f32 %v5540_v22, %v7727_v50 }
 0x3b1   : > { %v5544_v8 = vpop.eup %5543  ;;  %5563 = vrcp.f32 %v3427_v13  ;;  %v3053_v15 = vpop.f32.mrb[64].mxu1  ;;  %v3613_v52 = vmul.f32 %v5542_v33, %v7733_v11  ;;  %v4112_v63 = vmul.f32 -1.442695, %v4869_v16 }
 0x3b2   : > { %v5546_v14 = vpop.eup %5545  ;;  %v3428_v37 = vadd.f32 1.0, %v5544_v8  ;;  %5565 = vpow2.f32 %v4110_v3  ;;  %v4870_v36 = vadd.f32 %v3053_v15, %v7823_v38  ;;  %v3055_v28 = vpop.f32.mrb[65].mxu1 }
 0x3b3   : > { %v5548_v31 = vpop.eup %5547  ;;  %v3429_v49 = vadd.f32 1.0, %v5546_v14  ;;  %5567 = vpow2.f32 %v4111_v34  ;;  %3803 = vmatprep.mubr.f32.mxu0 %v3613_v52  ;;  %v4871_v46 = vadd.f32 %v3055_v28, %v7831_v18 }
 0x3b4   : > { %v5550_v40 = vpop.eup %5549  ;;  %5569 = vrcp.f32 %v3428_v37  ;;  %v4113_v50 = vmul.f32 -1.442695, %v4870_v36  ;;  %3804 = vmatmul.mubr.f32.gmra.mrb[80].mxu0 %v3612_v29  ;;  %v3614_v12 = vmul.f32 %v5548_v31, %v7739_v59 }
 0x3b5   : > { %v5552_v11 = vpop.eup %5551  ;;  %5571 = vrcp.f32 %v3429_v49  ;;  %v3430_v17 = vadd.f32 1.0, %v5550_v40  ;;  %v4114_v6 = vmul.f32 -1.442695, %v4871_v46  ;;  %v3059_v27 = vpop.f32.mrb[66].mxu1 }
 0x3b6   : > { %v5554_v58 = vpop.eup %5553  ;;  %5573 = vpow2.f32 %v4112_v63  ;;  %v4872_v62 = vadd.f32 %v3059_v27, %v7823_v38  ;;  %v3615_v45 = vmul.f32 %v5552_v11, %v7743_v1  ;;  %v3061_v60 = vpop.f32.mrb[67].mxu1 }
 0x3b7   : > { %v5556_v9 = vpop.eup %5555  ;;  %5575 = vrcp.f32 %v3430_v17  ;;  %v4873_v5 = vadd.f32 %v3061_v60, %v7831_v18  ;;  %v3616_v41 = vmul.f32 %v5554_v58, %v7747_v55 }
 0x3b8   : > { %v5558_v61 = vpop.eup %5557  ;;  %5577 = vpow2.f32 %v4113_v50  ;;  %v4115_v59 = vmul.f32 -1.442695, %v4872_v62  ;;  %3808 = vmatprep.mubr.f32.mxu0 %v3615_v45  ;;  %v3617_v26 = vmul.f32 %v5556_v9, %v7751_v48 }
 0x3b9   : > { %v5560_v3 = vpop.eup %5559  ;;  %v3431_v20 = vadd.f32 1.0, %v5558_v61  ;;  %5579 = vpow2.f32 %v4114_v6  ;;  %v4116_v53 = vmul.f32 -1.442695, %v4873_v5  ;;  %3809 = vmatmul.mubr.f32.gmra.mrb[82].mxu0 %v3614_v12  ;;  %v3065_v22 = vpop.f32.mrb[68].mxu1 }
 0x3ba   : > { %v5562_v1 = vpop.eup %5561  ;;  %v3432_v13 = vadd.f32 1.0, %v5560_v3  ;;  %5581 = vpow2.f32 %v4115_v59  ;;  %v4874_v16 = vadd.f32 %v3065_v22, %v7823_v38  ;;  %3813 = vmatprep.mubr.f32.mxu0 %v3617_v26  ;;  %v3067_v33 = vpop.f32.mrb[69].mxu1 }
 0x3bb   : > { %v5564_v55 = vpop.eup %5563  ;;  %5583 = vrcp.f32 %v3431_v20  ;;  %v4875_v34 = vadd.f32 %v3067_v33, %v7831_v18  ;;  %v3618_v29 = vmul.f32 %v5562_v1, %v7755_v0 }
 0x3bc   : > { %v5566_v48 = vpop.eup %5565  ;;  %5585 = vrcp.f32 %v3432_v13  ;;  %v4117_v8 = vmul.f32 -1.442695, %v4874_v16  ;;  %v3619_v15 = vmul.f32 %v5564_v55, %v7760_v19 }
 0x3bd   : > { %v5568_v52 = vpop.eup %5567  ;;  %v3433_v14 = vadd.f32 1.0, %v5566_v48  ;;  %5587 = vpow2.f32 %v4116_v53  ;;  %v4118_v37 = vmul.f32 -1.442695, %v4875_v34  ;;  %3814 = vmatmul.mubr.f32.gmra.mrb[84].mxu0 %v3616_v41  ;;  %v3071_v63 = vpop.f32.mrb[70].mxu1 }
 0x3be   : > { %v5570_v36 = vpop.eup %5569  ;;  %v3434_v28 = vadd.f32 1.0, %v5568_v52  ;;  %5589 = vpow2.f32 %v4117_v8  ;;  %v4876_v31 = vadd.f32 %v3071_v63, %v7823_v38  ;;  %3818 = vmatprep.mubr.f32.mxu0 %v3619_v15  ;;  %v3073_v49 = vpop.f32.mrb[71].mxu1 }
 0x3bf   : > { %v5572_v46 = vpop.eup %5571  ;;  %5591 = vrcp.f32 %v3433_v14  ;;  %v4877_v0 = vadd.f32 %v3073_v49, %v7831_v18  ;;  %v3620_v40 = vmul.f32 %v5570_v36, %v7765_v39  ;;  %v8345_v49 = vld [vmem:[#allocation35_spill] sm:$0xff] }
 0x3c0   : > { %v5574_v19 = vpop.eup %5573  ;;  %5593 = vrcp.f32 %v3434_v28  ;;  %v4119_v50 = vmul.f32 -1.442695, %v4876_v31  ;;  %v3621_v12 = vmul.f32 %v5572_v46, %v7770_v44 }
 0x3c1   : > { %v5576_v11 = vpop.eup %5575  ;;  %v3435_v17 = vadd.f32 1.0, %v5574_v19  ;;  %5595 = vpow2.f32 %v4118_v37  ;;  %v4120_v6 = vmul.f32 -1.442695, %v4877_v0  ;;  %3819 = vmatmul.mubr.f32.gmra.mrb[86].mxu0 %v3618_v29  ;;  %v3077_v27 = vpop.f32.mrb[72].mxu1 }
 0x3c2   : > { %v5578_v58 = vpop.eup %5577  ;;  %5597 = vpow2.f32 %v4119_v50  ;;  %v4878_v62 = vadd.f32 %v3077_v27, %v7823_v38  ;;  %3823 = vmatprep.mubr.f32.mxu0 %v3621_v12  ;;  %v3079_v45 = vpop.f32.mrb[73].mxu1  ;;  %v3622_v60 = vmul.f32 %v5576_v11, %v7775_v4  ;;  %v8344_v4 = vld [vmem:[#allocation33_spill] sm:$0xff] }
 0x3c3   : > { %v5580_v39 = vpop.eup %5579  ;;  %5599 = vrcp.f32 %v3435_v17  ;;  %v3436_v9 = vadd.f32 1.0, %v5578_v58  ;;  %v4879_v5 = vadd.f32 %v3079_v45, %v7831_v18 }
 0x3c4   : > { %v5582_v44 = vpop.eup %5581  ;;  %v3437_v41 = vadd.f32 1.0, %v5580_v39  ;;  %5601 = vpow2.f32 %v4120_v6  ;;  %v4121_v61 = vmul.f32 -1.442695, %v4878_v62 }
 0x3c5   : > { %v5584_v59 = vpop.eup %5583  ;;  %5603 = vrcp.f32 %v3436_v9  ;;  %v3438_v26 = vadd.f32 1.0, %v5582_v44  ;;  %v4122_v3 = vmul.f32 -1.442695, %v4879_v5  ;;  %3824 = vmatmul.mubr.f32.gmra.mrb[88].mxu0 %v3620_v40  ;;  %v3083_v20 = vpop.f32.mrb[74].mxu1 }
 0x3c6   : > { %v5586_v53 = vpop.eup %5585  ;;  %5605 = vrcp.f32 %v3437_v41  ;;  %v4880_v22 = vadd.f32 %v3083_v20, %v7823_v38  ;;  %v3623_v1 = vmul.f32 %v5584_v59, %v8344_v4  ;;  %v3085_v13 = vpop.f32.mrb[75].mxu1 }
 0x3c7   : > { %v5588_v16 = vpop.eup %5587  ;;  %5607 = vrcp.f32 %v3438_v26  ;;  %v4881_v33 = vadd.f32 %v3085_v13, %v7831_v18  ;;  %v3624_v55 = vmul.f32 %v5586_v53, %v7785_v30 }
 0x3c8   : > { %v5590_v34 = vpop.eup %5589  ;;  %v3439_v29 = vadd.f32 1.0, %v5588_v16  ;;  %5609 = vpow2.f32 %v4121_v61  ;;  %v4123_v48 = vmul.f32 -1.442695, %v4880_v22  ;;  %3828 = vmatprep.mubr.f32.mxu0 %v3623_v1 }
 0x3c9   : > { %v5592_v8 = vpop.eup %5591  ;;  %v3440_v15 = vadd.f32 1.0, %v5590_v34  ;;  %5611 = vpow2.f32 %v4122_v3  ;;  %v4124_v52 = vmul.f32 -1.442695, %v4881_v33  ;;  %3829 = vmatmul.mubr.f32.gmra.mrb[90].mxu0 %v3622_v60  ;;  %v3089_v14 = vpop.f32.mrb[76].mxu1 }
 0x3ca   : > { %v5594_v37 = vpop.eup %5593  ;;  %5613 = vrcp.f32 %v3439_v29  ;;  %v4882_v63 = vadd.f32 %v3089_v14, %v7823_v38  ;;  %v3625_v36 = vmul.f32 %v5592_v8, %v7790_v47  ;;  %v3091_v28 = vpop.f32.mrb[77].mxu1 }
 0x3cb   : > { %v5596_v31 = vpop.eup %5595  ;;  %5615 = vrcp.f32 %v3440_v15  ;;  %v4883_v30 = vadd.f32 %v3091_v28, %v7831_v18  ;;  %v3626_v46 = vmul.f32 %v5594_v37, %v8345_v49 }
 0x3cc   : > { %v5598_v0 = vpop.eup %5597  ;;  %v3441_v40 = vadd.f32 1.0, %v5596_v31  ;;  %5617 = vpow2.f32 %v4123_v48  ;;  %v4125_v19 = vmul.f32 -1.442695, %v4882_v63  ;;  %3833 = vmatprep.mubr.f32.mxu0 %v3625_v36 }
 0x3cd   : > { %v5600_v50 = vpop.eup %5599  ;;  %v3442_v12 = vadd.f32 1.0, %v5598_v0  ;;  %5619 = vpow2.f32 %v4124_v52  ;;  %3834 = vmatmul.mubr.f32.gmra.mrb[92].mxu0 %v3624_v55  ;;  %v3095_v11 = vpop.f32.mrb[78].mxu1  ;;  %v4126_v47 = vmul.f32 -1.442695, %v4883_v30 }
 0x3ce   : > { %v5602_v17 = vpop.eup %5601  ;;  %5621 = vrcp.f32 %v3441_v40  ;;  %v4884_v6 = vadd.f32 %v3095_v11, %v7823_v38  ;;  %v3627_v27 = vmul.f32 %v5600_v50, %v7801_v43  ;;  %v3097_v58 = vpop.f32.mrb[79].mxu1 }
 0x3cf   : > { %v5604_v62 = vpop.eup %5603  ;;  %5623 = vrcp.f32 %v3442_v12  ;;  %v3443_v45 = vadd.f32 1.0, %v5602_v17  ;;  %v4885_v60 = vadd.f32 %v3097_v58, %v7831_v18 }
 0x3d0   : > { %v5606_v39 = vpop.eup %5605  ;;  %5625 = vpow2.f32 %v4125_v19  ;;  %v4127_v9 = vmul.f32 -1.442695, %v4884_v6  ;;  %3838 = vmatprep.mubr.f32.mxu0 %v3627_v27  ;;  %v3628_v5 = vmul.f32 %v5604_v62, %v7807_v42 }
 0x3d1   : > { %v5608_v44 = vpop.eup %5607  ;;  %5627 = vrcp.f32 %v3443_v45  ;;  %v4128_v41 = vmul.f32 -1.442695, %v4885_v60  ;;  %3839 = vmatmul.mubr.f32.gmra.mrb[94].mxu0 %v3626_v46  ;;  %v3101_v61 = vpop.f32.mrb[80].mxu1  ;;  %v3629_v59 = vmul.f32 %v5606_v39, %v7812_v24 }
 0x3d2   : > { %v5610_v43 = vpop.eup %5609  ;;  %5629 = vpow2.f32 %v4126_v47  ;;  %v4886_v26 = vadd.f32 %v3101_v61, %v7823_v38  ;;  %v3103_v3 = vpop.f32.mrb[81].mxu1  ;;  %v3630_v20 = vmul.f32 %v5608_v44, %v7817_v10 }
 0x3d3   : > { %v5612_v53 = vpop.eup %5611  ;;  %v3444_v22 = vadd.f32 1.0, %v5610_v43  ;;  %5631 = vpow2.f32 %v4127_v9  ;;  %3843 = vmatprep.mubr.f32.mxu0 %v3629_v59  ;;  %v4887_v42 = vadd.f32 %v3103_v3, %v7831_v18 }
 0x3d4   : > { %v5614_v4 = vpop.eup %5613  ;;  %v3445_v1 = vadd.f32 1.0, %v5612_v53  ;;  %5633 = vpow2.f32 %v4128_v41  ;;  %v4129_v13 = vmul.f32 -1.442695, %v4886_v26 }
 0x3d5   : > { %v5616_v16 = vpop.eup %5615  ;;  %5635 = vrcp.f32 %v3444_v22  ;;  %v4130_v24 = vmul.f32 -1.442695, %v4887_v42  ;;  %3844 = vmatmul.mubr.f32.gmra.mrb[96].mxu0 %v3628_v5  ;;  %v3107_v33 = vpop.f32.mrb[82].mxu1  ;;  %v3631_v55 = vmul.f32 %v5614_v4, %v7825_v23 }
 0x3d6   : > { %v5618_v34 = vpop.eup %5617  ;;  %5637 = vrcp.f32 %v3445_v1  ;;  %v4888_v10 = vadd.f32 %v3107_v33, %v7823_v38  ;;  %v3109_v29 = vpop.f32.mrb[83].mxu1  ;;  %v3632_v48 = vmul.f32 %v5616_v16, %v7833_v25 }
 0x3d7   : > { %v5620_v8 = vpop.eup %5619  ;;  %v3446_v15 = vadd.f32 1.0, %v5618_v34  ;;  %5639 = vpow2.f32 %v4129_v13  ;;  %3848 = vmatprep.mubr.f32.mxu0 %v3631_v55  ;;  %v4889_v52 = vadd.f32 %v3109_v29, %v7831_v18 }
 0x3d8   : > { %v5622_v14 = vpop.eup %5621  ;;  %v3447_v37 = vadd.f32 1.0, %v5620_v8  ;;  %5641 = vpow2.f32 %v4130_v24  ;;  %v4131_v63 = vmul.f32 -1.442695, %v4888_v10 }
 0x3d9   : > { %v5624_v36 = vpop.eup %5623  ;;  %5643 = vrcp.f32 %v3446_v15  ;;  %v4132_v23 = vmul.f32 -1.442695, %v4889_v52  ;;  %3849 = vmatmul.mubr.f32.gmra.mrb[98].mxu0 %v3630_v20  ;;  %v3113_v28 = vpop.f32.mrb[84].mxu1  ;;  %v3633_v31 = vmul.f32 %v5622_v14, %v7836_v57 }
 0x3da   : > { %v5626_v30 = vpop.eup %5625  ;;  %5645 = vrcp.f32 %v3447_v37  ;;  %v4890_v25 = vadd.f32 %v3113_v28, %v7823_v38  ;;  %v3115_v49 = vpop.f32.mrb[85].mxu1  ;;  %v3634_v46 = vmul.f32 %v5624_v36, %v7839_v7  ;;  %v8346_v28 = vld [vmem:[#allocation15_spill] sm:$0xff] }
 0x3db   : > { %v5628_v0 = vpop.eup %5627  ;;  %v3448_v40 = vadd.f32 1.0, %v5626_v30  ;;  %5647 = vpow2.f32 %v4131_v63  ;;  %3853 = vmatprep.mubr.f32.mxu0 %v3633_v31  ;;  %v4891_v19 = vadd.f32 %v3115_v49, %v7831_v18 }
 0x3dc   : > { %v5630_v50 = vpop.eup %5629  ;;  %5649 = vpow2.f32 %v4132_v23  ;;  %v4133_v12 = vmul.f32 -1.442695, %v4890_v25  ;;  %v3635_v11 = vmul.f32 %v5628_v0, %v7843_v35 }
 0x3dd   : > { %v5632_v17 = vpop.eup %5631  ;;  %5651 = vrcp.f32 %v3448_v40  ;;  %v3449_v57 = vadd.f32 1.0, %v5630_v50  ;;  %3854 = vmatmul.mubr.f32.gmra.mrb[100].mxu0 %v3632_v48  ;;  %v3119_v47 = vpop.f32.mrb[86].mxu1  ;;  %v4134_v7 = vmul.f32 -1.442695, %v4891_v19  ;;  %v8348_v19 = vld [vmem:[#allocation17_spill] sm:$0xff] }
 0x3de   : > { %v5634_v6 = vpop.eup %5633  ;;  %v3450_v27 = vadd.f32 1.0, %v5632_v17  ;;  %5653 = vpow2.f32 %v4133_v12  ;;  %v4892_v58 = vadd.f32 %v3119_v47, %v7823_v38  ;;  %3858 = vmatprep.mubr.f32.mxu0 %v3635_v11  ;;  %v3121_v62 = vpop.f32.mrb[87].mxu1 }
 0x3df   : > { %v5636_v45 = vpop.eup %5635  ;;  %5655 = vrcp.f32 %v3449_v57  ;;  %v3451_v60 = vadd.f32 1.0, %v5634_v6  ;;  %v4893_v39 = vadd.f32 %v3121_v62, %v7831_v18 }
 0x3e0   : > { %v5638_v9 = vpop.eup %5637  ;;  %5657 = vrcp.f32 %v3450_v27  ;;  %v4135_v35 = vmul.f32 -1.442695, %v4892_v58  ;;  %v3636_v5 = vmul.f32 %v5636_v45, %v7847_v32  ;;  %v8349_v45 = vld [vmem:[#allocation18_spill] sm:$0xff] }
 0x3e1   : > { %v5640_v44 = vpop.eup %5639  ;;  %5659 = vrcp.f32 %v3451_v60  ;;  %3859 = vmatmul.mubr.f32.gmra.mrb[102].mxu0 %v3634_v46  ;;  %v3125_v41 = vpop.f32.mrb[88].mxu1  ;;  %v3637_v61 = vmul.f32 %v5638_v9, %v7850_v2  ;;  %v4136_v26 = vmul.f32 -1.442695, %v4893_v39  ;;  %v8347_v46 = vld [vmem:[#allocation16_spill] sm:$0xff] }
 0x3e2   : > { %v5642_v59 = vpop.eup %5641  ;;  %v3452_v43 = vadd.f32 1.0, %v5640_v44  ;;  %5661 = vpow2.f32 %v4134_v7  ;;  %v4894_v3 = vadd.f32 %v3125_v41, %v7823_v38  ;;  %v3127_v20 = vpop.f32.mrb[89].mxu1 }
 0x3e3   : > { %v5644_v53 = vpop.eup %5643  ;;  %v3453_v22 = vadd.f32 1.0, %v5642_v59  ;;  %5663 = vpow2.f32 %v4135_v35  ;;  %3863 = vmatprep.mubr.f32.mxu0 %v3637_v61  ;;  %v4895_v42 = vadd.f32 %v3127_v20, %v7831_v18  ;;  %v8350_v35 = vld [vmem:[#allocation19_spill] sm:$0xff]  ;;  %v8352_v20 = vld [vmem:[#allocation21_spill] sm:$0xff] }
 0x3e4   : > { %v5646_v32 = vpop.eup %5645  ;;  %5665 = vrcp.f32 %v3452_v43  ;;  %v4137_v4 = vmul.f32 -1.442695, %v4894_v3  ;;  %v3638_v1 = vmul.f32 %v5644_v53, %v7853_v51 }
 0x3e5   : > { %v5648_v13 = vpop.eup %5647  ;;  %5667 = vrcp.f32 %v3453_v22  ;;  %3864 = vmatmul.mubr.f32.gmra.mrb[104].mxu0 %v3636_v5  ;;  %v3131_v2 = vpop.f32.mrb[90].mxu1  ;;  %v3639_v16 = vmul.f32 %v5646_v32, %v7856_v54  ;;  %v4138_v55 = vmul.f32 -1.442695, %v4895_v42 }
 0x3e6   : > { %v5650_v24 = vpop.eup %5649  ;;  %v3454_v33 = vadd.f32 1.0, %v5648_v13  ;;  %5669 = vpow2.f32 %v4136_v26  ;;  %v4896_v34 = vadd.f32 %v3131_v2, %v7823_v38  ;;  %v3133_v10 = vpop.f32.mrb[91].mxu1  ;;  %v8351_v26 = vld [vmem:[#allocation20_spill] sm:$0xff] }
 0x3e7   : > { %v5652_v29 = vpop.eup %5651  ;;  %v3455_v48 = vadd.f32 1.0, %v5650_v24  ;;  %5671 = vpow2.f32 %v4137_v4  ;;  %3868 = vmatprep.mubr.f32.mxu0 %v3639_v16  ;;  %v4897_v8 = vadd.f32 %v3133_v10, %v7831_v18  ;;  %v8353_v4 = vld [vmem:[#allocation34_spill] sm:$0xff] }
 0x3e8   : > { %v5654_v51 = vpop.eup %5653  ;;  %5673 = vrcp.f32 %v3454_v33  ;;  %v4139_v15 = vmul.f32 -1.442695, %v4896_v34  ;;  %v3640_v52 = vmul.f32 %v5652_v29, %v7859_v21  ;;  %v8355_v33 = vld [vmem:[#allocation36_spill] sm:$0xff] }
 0x3e9   : > { %v5656_v14 = vpop.eup %5655  ;;  %5675 = vrcp.f32 %v3455_v48  ;;  %v3456_v54 = vadd.f32 1.0, %v5654_v51  ;;  %v4140_v37 = vmul.f32 -1.442695, %v4897_v8  ;;  %3869 = vmatmul.mubr.f32.gmra.mrb[106].mxu0 %v3638_v1  ;;  %v3137_v63 = vpop.f32.mrb[92].mxu1  ;;  %v8354_v1 = vld [vmem:[#allocation22_spill] sm:$0xff]  ;;  %v8356_v48 = vld [vmem:[#allocation23_spill] sm:$0xff] }
 0x3ea   : > { %v5658_v36 = vpop.eup %5657  ;;  %5677 = vpow2.f32 %v4138_v55  ;;  %v4898_v23 = vadd.f32 %v3137_v63, %v7823_v38  ;;  %v3641_v31 = vmul.f32 %v5656_v14, %v8346_v28  ;;  %v3139_v30 = vpop.f32.mrb[93].mxu1 }
 0x3eb   : > { %v5660_v25 = vpop.eup %5659  ;;  %5679 = vrcp.f32 %v3456_v54  ;;  %v4899_v49 = vadd.f32 %v3139_v30, %v7831_v18  ;;  %v3642_v0 = vmul.f32 %v5658_v36, %v8347_v46  ;;  %v8358_v54 = vld [vmem:[#allocation37_spill] sm:$0xff] }
 0x3ec   : > { %v5662_v21 = vpop.eup %5661  ;;  %5681 = vpow2.f32 %v4139_v15  ;;  %v4141_v40 = vmul.f32 -1.442695, %v4898_v23  ;;  %3873 = vmatprep.mubr.f32.mxu0 %v3641_v31  ;;  %v3643_v50 = vmul.f32 %v5660_v25, %v8348_v19  ;;  %v8357_v15 = vld [vmem:[#allocation24_spill] sm:$0xff]  ;;  %v8359_v36 = vld [vmem:[#allocation13_spill] sm:$0xff]  ;;  %v8362_v19 = vld [vmem:[#allocation14_spill] sm:$0xff] }
 0x3ed   : > { %v5664_v12 = vpop.eup %5663  ;;  %v3457_v11 = vadd.f32 1.0, %v5662_v21  ;;  %5683 = vpow2.f32 %v4140_v37  ;;  %v4142_v17 = vmul.f32 -1.442695, %v4899_v49  ;;  %3874 = vmatmul.mubr.f32.gmra.mrb[108].mxu0 %v3640_v52  ;;  %v3143_v57 = vpop.f32.mrb[94].mxu1  ;;  %v8360_v31 = vld [vmem:[#allocation25_spill] sm:$0xff]  ;;  %v8361_v49 = vld [vmem:[#allocation26_spill] sm:$0xff] }
 0x3ee   : > { %v5666_v47 = vpop.eup %5665  ;;  %v3458_v6 = vadd.f32 1.0, %v5664_v12  ;;  %5685 = vpow2.f32 %v4141_v40  ;;  %v4900_v27 = vadd.f32 %v3143_v57, %v7823_v38  ;;  %3878 = vmatprep.mubr.f32.mxu0 %v3643_v50  ;;  %v3145_v7 = vpop.f32.mrb[95].mxu1  ;;  %v8363_v12 = vld [vmem:[#allocation27_spill] sm:$0xff] }
 0x3ef   : > { %v5668_v58 = vpop.eup %5667  ;;  %5687 = vrcp.f32 %v3457_v11  ;;  %v4901_v62 = vadd.f32 %v3145_v7, %v7831_v18  ;;  %v3644_v60 = vmul.f32 %v5666_v47, %v8349_v45 }
 0x3f0   : > { %v5670_v39 = vpop.eup %5669  ;;  %5689 = vrcp.f32 %v3458_v6  ;;  %v4143_v9 = vmul.f32 -1.442695, %v4900_v27  ;;  %v3645_v5 = vmul.f32 %v5668_v58, %v8350_v35 }
 0x3f1   : > { %v5672_v44 = vpop.eup %5671  ;;  %v3459_v41 = vadd.f32 1.0, %v5670_v39  ;;  %5691 = vpow2.f32 %v4142_v17  ;;  %v4144_v61 = vmul.f32 -1.442695, %v4901_v62  ;;  %3879 = vmatmul.mubr.f32.gmra.mrb[110].mxu0 %v3642_v0 }
 0x3f2   : > { %v5674_v59 = vpop.eup %5673  ;;  %v3460_v38 = vadd.f32 1.0, %v5672_v44  ;;  %5693 = vpow2.f32 %v4143_v9  ;;  %3883 = vmatprep.mubr.f32.mxu0 %v3645_v5 }
 0x3f3   : > { %v5676_v43 = vpop.eup %5675  ;;  %5695 = vrcp.f32 %v3459_v41  ;;  %v3646_v18 = vmul.f32 %v5674_v59, %v8351_v26 }
 0x3f4   : > { %v5678_v3 = vpop.eup %5677  ;;  %5697 = vrcp.f32 %v3460_v38  ;;  %v3647_v53 = vmul.f32 %v5676_v43, %v8352_v20 }
 0x3f5   : > { %v5680_v22 = vpop.eup %5679  ;;  %v3461_v42 = vadd.f32 1.0, %v5678_v3  ;;  %5699 = vpow2.f32 %v4144_v61  ;;  %3884 = vmatmul.mubr.f32.gmra.mrb[112].mxu0 %v3644_v60 }
 0x3f6   : > { %v5682_v32 = vpop.eup %5681  ;;  %5701 = vtanh.f32 %v8353_v4  ;;  %3888 = vmatprep.mubr.f32.mxu0 %v3647_v53  ;;  %v3648_v13 = vmul.f32 %v5680_v22, %v8354_v1 }
 0x3f7   : > { %v5684_v2 = vpop.eup %5683  ;;  %5703 = vrcp.f32 %v3461_v42  ;;  %v3462_v16 = vadd.f32 1.0, %v5682_v32 }
 0x3f8   : > { %v5686_v24 = vpop.eup %5685  ;;  %5705 = vtanh.f32 %v8355_v33  ;;  %v3463_v55 = vadd.f32 1.0, %v5684_v2 }
 0x3f9   : > { %v5688_v34 = vpop.eup %5687  ;;  %5707 = vrcp.f32 %v3462_v16  ;;  %v3464_v10 = vadd.f32 1.0, %v5686_v24  ;;  %3889 = vmatmul.mubr.f32.gmra.mrb[114].mxu0 %v3646_v18 }
 0x3fa   : > { %v5690_v29 = vpop.eup %5689  ;;  %5709 = vrcp.f32 %v3463_v55  ;;  %v3649_v8 = vmul.f32 %v5688_v34, %v8356_v48 }
 0x3fb   : > { %v5692_v51 = vpop.eup %5691  ;;  %5711 = vrcp.f32 %v3464_v10  ;;  %v3650_v52 = vmul.f32 %v5690_v29, %v8357_v15 }
 0x3fc   : > { %v5694_v14 = vpop.eup %5693  ;;  %5713 = vtanh.f32 %v8358_v54  ;;  %v3465_v37 = vadd.f32 1.0, %v5692_v51  ;;  %3893 = vmatprep.mubr.f32.mxu0 %v3649_v8 }
 0x3fd   : > { %v5696_v63 = vpop.eup %5695  ;;  %5715 = vtanh.f32 %v8359_v36  ;;  %v3466_v23 = vadd.f32 1.0, %v5694_v14  ;;  %3894 = vmatmul.mubr.f32.gmra.mrb[116].mxu0 %v3648_v13 }
 0x3fe   : > { %v5698_v28 = vpop.eup %5697  ;;  %5717 = vrcp.f32 %v3465_v37  ;;  %v3651_v30 = vmul.f32 %v5696_v63, %v8360_v31 }
 0x3ff   : > { %v5700_v25 = vpop.eup %5699  ;;  %5719 = vrcp.f32 %v3466_v23  ;;  %v3652_v46 = vmul.f32 %v5698_v28, %v8361_v49 }
 0x400   : > { %v5702_v0 = vpop.eup %5701  ;;  %v3467_v21 = vadd.f32 1.0, %v5700_v25  ;;  %3898 = vmatprep.mubr.f32.mxu0 %v3651_v30  ;;  %5721 = vtanh.f32 %v8362_v19 }
 0x401   : > { %v5704_v40 = vpop.eup %5703  ;;  %3899 = vmatmul.mubr.f32.gmra.mrb[118].mxu0 %v3650_v52 }
 0x402   : > { %v5706_v50 = vpop.eup %5705  ;;  %5723 = vrcp.f32 %v3467_v21  ;;  %v3653_v11 = vmul.f32 %v5704_v40, %v8363_v12 }
 0x403   : > { %v5708_v17 = vpop.eup %5707 }
 0x404   : > { %v5710_v57 = vpop.eup %5709  ;;  %3903 = vmatprep.mubr.f32.mxu0 %v3653_v11  ;;  %v3654_v47 = vmul.f32 %v5708_v17, %v7918_v56  ;;  %v8022_v56 = vld [vmem:[#allocation9] ss:$0 sm:$0xff] }
 0x405   : > { %v5712_v6 = vpop.eup %5711  ;;  %3904 = vmatmul.mubr.f32.gmra.mrb[120].mxu0 %v3652_v46  ;;  %v3655_v27 = vmul.f32 %v5710_v57, %v5702_v0 }
 0x406   : > { %v5714_v7 = vpop.eup %5713  ;;  %v3656_v58 = vmul.f32 %v5712_v6, %v5706_v50 }
 0x407   : > { %v5716_v62 = vpop.eup %5715  ;;  %3908 = vmatprep.mubr.f32.mxu0 %v3655_v27 }
 0x408   : > { %v5718_v45 = vpop.eup %5717 }
 0x409   : > { %v5720_v60 = vpop.eup %5719  ;;  %3909 = vmatmul.mubr.f32.gmra.mrb[122].mxu0 %v3654_v47  ;;  %v3657_v39 = vmul.f32 %v5718_v45, %v5714_v7 }
 0x40a   : > { %v3658_v9 = vmul.f32 %v5720_v60, %v5716_v62  ;;  %v5722_v35 = vpop.eup %5721 }
 0x40b   : > { %3913 = vmatprep.mubr.f32.mxu0 %v3657_v39 }
 0x40c   : > { %v5724_v5 = vpop.eup %5723 }
 0x40d   : > { %3914 = vmatmul.mubr.f32.gmra.mrb[124].mxu0 %v3656_v58  ;;  %v3659_v44 = vmul.f32 %v5724_v5, %v5722_v35 }
 0x40f   : > { %3918 = vmatprep.mubr.f32.mxu0 %v3659_v44 }
 0x411   : > { %3919 = vmatmul.mubr.f32.gmra.mrb[126].mxu0 %v3658_v9 }
 0x465   : > { %v3765_v41 = vpop.f32.mrb[64].mxu0 }
 0x466   : > { %v3766_v61 = vadd.f32 %v8022_v56, %v3765_v41  ;;  %v3767_v59 = vpop.f32.mrb[65].mxu0 }
 0x468   : > { %3924 = vst [vmem:[%s8027_s29] sm:$0xff] %v3766_v61 }
 0x469   : > { %v3770_v38 = vpop.f32.mrb[66].mxu0 }
 0x46a   : > { %v3771_v43 = vadd.f32 %v8022_v56, %v3770_v38  ;;  %v3772_v26 = vpop.f32.mrb[67].mxu0 }
 0x46c   : > { %3925 = vst [vmem:[%s8027_s29 + $0x8] sm:$0xff] %v3771_v43 }
 0x46d   : > { %v3775_v18 = vpop.f32.mrb[68].mxu0 }
 0x46e   : > { %v3776_v3 = vadd.f32 %v8022_v56, %v3775_v18  ;;  %v3777_v20 = vpop.f32.mrb[69].mxu0 }
 0x470   : > { %3926 = vst [vmem:[%s8027_s29 + $0x10] sm:$0xff] %v3776_v3 }
 0x473   : > { %v3780_v53 = vpop.f32.mrb[70].mxu0 }
 0x474   : > { %v3781_v22 = vadd.f32 %v8022_v56, %v3780_v53  ;;  %v3782_v42 = vpop.f32.mrb[71].mxu0 }
 0x476   : > { %3927 = vst [vmem:[%s8027_s29 + $0x18] sm:$0xff] %v3781_v22 }
 0x477   : > { %v3785_v32 = vpop.f32.mrb[72].mxu0 }
 0x478   : > { %v3786_v4 = vadd.f32 %v8022_v56, %v3785_v32  ;;  %v3787_v1 = vpop.f32.mrb[73].mxu0 }
 0x47a   : > { %3928 = vst [vmem:[%s8027_s29 + $0x20] sm:$0xff] %v3786_v4 }
 0x47b   : > { %v3790_v13 = vpop.f32.mrb[74].mxu0 }
 0x47c   : > { %v3791_v2 = vadd.f32 %v8022_v56, %v3790_v13  ;;  %v3792_v16 = vpop.f32.mrb[75].mxu0 }
 0x47e   : > { %3929 = vst [vmem:[%s8027_s29 + $0x28] sm:$0xff] %v3791_v2 }
 0x47f   : > { %v3795_v24 = vpop.f32.mrb[76].mxu0 }
 0x480   : > { %v3796_v33 = vadd.f32 %v8022_v56, %v3795_v24  ;;  %v3797_v55 = vpop.f32.mrb[77].mxu0 }
 0x482   : > { %3930 = vst [vmem:[%s8027_s29 + $0x30] sm:$0xff] %v3796_v33 }
 0x483   : > { %v3800_v34 = vpop.f32.mrb[78].mxu0 }
 0x484   : > { %v3801_v10 = vadd.f32 %v8022_v56, %v3800_v34  ;;  %v3802_v29 = vpop.f32.mrb[79].mxu0 }
 0x486   : > { %3931 = vst [vmem:[%s8027_s29 + $0x38] sm:$0xff] %v3801_v10 }
 0x487   : > { %v3805_v48 = vpop.f32.mrb[80].mxu0 }
 0x488   : > { %v3806_v8 = vadd.f32 %v8022_v56, %v3805_v48  ;;  %v3807_v51 = vpop.f32.mrb[81].mxu0 }
 0x48a   : > { %3932 = vst [vmem:[%s8027_s29 + $0x40] sm:$0xff] %v3806_v8 }
 0x48c   : > { %v3810_v15 = vpop.f32.mrb[82].mxu0 }
 0x48d   : > { %v3811_v52 = vadd.f32 %v8022_v56, %v3810_v15  ;;  %v3812_v14 = vpop.f32.mrb[83].mxu0 }
 0x48f   : > { %3933 = vst [vmem:[%s8027_s29 + $0x48] sm:$0xff] %v3811_v52 }
 0x490   : > { %v3815_v54 = vpop.f32.mrb[84].mxu0 }
 0x491   : > { %v3816_v37 = vadd.f32 %v8022_v56, %v3815_v54  ;;  %v3817_v63 = vpop.f32.mrb[85].mxu0 }
 0x493   : > { %3934 = vst [vmem:[%s8027_s29 + $0x50] sm:$0xff] %v3816_v37 }
 0x494   : > { %v3820_v36 = vpop.f32.mrb[86].mxu0 }
 0x495   : > { %v3821_v23 = vadd.f32 %v8022_v56, %v3820_v36  ;;  %v3822_v28 = vpop.f32.mrb[87].mxu0 }
 0x497   : > { %3935 = vst [vmem:[%s8027_s29 + $0x58] sm:$0xff] %v3821_v23 }
 0x498   : > { %v3825_v31 = vpop.f32.mrb[88].mxu0 }
 0x499   : > { %v3826_v30 = vadd.f32 %v8022_v56, %v3825_v31  ;;  %v3827_v25 = vpop.f32.mrb[89].mxu0 }
 0x49b   : > { %3936 = vst [vmem:[%s8027_s29 + $0x60] sm:$0xff] %v3826_v30 }
 0x49c   : > { %v3830_v49 = vpop.f32.mrb[90].mxu0 }
 0x49d   : > { %v3831_v46 = vadd.f32 %v8022_v56, %v3830_v49  ;;  %v3832_v0 = vpop.f32.mrb[91].mxu0 }
 0x49f   : > { %3937 = vst [vmem:[%s8027_s29 + $0x68] sm:$0xff] %v3831_v46 }
 0x4a0   : > { %v3835_v21 = vpop.f32.mrb[92].mxu0 }
 0x4a1   : > { %v3836_v40 = vadd.f32 %v8022_v56, %v3835_v21  ;;  %v3837_v19 = vpop.f32.mrb[93].mxu0 }
 0x4a3   : > { %3938 = vst [vmem:[%s8027_s29 + $0x70] sm:$0xff] %v3836_v40 }
 0x4a4   : > { %v3840_v50 = vpop.f32.mrb[94].mxu0 }
 0x4a5   : > { %v3841_v12 = vadd.f32 %v8022_v56, %v3840_v50  ;;  %v3842_v11 = vpop.f32.mrb[95].mxu0 }
 0x4a7   : > { %3939 = vst [vmem:[%s8027_s29 + $0x78] sm:$0xff] %v3841_v12 }
 0x4a8   : > { %v3845_v17 = vpop.f32.mrb[96].mxu0 }
 0x4a9   : > { %v3846_v57 = vadd.f32 %v8022_v56, %v3845_v17  ;;  %v3847_v47 = vpop.f32.mrb[97].mxu0 }
 0x4ab   : > { %3940 = vst [vmem:[%s8027_s29 + $0x80] sm:$0xff] %v3846_v57 }
 0x4ac   : > { %v3850_v6 = vpop.f32.mrb[98].mxu0 }
 0x4ad   : > { %v3851_v27 = vadd.f32 %v8022_v56, %v3850_v6  ;;  %v3852_v7 = vpop.f32.mrb[99].mxu0 }
 0x4af   : > { %3941 = vst [vmem:[%s8027_s29 + $0x88] sm:$0xff] %v3851_v27 }
 0x4b0   : > { %v3855_v58 = vpop.f32.mrb[100].mxu0 }
 0x4b1   : > { %v3856_v62 = vadd.f32 %v8022_v56, %v3855_v58  ;;  %v3857_v45 = vpop.f32.mrb[101].mxu0 }
 0x4b3   : > { %3942 = vst [vmem:[%s8027_s29 + $0x90] sm:$0xff] %v3856_v62 }
 0x4b4   : > { %v3860_v60 = vpop.f32.mrb[102].mxu0 }
 0x4b5   : > { %v3861_v39 = vadd.f32 %v8022_v56, %v3860_v60  ;;  %v3862_v9 = vpop.f32.mrb[103].mxu0 }
 0x4b7   : > { %3943 = vst [vmem:[%s8027_s29 + $0x98] sm:$0xff] %v3861_v39 }
 0x4b8   : > { %v3865_v35 = vpop.f32.mrb[104].mxu0 }
 0x4b9   : > { %v3866_v5 = vadd.f32 %v8022_v56, %v3865_v35  ;;  %v3867_v44 = vpop.f32.mrb[105].mxu0 }
 0x4bb   : > { %3944 = vst [vmem:[%s8027_s29 + $0xa0] sm:$0xff] %v3866_v5 }
 0x4bc   : > { %v3870_v41 = vpop.f32.mrb[106].mxu0 }
 0x4bd   : > { %v3871_v61 = vadd.f32 %v8022_v56, %v3870_v41  ;;  %v3872_v59 = vpop.f32.mrb[107].mxu0 }
 0x4bf   : > { %3945 = vst [vmem:[%s8027_s29 + $0xa8] sm:$0xff] %v3871_v61 }
 0x4c0   : > { %v3875_v38 = vpop.f32.mrb[108].mxu0 }
 0x4c1   : > { %v3876_v43 = vadd.f32 %v8022_v56, %v3875_v38  ;;  %v3877_v26 = vpop.f32.mrb[109].mxu0 }
 0x4c3   : > { %3946 = vst [vmem:[%s8027_s29 + $0xb0] sm:$0xff] %v3876_v43 }
 0x4c4   : > { %v3880_v18 = vpop.f32.mrb[110].mxu0 }
 0x4c5   : > { %v3881_v3 = vadd.f32 %v8022_v56, %v3880_v18  ;;  %v3882_v20 = vpop.f32.mrb[111].mxu0 }
 0x4c7   : > { %3947 = vst [vmem:[%s8027_s29 + $0xb8] sm:$0xff] %v3881_v3 }
 0x4c8   : > { %v3885_v53 = vpop.f32.mrb[112].mxu0 }
 0x4c9   : > { %v3886_v22 = vadd.f32 %v8022_v56, %v3885_v53  ;;  %v3887_v42 = vpop.f32.mrb[113].mxu0 }
 0x4cb   : > { %3948 = vst [vmem:[%s8027_s29 + $0xc0] sm:$0xff] %v3886_v22 }
 0x4cc   : > { %v3890_v32 = vpop.f32.mrb[114].mxu0 }
 0x4cd   : > { %v3891_v4 = vadd.f32 %v8022_v56, %v3890_v32  ;;  %v3892_v1 = vpop.f32.mrb[115].mxu0 }
 0x4cf   : > { %3949 = vst [vmem:[%s8027_s29 + $0xc8] sm:$0xff] %v3891_v4 }
 0x4d0   : > { %v3895_v13 = vpop.f32.mrb[116].mxu0 }
 0x4d1   : > { %v3896_v2 = vadd.f32 %v8022_v56, %v3895_v13  ;;  %v3897_v16 = vpop.f32.mrb[117].mxu0 }
 0x4d3   : > { %3950 = vst [vmem:[%s8027_s29 + $0xd0] sm:$0xff] %v3896_v2 }
 0x4d4   : > { %v3900_v24 = vpop.f32.mrb[118].mxu0 }
 0x4d5   : > { %v3901_v33 = vadd.f32 %v8022_v56, %v3900_v24  ;;  %v3902_v55 = vpop.f32.mrb[119].mxu0 }
 0x4d7   : > { %3951 = vst [vmem:[%s8027_s29 + $0xd8] sm:$0xff] %v3901_v33 }
 0x4d8   : > { %v3905_v34 = vpop.f32.mrb[120].mxu0 }
 0x4d9   : > { %v3906_v10 = vadd.f32 %v8022_v56, %v3905_v34  ;;  %v3907_v29 = vpop.f32.mrb[121].mxu0 }
 0x4db   : > { %3952 = vst [vmem:[%s8027_s29 + $0xe0] sm:$0xff] %v3906_v10 }
 0x4dc   : > { %v3910_v48 = vpop.f32.mrb[122].mxu0 }
 0x4dd   : > { %v3911_v8 = vadd.f32 %v8022_v56, %v3910_v48  ;;  %v3912_v51 = vpop.f32.mrb[123].mxu0 }
 0x4df   : > { %3953 = vst [vmem:[%s8027_s29 + $0xe8] sm:$0xff] %v3911_v8 }
 0x4e0   : > { %v3915_v15 = vpop.f32.mrb[124].mxu0 }
 0x4e1   : > { %v3916_v52 = vadd.f32 %v8022_v56, %v3915_v15  ;;  %v3917_v14 = vpop.f32.mrb[125].mxu0 }
 0x4e3   : > { %3954 = vst [vmem:[%s8027_s29 + $0xf0] sm:$0xff] %v3916_v52 }
 0x4e4   : > { %v3920_v54 = vpop.f32.mrb[126].mxu0 }
 0x4e5   : > { %v3921_v37 = vadd.f32 %v8022_v56, %v3920_v54  ;;  %v3922_v63 = vpop.f32.mrb[127].mxu0 }
 0x4e7   : > { %3955 = vst [vmem:[%s8027_s29 + $0xf8] sm:$0xff] %v3921_v37 }
 0x4e8 PF: > { %p17_p6 = scmp.ge.s32.totalorder %s6119_s11, 4   ;;  %s8364_s18 = smov %s5927_s19 }
 0x4e9   : > { %s8365_s19 = smov %s5931_s20  ;;  %s8366_s20 = smov %s6128_s27 }
 0x4ea   : > { %s8367_s21 = smov %s6119_s11  ;;  %19 = sbr.rel (!%p17_p6) target bundleno = 5 (0x5), region = 96 }
 0x4f1   :  { %3978 = vsyncpa [#allocation3], 1 }
 0x4f2   :  { %3980 = vsyncpa [#allocation3 + $0x1], 1 }
 0x4f3   :  { %3981 = vsyncpa [#allocation5], 1 }
 0x4f4   :  { %3982 = vsyncpa [#allocation8], 1 }

</bundles_post_ra>
